<compile_context>
chip_gen: v7x
topology: tpu7x:2x2x1
jax: 0.10.0
libtpu: 0.0.40
codegen_flags: <defaults>
</compile_context>

<pallas_src>
import jax
import jax.numpy as jnp
from jax.experimental import pallas as pl
from jax.experimental.pallas import tpu as pltpu


def _round_up(x, m):
    return (x + m - 1) // m * m


def finetune_kernel(x_ref, wb_ref, bb_ref, wh_ref, bh_ref, o_ref, acc_ref):
    """One (m, k) grid step.

    x_ref  : (tm, tk)        bf16  activation tile
    wb_ref : (tk, hidden)    bf16  frozen backbone weight tile (K-streamed)
    bb_ref : (1, hidden)     f32   frozen backbone bias
    wh_ref : (hidden, ncp)   bf16  trainable head weight (classifier[1])
    bh_ref : (1, ncp)        f32   head bias
    o_ref  : (tm, ncp)       f32   logits tile
    acc_ref: (tm, hidden)    f32   backbone-feature accumulator (scratch)
    """
    k = pl.program_id(1)

    @pl.when(k == 0)
    def _():
        acc_ref[...] = jnp.zeros_like(acc_ref)

    # Frozen backbone matmul, one K tile: bf16 MXU, f32 accumulation.
    acc_ref[...] += jnp.dot(x_ref[...], wb_ref[...],
                            preferred_element_type=jnp.float32)

    @pl.when(k == pl.num_programs(1) - 1)
    def _():
        # Frozen backbone bias + ReLU6 nonlinearity (nonlinear => not foldable into head).
        feat = jnp.clip(acc_ref[...] + bb_ref[...], 0.0, 6.0)
        # classifier[0] = Dropout(0.2): eval/inference mode => identity.
        # TODO(synk): training-mode dropout would use pltpu.prng_seed / prng_random_bits masking.
        # classifier[1] = Linear(1280 -> num_classes): bf16 MXU, f32 accumulate + bias.
        out = jnp.dot(feat.astype(jnp.bfloat16), wh_ref[...],
                      preferred_element_type=jnp.float32) + bh_ref[...]
        o_ref[...] = out.astype(o_ref.dtype)


def prepare_params(params, *, tk=1024):
    """One-time (model-load time) cast/pad of the frozen backbone and head weights.

    Hoisted out of the per-call path: the backbone is frozen, so these bf16 casts and
    zero-paddings are constants and never re-run per forward call.
    """
    wb, bb, wh, bh = params                     # f32 master weights
    d_in, hidden = wb.shape
    num_classes = wh.shape[1]

    d_pad = _round_up(d_in, 128)
    tk = min(tk, d_pad)
    d_pad = _round_up(d_pad, tk)                # K tiles evenly divide the padded K dim
    nc_pad = _round_up(num_classes, 128)        # lane-dense output stores

    wb_p = jnp.zeros((d_pad, hidden), jnp.bfloat16).at[:d_in, :].set(
        wb.astype(jnp.bfloat16))
    bb_p = bb.astype(jnp.float32).reshape(1, hidden)
    # TODO(synk): on v7x the frozen backbone weight could be stored as fp8 with
    # per-column scales to halve streamed HBM bytes (accuracy tradeoff, offline calib).
    wh_p = jnp.zeros((hidden, nc_pad), jnp.bfloat16).at[:, :num_classes].set(
        wh.astype(jnp.bfloat16))
    bh_p = jnp.zeros((1, nc_pad), jnp.float32).at[:, :num_classes].set(
        bh.reshape(1, num_classes))

    return dict(wb=wb_p, bb=bb_p, wh=wh_p, bh=bh_p,
                d_in=d_in, d_pad=d_pad, tk=tk, hidden=hidden,
                num_classes=num_classes, nc_pad=nc_pad)


def _spec(shape, index_map, mode=None):
    if mode is None:
        return pl.BlockSpec(shape, index_map)
    return pl.BlockSpec(shape, index_map, pipeline_mode=mode)


def finetune_forward(x_nchw, prepared, *, tm=512):
    """x_nchw: [B, C, H, W] float32 -> logits [B, num_classes] float32."""
    wb_p, bb_p = prepared["wb"], prepared["bb"]
    wh_p, bh_p = prepared["wh"], prepared["bh"]
    d_in, d_pad, tk = prepared["d_in"], prepared["d_pad"], prepared["tk"]
    hidden = prepared["hidden"]
    num_classes, nc_pad = prepared["num_classes"], prepared["nc_pad"]

    B = x_nchw.shape[0]
    x_flat = x_nchw.reshape(B, d_in).astype(jnp.bfloat16)
    if d_pad != d_in:
        # Ragged K remainder only; padded weight rows are zero, so zero-padding is exact.
        x_flat = jnp.pad(x_flat, ((0, 0), (0, d_pad - d_in)))

    # Batch tiling: one m-tile for the whole batch when it fits (frozen weight is then
    # streamed from HBM exactly once); otherwise tile with tm and pad the ragged tail.
    if B <= tm:
        tm_eff, m_pad = B, B
        x_p = x_flat
    else:
        tm_eff = tm
        m_pad = _round_up(B, tm)
        x_p = jnp.pad(x_flat, ((0, m_pad - B), (0, 0))) if m_pad != B else x_flat

    grid = (m_pad // tm_eff, d_pad // tk)
    n_steps = grid[0] * grid[1]
    # Triple-buffer the two streamed inputs only when the grid is long enough to benefit.
    stream_mode = pl.Buffered(3) if n_steps >= 3 else None

    cost = pl.CostEstimate(
        flops=2 * m_pad * d_pad * hidden + 2 * m_pad * hidden * nc_pad,
        transcendentals=0,
        bytes_accessed=(x_p.size * 2                 # activations (bf16)
                        + grid[0] * wb_p.size * 2    # frozen W streamed once per m tile
                        + wh_p.size * 2
                        + (bb_p.size + bh_p.size) * 4
                        + m_pad * nc_pad * 4),
    )

    out_padded = pl.pallas_call(
        finetune_kernel,
        out_shape=jax.ShapeDtypeStruct((m_pad, nc_pad), jnp.float32),
        grid_spec=pltpu.PrefetchScalarGridSpec(
            num_scalar_prefetch=0,
            grid=grid,
            in_specs=[
                _spec((tm_eff, tk), lambda m, k: (m, k), stream_mode),     # x tile
                _spec((tk, hidden), lambda m, k: (k, 0), stream_mode),     # frozen W tile
                pl.BlockSpec((1, hidden), lambda m, k: (0, 0)),            # frozen bias
                pl.BlockSpec((hidden, nc_pad), lambda m, k: (0, 0)),       # head weight
                pl.BlockSpec((1, nc_pad), lambda m, k: (0, 0)),            # head bias
            ],
            out_specs=pl.BlockSpec((tm_eff, nc_pad), lambda m, k: (m, 0)),
            scratch_shapes=[pltpu.VMEM((tm_eff, hidden), jnp.float32)],    # f32 accumulator
        ),
        compiler_params=pltpu.CompilerParams(
            dimension_semantics=("parallel", "arbitrary"),
            # Footprint at tm=512/tk=1024 is ~15 MiB -> safe on v7x's 64 MiB VMEM.
            # On v5e/v6e (128 MiB), tk=2048 with a larger limit is also viable.
            vmem_limit_bytes=32 * 1024 * 1024,
        ),
        cost_estimate=cost,
    )(x_p, wb_p, bb_p, wh_p, bh_p)

    return out_padded[:B, :num_classes]


def init_params(key, d_in, hidden, num_classes):
    k = jax.random.split(key, 4)
    # Frozen backbone stand-in: Linear(d_in -> hidden) + ReLU6 feature extractor.
    # TODO(synk): the real pretrained conv backbone (e.g. MobileNetV2 features) has no
    # clean Pallas equivalent here; it is modeled as a frozen nonlinear feature
    # extractor producing the same 1280-wide feature vector.
    wb = jax.random.normal(k[0], (d_in, hidden), jnp.float32) * (1.0 / d_in ** 0.5)
    bb = jax.random.normal(k[1], (1, hidden), jnp.float32) * 0.01
    # Replaced head: classifier[1] = Linear(hidden -> num_classes).
    wh = jax.random.normal(k[2], (hidden, num_classes), jnp.float32) * (1.0 / hidden ** 0.5)
    bh = jax.random.normal(k[3], (1, num_classes), jnp.float32) * 0.01
    return wb, bb, wh, bh


if __name__ == "__main__":
    key = jax.random.PRNGKey(0)
    kx, kp = jax.random.split(key)

    B, C, H, W = 2, 4, 16, 16
    num_classes = 10
    hidden = 1280                      # MobileNetV2-style feature width (classifier[1] input)
    d_in = C * H * W

    x = jax.random.normal(kx, (B, C, H, W), jnp.float32)
    params = init_params(kp, d_in, hidden, num_classes)

    prepared = prepare_params(params)  # one-time, model-load-time constant work
    out = finetune_forward(x, prepared)
    out = jax.block_until_ready(out)

    # Pure-JAX f32 reference of the forward pass (eval mode).
    wb, bb, wh, bh = params
    x_flat = x.reshape(B, d_in)
    feat = jnp.clip(x_flat @ wb + bb, 0.0, 6.0)   # frozen backbone stand-in
    ref = feat @ wh + bh                          # Dropout(0.2) eval = identity; new head

    assert out.shape == (B, num_classes)
    max_err = float(jnp.max(jnp.abs(out - ref)))
    # bf16 matmuls with f32 accumulation => loose tolerance vs. the f32 reference.
    assert jnp.allclose(out, ref, atol=5e-2, rtol=5e-2), max_err

    print("KERNEL_OK")
</pallas_src>

<mosaic_0001>
module attributes {stable_mosaic.version = 11 : i64} {
  func.func @finetune_kernel(%arg0: i32, %arg1: i32, %arg2: memref<2x1024xbf16, #tpu.memory_space<vmem>>, %arg3: memref<1024x1280xbf16, #tpu.memory_space<vmem>>, %arg4: memref<1x1280xf32, #tpu.memory_space<vmem>>, %arg5: memref<1280x128xbf16, #tpu.memory_space<vmem>>, %arg6: memref<1x128xf32, #tpu.memory_space<vmem>>, %arg7: memref<2x128xf32, #tpu.memory_space<vmem>>, %arg8: memref<2x1280xf32, #tpu.memory_space<vmem>>) attributes {dimension_semantics = [#tpu.dimension_semantics<parallel>, #tpu.dimension_semantics<arbitrary>], iteration_bounds = array<i64: 1, 1>, scalar_prefetch = 0 : i64, scratch_operands = 1 : i64, tpu.core_type = #tpu.core_type<tc>, window_params = [{transform_indices = @transform_0, window_bounds = array<i64: 2, 1024>}, {transform_indices = @transform_1, window_bounds = array<i64: 1024, 1280>}, {pipeline_mode = #tpu.pipeline_mode<synchronous>, transform_indices = @transform_2, window_bounds = array<i64: 1, 1280>}, {pipeline_mode = #tpu.pipeline_mode<synchronous>, transform_indices = @transform_3, window_bounds = array<i64: 1280, 128>}, {pipeline_mode = #tpu.pipeline_mode<synchronous>, transform_indices = @transform_4, window_bounds = array<i64: 1, 128>}, {transform_indices = @transform_5, window_bounds = array<i64: 2, 128>}]} {
    %c0_i32 = arith.constant 0 : i32
    %0 = arith.cmpi eq, %arg1, %c0_i32 : i32
    %1 = arith.extui %0 : i1 to i32
    %c0_i32_0 = arith.constant 0 : i32
    %2 = arith.cmpi ne, %1, %c0_i32_0 : i32
    scf.if %2 {
      %cst_10 = arith.constant 0.000000e+00 : f32
      %12 = vector.broadcast %cst_10 : f32 to vector<2x1280xf32>
      %c0_11 = arith.constant 0 : index
      %c0_12 = arith.constant 0 : index
      %13 = vector.load %arg8[%c0_11, %c0_12] : memref<2x1280xf32, #tpu.memory_space<vmem>>, vector<2x1280xf32>
      tpu.vector_store %arg8[%c0_11, %c0_12], %12 {strides = array<i32>} : memref<2x1280xf32, #tpu.memory_space<vmem>>, vector<2x1280xf32>,
    } else {
    }
    %c0 = arith.constant 0 : index
    %c0_1 = arith.constant 0 : index
    %3 = vector.load %arg8[%c0, %c0_1] : memref<2x1280xf32, #tpu.memory_space<vmem>>, vector<2x1280xf32>
    %c0_2 = arith.constant 0 : index
    %c0_3 = arith.constant 0 : index
    %4 = vector.load %arg2[%c0_2, %c0_3] : memref<2x1024xbf16, #tpu.memory_space<vmem>>, vector<2x1024xbf16>
    %c0_4 = arith.constant 0 : index
    %c0_5 = arith.constant 0 : index
    %5 = vector.load %arg3[%c0_4, %c0_5] : memref<1024x1280xbf16, #tpu.memory_space<vmem>>, vector<1024x1280xbf16>
    %cst = arith.constant dense<0.000000e+00> : vector<2x1280xf32>
    %6 = tpu.matmul %4, %5, %cst {dimension_numbers = #tpu.dot_dimension_numbers<[1], [0], [0], [1], [0, 0, 1, 1], [], []>} : vector<2x1024xbf16>, vector<1024x1280xbf16>, vector<2x1280xf32> -> vector<2x1280xf32>
    %7 = arith.addf %3, %6 : vector<2x1280xf32>
    %c0_6 = arith.constant 0 : index
    %c0_7 = arith.constant 0 : index
    %8 = vector.load %arg8[%c0_6, %c0_7] : memref<2x1280xf32, #tpu.memory_space<vmem>>, vector<2x1280xf32>
    tpu.vector_store %arg8[%c0_6, %c0_7], %7 {strides = array<i32>} : memref<2x1280xf32, #tpu.memory_space<vmem>>, vector<2x1280xf32>,
    %c0_i32_8 = arith.constant 0 : i32
    %9 = arith.cmpi eq, %arg1, %c0_i32_8 : i32
    %10 = arith.extui %9 : i1 to i32
    %c0_i32_9 = arith.constant 0 : i32
    %11 = arith.cmpi ne, %10, %c0_i32_9 : i32
    scf.if %11 {
      %c0_10 = arith.constant 0 : index
      %c0_11 = arith.constant 0 : index
      %12 = vector.load %arg8[%c0_10, %c0_11] : memref<2x1280xf32, #tpu.memory_space<vmem>>, vector<2x1280xf32>
      %c0_12 = arith.constant 0 : index
      %c0_13 = arith.constant 0 : index
      %13 = vector.load %arg4[%c0_12, %c0_13] : memref<1x1280xf32, #tpu.memory_space<vmem>>, vector<1x1280xf32>
      %14 = vector.broadcast %13 : vector<1x1280xf32> to vector<2x1280xf32>
      %15 = arith.addf %12, %14 : vector<2x1280xf32>
      %cst_14 = arith.constant 0.000000e+00 : f32
      %cst_15 = arith.constant 6.000000e+00 : f32
      %16 = vector.broadcast %cst_14 : f32 to vector<2x1280xf32>
      %17 = arith.maximumf %16, %15 : vector<2x1280xf32>
      %18 = vector.broadcast %cst_15 : f32 to vector<2x1280xf32>
      %19 = arith.minimumf %18, %17 : vector<2x1280xf32>
      %20 = arith.truncf %19 : vector<2x1280xf32> to vector<2x1280xbf16>
      %c0_16 = arith.constant 0 : index
      %c0_17 = arith.constant 0 : index
      %21 = vector.load %arg5[%c0_16, %c0_17] : memref<1280x128xbf16, #tpu.memory_space<vmem>>, vector<1280x128xbf16>
      %cst_18 = arith.constant dense<0.000000e+00> : vector<2x128xf32>
      %22 = tpu.matmul %20, %21, %cst_18 {dimension_numbers = #tpu.dot_dimension_numbers<[1], [0], [0], [1], [0, 0, 1, 1], [], []>} : vector<2x1280xbf16>, vector<1280x128xbf16>, vector<2x128xf32> -> vector<2x128xf32>
      %c0_19 = arith.constant 0 : index
      %c0_20 = arith.constant 0 : index
      %23 = vector.load %arg6[%c0_19, %c0_20] : memref<1x128xf32, #tpu.memory_space<vmem>>, vector<1x128xf32>
      %24 = vector.broadcast %23 : vector<1x128xf32> to vector<2x128xf32>
      %25 = arith.addf %22, %24 : vector<2x128xf32>
      %c0_21 = arith.constant 0 : index
      %c0_22 = arith.constant 0 : index
      %26 = vector.load %arg7[%c0_21, %c0_22] : memref<2x128xf32, #tpu.memory_space<vmem>>, vector<2x128xf32>
      tpu.vector_store %arg7[%c0_21, %c0_22], %25 {strides = array<i32>} : memref<2x128xf32, #tpu.memory_space<vmem>>, vector<2x128xf32>,
    } else {
    }
    return
  }
  func.func @transform_0(%arg0: i32, %arg1: i32) -> (i32, i32) {
    %c0_i32 = arith.constant 0 : i32
    return %arg0, %arg1 : i32, i32
  }
  func.func @transform_1(%arg0: i32, %arg1: i32) -> (i32, i32) {
    %c0_i32 = arith.constant 0 : i32
    %c0_i32_0 = arith.constant 0 : i32
    return %arg1, %c0_i32 : i32, i32
  }
  func.func @transform_2(%arg0: i32, %arg1: i32) -> (i32, i32) {
    %c0_i32 = arith.constant 0 : i32
    %c0_i32_0 = arith.constant 0 : i32
    %c0_i32_1 = arith.constant 0 : i32
    return %c0_i32, %c0_i32_0 : i32, i32
  }
  func.func @transform_3(%arg0: i32, %arg1: i32) -> (i32, i32) {
    %c0_i32 = arith.constant 0 : i32
    %c0_i32_0 = arith.constant 0 : i32
    %c0_i32_1 = arith.constant 0 : i32
    return %c0_i32, %c0_i32_0 : i32, i32
  }
  func.func @transform_4(%arg0: i32, %arg1: i32) -> (i32, i32) {
    %c0_i32 = arith.constant 0 : i32
    %c0_i32_0 = arith.constant 0 : i32
    %c0_i32_1 = arith.constant 0 : i32
    return %c0_i32, %c0_i32_0 : i32, i32
  }
  func.func @transform_5(%arg0: i32, %arg1: i32) -> (i32, i32) {
    %c0_i32 = arith.constant 0 : i32
    %c0_i32_0 = arith.constant 0 : i32
    return %arg0, %c0_i32 : i32, i32
  }
}

</mosaic_0001>

<bundles_post_ra>
// kernel: tpu_custom_call.1
= control target key start
LH: loop header
LB: loop body
LE: loop exit
PB: predicated region body
PF: predicated region fallthrough
CT: control target
= control target key end

     0   :  { %10 = vsyncpa [#allocation4], 0  ;;  %s8266_s0 = inlined_call_operand.hbm [shape: bf16[2,1024], index: 0, kind: input, shape index: {}]   ;;  %s8267_s1 = inlined_call_operand.hbm [shape: bf16[1024,1280], index: 1, kind: input, shape index: {}]   ;;  %s8268_s2 = inlined_call_operand.hbm [shape: f32[1,1280], index: 2, kind: input, shape index: {}]   ;;  %s8269_s3 = inlined_call_operand.hbm [shape: bf16[1280,128], index: 3, kind: input, shape index: {}]   ;;  %s8270_s4 = inlined_call_operand.hbm [shape: f32[1,128], index: 4, kind: input, shape index: {}]   ;;  %s8271_s5 = inlined_call_operand.hbm [shape: f32[2,128], index: 5, kind: output, shape index: {}]  }
   0x1   :  { %11 = vsyncpa [#allocation7], 0 }
   0x2   :  { %12 = vsyncpa [#allocation10], 0 }
   0x3   :  { %13 = vsyncpa [#allocation5], 0  ;;  %s7991_s18 = smov [#allocation6]   ;;  %s7851_s22 = scalar_lea.hbm %s8267_s1, 81920 }
   0x4   :  { %s29_s19 = sshll.u32 %s7991_s18, 4  ;;  %p7852_p0 = scmp.ne.s32.totalorder %s8267_s1, %s7851_s22  ;;  %s30_s19 = int_to_ptr.vmem [resolvable:$true] %s29_s19 }
   0x5   :  { %p7855_p1 = scmp.lt.u32.totalorder %s7851_s22, %s8267_s1 }
   0x7   :  { %p7857_p2 = pnand %p7855_p1, %p7852_p0 }
   0x9   :  { %7860 = shalt.err (!%p7857_p2)
}
   0xa   :  { %s7861_s27 = scalar_lea.vmem %s30_s19, 81920  ;;  %p7866_p4 = scmp.lt.s32.totalorder %s30_s19, %s30_s19 }
   0xb   :  { %p7862_p3 = scmp.ne.s32.totalorder %s30_s19, %s7861_s27  ;;  %p7867_p5 = scmp.lt.s32.totalorder %s7861_s27, %s7861_s27 }
   0xd   :  { %p7868_p6 = por %p7867_p5, %p7866_p4 }
   0xf   :  { %p7869_p7 = pnand %p7868_p6, %p7862_p3 }
  0x11   :  { %7872 = shalt.err (!%p7869_p7)
}
  0x12   :  { %s7992_s28 = smov 640   ;;  %s7993_s29 = smov 40  }
  0x13   :  { %35 = dma.hbm_to_vmem [thread:$0]  %s8267_s1, 81920, %s30_s19, [#allocation7], %s7992_s28, %s7992_s28, %s7993_s29  }
  0x14   :  { %s7994_s7 = smov [#allocation9]   ;;  %s7873_s11 = scalar_lea.hbm %s8269_s3, 10240 }
  0x15   :  { %s51_s8 = sshll.u32 %s7994_s7, 4  ;;  %p7874_p8 = scmp.ne.s32.totalorder %s8269_s3, %s7873_s11  ;;  %s52_s8 = int_to_ptr.vmem [resolvable:$true] %s51_s8 }
  0x16   :  { %p7877_p9 = scmp.lt.u32.totalorder %s7873_s11, %s8269_s3 }
  0x18   :  { %p7879_p10 = pnand %p7877_p9, %p7874_p8 }
  0x1a   :  { %7882 = shalt.err (!%p7879_p10)
}
  0x1b   :  { %s7883_s16 = scalar_lea.vmem %s52_s8, 10240  ;;  %p7888_p12 = scmp.lt.s32.totalorder %s52_s8, %s52_s8 }
  0x1c   :  { %p7884_p11 = scmp.ne.s32.totalorder %s52_s8, %s7883_s16  ;;  %p7889_p13 = scmp.lt.s32.totalorder %s7883_s16, %s7883_s16 }
  0x1e   :  { %p7890_p0 = por %p7889_p13, %p7888_p12 }
  0x20   :  { %p7891_p1 = pnand %p7890_p0, %p7884_p11 }
  0x22   :  { %7894 = shalt.err (!%p7891_p1)
}
  0x23   :  { %s7995_s1 = smov 64   ;;  %s7996_s17 = smov 4  }
  0x24   :  { %57 = dma.hbm_to_vmem [thread:$0]  %s8269_s3, 10240, %s52_s8, [#allocation10], %s7995_s1, %s7995_s1, %s7996_s17  }
  0x25   :  { %s7997_s20 = smov [#allocation3]   ;;  %s7998_s22 = smov [#allocation8]  }
  0x26   :  { %s20_s21 = sshll.u32 %s7997_s20, 4  ;;  %s42_s23 = sshll.u32 %s7998_s22, 4  ;;  %s21_s21 = int_to_ptr.vmem [resolvable:$true] %s20_s21  ;;  %s43_s23 = int_to_ptr.vmem [resolvable:$true] %s42_s23 }
  0x27   :  { %s7895_s26 = scalar_lea.hbm %s8266_s0, 128 }
  0x28   :  { %p7896_p2 = scmp.ne.s32.totalorder %s8266_s0, %s7895_s26  ;;  %p7899_p3 = scmp.lt.u32.totalorder %s7895_s26, %s8266_s0 }
  0x2a   :  { %p7901_p4 = pnand %p7899_p3, %p7896_p2 }
  0x2c   :  { %7904 = shalt.err (!%p7901_p4)
}
  0x2d   :  { %s7905_s3 = scalar_lea.vmem %s21_s21, 128  ;;  %p7910_p6 = scmp.lt.s32.totalorder %s21_s21, %s21_s21 }
  0x2e   :  { %p7906_p5 = scmp.ne.s32.totalorder %s21_s21, %s7905_s3  ;;  %p7911_p7 = scmp.lt.s32.totalorder %s7905_s3, %s7905_s3 }
  0x30   :  { %p7912_p8 = por %p7911_p7, %p7910_p6 }
  0x32   :  { %p7913_p9 = pnand %p7912_p8, %p7906_p5 }
  0x34   :  { %7916 = shalt.err (!%p7913_p9)
}
  0x35   :  { %23 = dma.hbm_to_vmem [thread:$0]  %s8266_s0, 128, %s21_s21, [#allocation4]  }
  0x36   :  { %s7917_s10 = scalar_lea.hbm %s8268_s2, 160 }
  0x37   :  { %p7918_p10 = scmp.ne.s32.totalorder %s8268_s2, %s7917_s10  ;;  %p7921_p11 = scmp.lt.u32.totalorder %s7917_s10, %s8268_s2 }
  0x39   :  { %p7923_p12 = pnand %p7921_p11, %p7918_p10 }
  0x3b   :  { %7926 = shalt.err (!%p7923_p12)
}
  0x3c   :  { %s7927_s15 = scalar_lea.vmem %s43_s23, 160  ;;  %p7932_p0 = scmp.lt.s32.totalorder %s43_s23, %s43_s23 }
  0x3d   :  { %p7928_p13 = scmp.ne.s32.totalorder %s43_s23, %s7927_s15  ;;  %p7933_p1 = scmp.lt.s32.totalorder %s7927_s15, %s7927_s15 }
  0x3f   :  { %p7934_p2 = por %p7933_p1, %p7932_p0 }
  0x41   :  { %p7935_p3 = pnand %p7934_p2, %p7928_p13 }
  0x43   :  { %7938 = shalt.err (!%p7935_p3)
}
  0x44   :  { %45 = dma.hbm_to_vmem [thread:$0]  %s8268_s2, 160, %s43_s23, [#allocation7]  }
  0x45   :  { %s7999_s1 = smov [#allocation11]   ;;  %s7939_s20 = scalar_lea.hbm %s8270_s4, 16 }
  0x46   :  { %s64_s17 = sshll.u32 %s7999_s1, 4  ;;  %p7940_p4 = scmp.ne.s32.totalorder %s8270_s4, %s7939_s20  ;;  %s65_s17 = int_to_ptr.vmem [resolvable:$true] %s64_s17 }
  0x47   :  { %p7943_p5 = scmp.lt.u32.totalorder %s7939_s20, %s8270_s4 }
  0x49   :  { %p7945_p6 = pnand %p7943_p5, %p7940_p4 }
  0x4b   :  { %7948 = shalt.err (!%p7945_p6)
}
  0x4c   :  { %s7949_s26 = scalar_lea.vmem %s65_s17, 16  ;;  %s7953_s2 = scalar_lea.vmem %s65_s17, 32 }
  0x4d   :  { %p7950_p7 = scmp.ne.s32.totalorder %s65_s17, %s7949_s26  ;;  %p7954_p8 = scmp.lt.s32.totalorder %s65_s17, %s65_s17 }
  0x4e   :  { %p7955_p9 = scmp.lt.s32.totalorder %s7953_s2, %s7949_s26 }
  0x50   :  { %p7956_p10 = por %p7955_p9, %p7954_p8 }
  0x52   :  { %p7957_p11 = pnand %p7956_p10, %p7950_p7 }
  0x54   :  { %7960 = shalt.err (!%p7957_p11)
}
  0x55   :  { %67 = dma.hbm_to_vmem [thread:$0]  %s8270_s4, 16, %s65_s17, [#allocation10]  }
  0x56   :  { %7983 = dma.done.wait [#allocation4], 128  }
  0x57   :  { %7984 = vsyncadd [#allocation4], 4294967168 }
  0x58   :  { %7985 = dma.done.wait [#allocation7], 82080  }
  0x59   :  { %7986 = vsyncadd [#allocation7], 4294885216 }
  0x5a   :  { %7987 = dma.done.wait [#allocation10], 10256  }
  0x5b   :  { %7988 = vsyncadd [#allocation10], 4294957040  ;;  %v6810_v0 = vld [vmem:[#allocation6 + $0x4] ss:$40 sps:$4 sm:$0xff]   ;;  %v6814_v2 = vld [vmem:[#allocation6] ss:$40 sps:$4 sm:$0xff]   ;;  %v740_v38 = vlaneseq }
  0x5c   :  { %v6812_v1 = vld [vmem:[#allocation6 + $0x504] ss:$40 sps:$4 sm:$0xff]   ;;  %3993 = vmatprep.subr.bf16.mxu1 %v6810_v0  ;;  %v6815_v3 = vld [vmem:[#allocation6 + $0x500] ss:$40 sps:$4 sm:$0xff]   ;;  %v6816_v4 = vld [vmem:[#allocation6 + $0x54] ss:$40 sps:$4 sm:$0xff]  }
  0x5d   :  { %4034 = vmatprep.subr.bf16.mxu0 %v6812_v1  ;;  %3994 = vmatpush1.bf16.msra.mxu1 %v6814_v2  ;;  %v6818_v5 = vld [vmem:[#allocation6 + $0x554] ss:$40 sps:$4 sm:$0xff]   ;;  %v6820_v6 = vld [vmem:[#allocation6 + $0x50] ss:$40 sps:$4 sm:$0xff]   ;;  %v6822_v8 = vld [vmem:[#allocation6 + $0xa4] ss:$40 sps:$4 sm:$0xff]  }
  0x5e   :  { %4035 = vmatpush1.bf16.msra.mxu0 %v6815_v3  ;;  %3995 = vmatprep.subr.bf16.mxu1 %v6816_v4  ;;  %v6821_v7 = vld [vmem:[#allocation6 + $0x550] ss:$40 sps:$4 sm:$0xff]   ;;  %v6824_v9 = vld [vmem:[#allocation6 + $0x5a4] ss:$40 sps:$4 sm:$0xff]   ;;  %v6826_v10 = vld [vmem:[#allocation6 + $0xa0] ss:$40 sps:$4 sm:$0xff]  }
  0x5f   :  { %4036 = vmatprep.subr.bf16.mxu0 %v6818_v5  ;;  %v6827_v11 = vld [vmem:[#allocation6 + $0x5a0] ss:$40 sps:$4 sm:$0xff]   ;;  %v6828_v12 = vld [vmem:[#allocation6 + $0xf4] ss:$40 sps:$4 sm:$0xff]   ;;  %v6832_v14 = vld [vmem:[#allocation6 + $0xf0] ss:$40 sps:$4 sm:$0xff]  }
  0x60   :  { %v6830_v13 = vld [vmem:[#allocation6 + $0x5f4] ss:$40 sps:$4 sm:$0xff]   ;;  %v6833_v15 = vld [vmem:[#allocation6 + $0x5f0] ss:$40 sps:$4 sm:$0xff]   ;;  %v6834_v16 = vld [vmem:[#allocation6 + $0x144] ss:$40 sps:$4 sm:$0xff]  }
  0x61   :  { %3996 = vmatpush1.bf16.msra.mxu1 %v6820_v6  ;;  %v6836_v17 = vld [vmem:[#allocation6 + $0x644] ss:$40 sps:$4 sm:$0xff]   ;;  %v6838_v18 = vld [vmem:[#allocation6 + $0x140] ss:$40 sps:$4 sm:$0xff]   ;;  %v6840_v20 = vld [vmem:[#allocation6 + $0x194] ss:$40 sps:$4 sm:$0xff]  }
  0x62   :  { %4037 = vmatpush1.bf16.msra.mxu0 %v6821_v7  ;;  %3997 = vmatprep.subr.bf16.mxu1 %v6822_v8  ;;  %v6839_v19 = vld [vmem:[#allocation6 + $0x640] ss:$40 sps:$4 sm:$0xff]   ;;  %v6842_v21 = vld [vmem:[#allocation6 + $0x694] ss:$40 sps:$4 sm:$0xff]   ;;  %v6844_v22 = vld [vmem:[#allocation6 + $0x190] ss:$40 sps:$4 sm:$0xff]  }
  0x63   :  { %4038 = vmatprep.subr.bf16.mxu0 %v6824_v9  ;;  %v6845_v23 = vld [vmem:[#allocation6 + $0x690] ss:$40 sps:$4 sm:$0xff]   ;;  %v6846_v24 = vld [vmem:[#allocation6 + $0x1e4] ss:$40 sps:$4 sm:$0xff]   ;;  %v6850_v26 = vld [vmem:[#allocation6 + $0x1e0] ss:$40 sps:$4 sm:$0xff]  }
  0x64   :  { %v6848_v25 = vld [vmem:[#allocation6 + $0x6e4] ss:$40 sps:$4 sm:$0xff]   ;;  %v6851_v27 = vld [vmem:[#allocation6 + $0x6e0] ss:$40 sps:$4 sm:$0xff]   ;;  %v6852_v28 = vld [vmem:[#allocation6 + $0x234] ss:$40 sps:$4 sm:$0xff]  }
  0x65   :  { %3998 = vmatpush1.bf16.msra.mxu1 %v6826_v10  ;;  %v6854_v29 = vld [vmem:[#allocation6 + $0x734] ss:$40 sps:$4 sm:$0xff]   ;;  %v6856_v30 = vld [vmem:[#allocation6 + $0x230] ss:$40 sps:$4 sm:$0xff]   ;;  %v6858_v32 = vld [vmem:[#allocation6 + $0x284] ss:$40 sps:$4 sm:$0xff]  }
  0x66   :  { %4039 = vmatpush1.bf16.msra.mxu0 %v6827_v11  ;;  %3999 = vmatprep.subr.bf16.mxu1 %v6828_v12  ;;  %v6857_v31 = vld [vmem:[#allocation6 + $0x730] ss:$40 sps:$4 sm:$0xff]   ;;  %v6860_v33 = vld [vmem:[#allocation6 + $0x784] ss:$40 sps:$4 sm:$0xff]   ;;  %v6862_v34 = vld [vmem:[#allocation6 + $0x280] ss:$40 sps:$4 sm:$0xff]  }
  0x67   :  { %4040 = vmatprep.subr.bf16.mxu0 %v6830_v13  ;;  %v6863_v35 = vld [vmem:[#allocation6 + $0x780] ss:$40 sps:$4 sm:$0xff]   ;;  %v8000_v36 = vmov 1966171168   ;;  %v6864_v39 = vld [vmem:[#allocation6 + $0x2d4] ss:$40 sps:$4 sm:$0xff]  }
  0x68   :  { %v738_v37 = vunpack.c.l.s4 %v8000_v36  ;;  %v6866_v40 = vld [vmem:[#allocation6 + $0x7d4] ss:$40 sps:$4 sm:$0xff]   ;;  %v6868_v41 = vld [vmem:[#allocation6 + $0x2d0] ss:$40 sps:$4 sm:$0xff]   ;;  %v8094_v43 = vshrl.u32 %v740_v38, 7  ;;  %s8003_s4 = smov [#allocation12]  }
  0x69   :  { %4000 = vmatpush1.bf16.msra.mxu1 %v6832_v14  ;;  %v6869_v44 = vld [vmem:[#allocation6 + $0x7d0] ss:$40 sps:$4 sm:$0xff]   ;;  %v6870_v45 = vld [vmem:[#allocation6 + $0x324] ss:$40 sps:$4 sm:$0xff]   ;;  %v6874_v47 = vld [vmem:[#allocation6 + $0x320] ss:$40 sps:$4 sm:$0xff]  }
  0x6a   :  { %4041 = vmatpush1.bf16.msra.mxu0 %v6833_v15  ;;  %4001 = vmatprep.subr.bf16.mxu1 %v6834_v16  ;;  %v739_v42 = vunpack.c.0.s8 %v738_v37  ;;  %v6872_v46 = vld [vmem:[#allocation6 + $0x824] ss:$40 sps:$4 sm:$0xff]   ;;  %v6875_v48 = vld [vmem:[#allocation6 + $0x820] ss:$40 sps:$4 sm:$0xff]   ;;  %v6876_v50 = vld [vmem:[#allocation6 + $0x374] ss:$40 sps:$4 sm:$0xff]  }
  0x6b   :  { %4042 = vmatprep.subr.bf16.mxu0 %v6836_v17  ;;  %v6878_v51 = vld [vmem:[#allocation6 + $0x874] ss:$40 sps:$4 sm:$0xff]   ;;  %v6880_v53 = vld [vmem:[#allocation6 + $0x370] ss:$40 sps:$4 sm:$0xff]   ;;  %v6882_v57 = vld [vmem:[#allocation6 + $0x3c4] ss:$40 sps:$4 sm:$0xff]  }
  0x6c   :  { %v8097_v49 = vsub.s32 %v739_v42, %v8094_v43  ;;  %v94_v52 = vld [vmem:[#allocation3] sm:$0xff]  ;;  %v6884_v58 = vld [vmem:[#allocation6 + $0x8c4] ss:$40 sps:$4 sm:$0xff]   ;;  %v6886_v61 = vld [vmem:[#allocation6 + $0x3c0] ss:$40 sps:$4 sm:$0xff]   ;;  %s5897_s28 = sshll.u32 %s8003_s4, 4  ;;  %s5898_s28 = int_to_ptr.vmem [resolvable:$true] %s5897_s28 }
  0x6d   :  { %4002 = vmatpush1.bf16.msra.mxu1 %v6838_v18  ;;  %v736_v55 = vcombine.high %v94_v52, %v94_v52  ;;  %v6881_v56 = vld [vmem:[#allocation6 + $0x870] ss:$40 sps:$4 sm:$0xff]   ;;  %v6887_v0 = vld [vmem:[#allocation6 + $0x8c0] ss:$40 sps:$4 sm:$0xff]   ;;  %v6888_v1 = vld [vmem:[#allocation6 + $0x414] ss:$40 sps:$4 sm:$0xff]   ;;  %p7966_p13 = scmp.lt.s32.totalorder %s5898_s28, %s5898_s28 }
  0x6e   :  { %4043 = vmatpush1.bf16.msra.mxu0 %v6839_v19  ;;  %4003 = vmatprep.subr.bf16.mxu1 %v6840_v20  ;;  %v743_v54 = vrot.slane %v94_v52, %v8097_v49  ;;  %v6890_v2 = vld [vmem:[#allocation6 + $0x914] ss:$40 sps:$4 sm:$0xff]   ;;  %v6892_v4 = vld [vmem:[#allocation6 + $0x410] ss:$40 sps:$4 sm:$0xff]   ;;  %v6894_v6 = vld [vmem:[#allocation6 + $0x464] ss:$40 sps:$4 sm:$0xff]  }
  0x6f   :  { %4044 = vmatprep.subr.bf16.mxu0 %v6842_v21  ;;  %v750_v60 = vrot.slane %v736_v55, %v8097_v49  ;;  %v6893_v5 = vld [vmem:[#allocation6 + $0x910] ss:$40 sps:$4 sm:$0xff]   ;;  %v6896_v7 = vld [vmem:[#allocation6 + $0x964] ss:$40 sps:$4 sm:$0xff]   ;;  %v6898_v8 = vld [vmem:[#allocation6 + $0x460] ss:$40 sps:$4 sm:$0xff]  }
  0x70   :  { %v751_v59 = vcombine.high %v743_v54, %v743_v54  ;;  %v6899_v9 = vld [vmem:[#allocation6 + $0x960] ss:$40 sps:$4 sm:$0xff]   ;;  %v6900_v10 = vld [vmem:[#allocation6 + $0x4b4] ss:$40 sps:$4 sm:$0xff]   ;;  %v6904_v12 = vld [vmem:[#allocation6 + $0x4b0] ss:$40 sps:$4 sm:$0xff]   ;;  %v8114_v13 = vrot.slane %v743_v54, %v8097_v49 }
  0x71   :  { %4004 = vmatpush1.bf16.msra.mxu1 %v6844_v22  ;;  %v8105_v63 = vrot.slane %v750_v60, %v8097_v49  ;;  %v6902_v11 = vld [vmem:[#allocation6 + $0x9b4] ss:$40 sps:$4 sm:$0xff]   ;;  %v6905_v14 = vld [vmem:[#allocation6 + $0x9b0] ss:$40 sps:$4 sm:$0xff]   ;;  %v6908_v15 = vld [vmem:[#allocation6 + $0xa04] ss:$40 sps:$4 sm:$0xff]   ;;  %v752_v17 = vcombine.high %v750_v60, %v750_v60 }
  0x72   :  { %4045 = vmatpush1.bf16.msra.mxu0 %v6845_v23  ;;  %4005 = vmatprep.subr.bf16.mxu1 %v6846_v24  ;;  %v8102_v62 = vrot.slane %v751_v59, %v8097_v49  ;;  %v6911_v16 = vld [vmem:[#allocation6 + $0xc] ss:$40 sps:$4 sm:$0xff]   ;;  %v6906_v18 = vld [vmem:[#allocation6 + $0xa00] ss:$40 sps:$4 sm:$0xff]   ;;  %v8118_v19 = vcombine.high %v8114_v13, %v8114_v13  ;;  %v6917_v22 = vld [vmem:[#allocation6 + $0x5c] ss:$40 sps:$4 sm:$0xff]  }
  0x73   :  { %4046 = vmatprep.subr.bf16.mxu0 %v6848_v25  ;;  %v6909_v20 = vld [vmem:[#allocation6 + $0x8] ss:$40 sps:$4 sm:$0xff]   ;;  %v6914_v21 = vld [vmem:[#allocation6 + $0xa54] ss:$40 sps:$4 sm:$0xff]   ;;  %v8121_v23 = vrot.slane %v752_v17, %v8097_v49  ;;  %v6915_v25 = vld [vmem:[#allocation6 + $0x58] ss:$40 sps:$4 sm:$0xff]  }
  0x74   :  { %v8109_v3 = vcombine.high %v8102_v62, %v8102_v62  ;;  %4025 = vmatprep.mubr.bf16.mxu1 %v8102_v62  ;;  %v6912_v24 = vld [vmem:[#allocation6 + $0xa50] ss:$40 sps:$4 sm:$0xff]   ;;  %v6930_v36 = vld [vmem:[#allocation6 + $0xb40] ss:$40 sps:$4 sm:$0xff]   ;;  %v6938_v38 = vld [vmem:[#allocation6 + $0xb94] ss:$40 sps:$4 sm:$0xff]  }
  0x75   :  { %4006 = vmatpush1.bf16.msra.mxu1 %v6850_v26  ;;  %v6920_v26 = vld [vmem:[#allocation6 + $0xaa4] ss:$40 sps:$4 sm:$0xff]   ;;  %v6933_v37 = vld [vmem:[#allocation6 + $0x148] ss:$40 sps:$4 sm:$0xff]   ;;  %v6962_v55 = vld [vmem:[#allocation6 + $0xcd4] ss:$40 sps:$4 sm:$0xff]  }
  0x76   :  { %4047 = vmatpush1.bf16.msra.mxu0 %v6851_v27  ;;  %4007 = vmatprep.subr.bf16.mxu1 %v6852_v28  ;;  %v6923_v27 = vld [vmem:[#allocation6 + $0xac] ss:$40 sps:$4 sm:$0xff]   ;;  %v6918_v28 = vld [vmem:[#allocation6 + $0xaa0] ss:$40 sps:$4 sm:$0xff]   ;;  %v6948_v49 = vld [vmem:[#allocation6 + $0xc30] ss:$40 sps:$4 sm:$0xff]  }
  0x77   :  { %4048 = vmatprep.subr.bf16.mxu0 %v6854_v29  ;;  %4066 = vmatprep.mubr.bf16.mxu0 %v8109_v3  ;;  %v6921_v29 = vld [vmem:[#allocation6 + $0xa8] ss:$40 sps:$4 sm:$0xff]   ;;  %v6944_v42 = vld [vmem:[#allocation6 + $0xbe4] ss:$40 sps:$4 sm:$0xff]   ;;  %s7961_s29 = scalar_lea.vmem %s5898_s28, 32 }
  0x78   :  { %v6959_v52 = vld [vmem:[#allocation6 + $0x28c] ss:$40 sps:$4 sm:$0xff]   ;;  %v6957_v54 = vld [vmem:[#allocation6 + $0x288] ss:$40 sps:$4 sm:$0xff]   ;;  %p7962_p12 = scmp.ne.s32.totalorder %s5898_s28, %s7961_s29  ;;  %p7967_p0 = scmp.lt.s32.totalorder %s7961_s29, %s7961_s29 }
  0x79   :  { %4008 = vmatpush1.bf16.msra.mxu1 %v6856_v30  ;;  %v6926_v30 = vld [vmem:[#allocation6 + $0xaf4] ss:$40 sps:$4 sm:$0xff]   ;;  %v6968_v59 = vld [vmem:[#allocation6 + $0xd24] ss:$40 sps:$4 sm:$0xff]   ;;  %v6990_v17 = vld [vmem:[#allocation6 + $0xe60] ss:$40 sps:$4 sm:$0xff]  }
  0x7a   :  { %4049 = vmatpush1.bf16.msra.mxu0 %v6857_v31  ;;  %4009 = vmatprep.subr.bf16.mxu1 %v6858_v32  ;;  %v6929_v31 = vld [vmem:[#allocation6 + $0xfc] ss:$40 sps:$4 sm:$0xff]   ;;  %v6924_v32 = vld [vmem:[#allocation6 + $0xaf0] ss:$40 sps:$4 sm:$0xff]   ;;  %v6971_v60 = vld [vmem:[#allocation6 + $0x32c] ss:$40 sps:$4 sm:$0xff]   ;;  %p7968_p1 = por %p7967_p0, %p7966_p13 }
  0x7b   :  { %4050 = vmatprep.subr.bf16.mxu0 %v6860_v33  ;;  %v6927_v33 = vld [vmem:[#allocation6 + $0xf8] ss:$40 sps:$4 sm:$0xff]  }
  0x7c   :  { %p7969_p2 = pnand %p7968_p1, %p7962_p12 }
  0x7d   :  { %4010 = vmatpush1.bf16.msra.mxu1 %v6862_v34  ;;  %v6932_v34 = vld [vmem:[#allocation6 + $0xb44] ss:$40 sps:$4 sm:$0xff]  }
  0x7e   :  { %4051 = vmatpush1.bf16.msra.mxu0 %v6863_v35  ;;  %4011 = vmatprep.subr.bf16.mxu1 %v6864_v39  ;;  %v6935_v35 = vld [vmem:[#allocation6 + $0x14c] ss:$40 sps:$4 sm:$0xff]   ;;  %v6941_v39 = vld [vmem:[#allocation6 + $0x19c] ss:$40 sps:$4 sm:$0xff]  }
  0x7f   :  { %4052 = vmatprep.subr.bf16.mxu0 %v6866_v40  ;;  %v6936_v40 = vld [vmem:[#allocation6 + $0xb90] ss:$40 sps:$4 sm:$0xff]  }
  0x81   :  { %4012 = vmatpush1.bf16.msra.mxu1 %v6868_v41  ;;  %v6939_v41 = vld [vmem:[#allocation6 + $0x198] ss:$40 sps:$4 sm:$0xff]  }
  0x82   :  { %4053 = vmatpush1.bf16.msra.mxu0 %v6869_v44  ;;  %4013 = vmatprep.subr.bf16.mxu1 %v6870_v45  ;;  %v6947_v44 = vld [vmem:[#allocation6 + $0x1ec] ss:$40 sps:$4 sm:$0xff]   ;;  %v6942_v45 = vld [vmem:[#allocation6 + $0xbe0] ss:$40 sps:$4 sm:$0xff]  }
  0x83   :  { %4054 = vmatprep.subr.bf16.mxu0 %v6872_v46  ;;  %v6945_v46 = vld [vmem:[#allocation6 + $0x1e8] ss:$40 sps:$4 sm:$0xff]  }
  0x85   :  { %4014 = vmatpush1.bf16.msra.mxu1 %v6874_v47  ;;  %v6950_v47 = vld [vmem:[#allocation6 + $0xc34] ss:$40 sps:$4 sm:$0xff]  }
  0x86   :  { %4055 = vmatpush1.bf16.msra.mxu0 %v6875_v48  ;;  %4015 = vmatprep.subr.bf16.mxu1 %v6876_v50  ;;  %v6953_v48 = vld [vmem:[#allocation6 + $0x23c] ss:$40 sps:$4 sm:$0xff]   ;;  %v6951_v50 = vld [vmem:[#allocation6 + $0x238] ss:$40 sps:$4 sm:$0xff]  }
  0x87   :  { %4056 = vmatprep.subr.bf16.mxu0 %v6878_v51  ;;  %v6956_v51 = vld [vmem:[#allocation6 + $0xc84] ss:$40 sps:$4 sm:$0xff]  }
  0x89   :  { %4016 = vmatpush1.bf16.msra.mxu1 %v6880_v53  ;;  %v6954_v53 = vld [vmem:[#allocation6 + $0xc80] ss:$40 sps:$4 sm:$0xff]  }
  0x8a   :  { %4057 = vmatpush1.bf16.msra.mxu0 %v6881_v56  ;;  %4017 = vmatprep.subr.bf16.mxu1 %v6882_v57  ;;  %v6965_v56 = vld [vmem:[#allocation6 + $0x2dc] ss:$40 sps:$4 sm:$0xff]   ;;  %v6960_v57 = vld [vmem:[#allocation6 + $0xcd0] ss:$40 sps:$4 sm:$0xff]  }
  0x8b   :  { %4058 = vmatprep.subr.bf16.mxu0 %v6884_v58  ;;  %v6963_v58 = vld [vmem:[#allocation6 + $0x2d8] ss:$40 sps:$4 sm:$0xff]  }
  0x8d   :  { %4018 = vmatpush1.bf16.msra.mxu1 %v6886_v61  ;;  %v6966_v61 = vld [vmem:[#allocation6 + $0xd20] ss:$40 sps:$4 sm:$0xff]  }
  0x8e   :  { %4059 = vmatpush1.bf16.msra.mxu0 %v6887_v0  ;;  %4019 = vmatprep.subr.bf16.mxu1 %v6888_v1  ;;  %v6969_v0 = vld [vmem:[#allocation6 + $0x328] ss:$40 sps:$4 sm:$0xff]   ;;  %v6974_v1 = vld [vmem:[#allocation6 + $0xd74] ss:$40 sps:$4 sm:$0xff]  }
  0x8f   :  { %4060 = vmatprep.subr.bf16.mxu0 %v6890_v2  ;;  %v6977_v2 = vld [vmem:[#allocation6 + $0x37c] ss:$40 sps:$4 sm:$0xff]  }
  0x91   :  { %4020 = vmatpush1.bf16.msra.mxu1 %v6892_v4  ;;  %v6972_v4 = vld [vmem:[#allocation6 + $0xd70] ss:$40 sps:$4 sm:$0xff]  }
  0x92   :  { %4061 = vmatpush1.bf16.msra.mxu0 %v6893_v5  ;;  %4021 = vmatprep.subr.bf16.mxu1 %v6894_v6  ;;  %v6975_v5 = vld [vmem:[#allocation6 + $0x378] ss:$40 sps:$4 sm:$0xff]   ;;  %v6980_v6 = vld [vmem:[#allocation6 + $0xdc4] ss:$40 sps:$4 sm:$0xff]  }
  0x93   :  { %4062 = vmatprep.subr.bf16.mxu0 %v6896_v7  ;;  %v6983_v7 = vld [vmem:[#allocation6 + $0x3cc] ss:$40 sps:$4 sm:$0xff]  }
  0x95   :  { %4022 = vmatpush1.bf16.msra.mxu1 %v6898_v8  ;;  %v6978_v8 = vld [vmem:[#allocation6 + $0xdc0] ss:$40 sps:$4 sm:$0xff]  }
  0x96   :  { %4063 = vmatpush1.bf16.msra.mxu0 %v6899_v9  ;;  %4023 = vmatprep.subr.bf16.mxu1 %v6900_v10  ;;  %v6981_v9 = vld [vmem:[#allocation6 + $0x3c8] ss:$40 sps:$4 sm:$0xff]   ;;  %v6986_v10 = vld [vmem:[#allocation6 + $0xe14] ss:$40 sps:$4 sm:$0xff]  }
  0x97   :  { %4064 = vmatprep.subr.bf16.mxu0 %v6902_v11  ;;  %v6989_v11 = vld [vmem:[#allocation6 + $0x41c] ss:$40 sps:$4 sm:$0xff]  }
  0x99   :  { %4024 = vmatpush1.bf16.msra.mxu1 %v6904_v12  ;;  %v6984_v12 = vld [vmem:[#allocation6 + $0xe10] ss:$40 sps:$4 sm:$0xff]  }
  0x9a   :  { %4065 = vmatpush1.bf16.msra.mxu0 %v6905_v14  ;;  %4157 = vmatprep.subr.bf16.mxu1 %v6911_v16  ;;  %v6987_v14 = vld [vmem:[#allocation6 + $0x418] ss:$40 sps:$4 sm:$0xff]   ;;  %v6995_v16 = vld [vmem:[#allocation6 + $0x46c] ss:$40 sps:$4 sm:$0xff]  }
  0x9b   :  { %4075 = vmatprep.subr.bf16.mxu0 %v6908_v15  ;;  %v6992_v15 = vld [vmem:[#allocation6 + $0xe64] ss:$40 sps:$4 sm:$0xff]  }
  0x9c   :  { %4026 = vmatmul.mubr.bf16.vlgmr.msra.gmra.mrb[0].mxu1 %v8114_v13 }
  0x9d   :  { %4067 = vmatmul.mubr.bf16.vlgmr.msra.gmra.mrb[0].mxu0 %v8118_v19  ;;  %4158 = vmatpush1.bf16.msra.mxu1 %v6909_v20  ;;  %v6998_v20 = vld [vmem:[#allocation6 + $0xeb4] ss:$40 sps:$4 sm:$0xff]  }
  0x9e   :  { %4076 = vmatpush1.bf16.msra.mxu0 %v6906_v18  ;;  %4159 = vmatprep.subr.bf16.mxu1 %v6917_v22  ;;  %v6993_v18 = vld [vmem:[#allocation6 + $0x468] ss:$40 sps:$4 sm:$0xff]  }
  0x9f   :  { %4077 = vmatprep.subr.bf16.mxu0 %v6914_v21  ;;  %4107 = vmatprep.mubr.bf16.mxu0 %v8121_v23  ;;  %v7001_v21 = vld [vmem:[#allocation6 + $0x4bc] ss:$40 sps:$4 sm:$0xff]   ;;  %v6996_v22 = vld [vmem:[#allocation6 + $0xeb0] ss:$40 sps:$4 sm:$0xff]  }
  0xa0   :  { %4189 = vmatprep.mubr.bf16.mxu1 %v8102_v62 }
  0xa1   :  { %4160 = vmatpush1.bf16.msra.mxu1 %v6915_v25  ;;  %v7005_v25 = vld [vmem:[#allocation6 + $0xf04] ss:$40 sps:$4 sm:$0xff]  }
  0xa2   :  { %4078 = vmatpush1.bf16.msra.mxu0 %v6912_v24  ;;  %4161 = vmatprep.subr.bf16.mxu1 %v6923_v27  ;;  %v6999_v24 = vld [vmem:[#allocation6 + $0x4b8] ss:$40 sps:$4 sm:$0xff]  }
  0xa3   :  { %4079 = vmatprep.subr.bf16.mxu0 %v6920_v26  ;;  %v7008_v26 = vld [vmem:[#allocation6 + $0x50c] ss:$40 sps:$4 sm:$0xff]   ;;  %v7003_v27 = vld [vmem:[#allocation6 + $0xf00] ss:$40 sps:$4 sm:$0xff]  }
  0xa5   :  { %4162 = vmatpush1.bf16.msra.mxu1 %v6921_v29  ;;  %v7011_v29 = vld [vmem:[#allocation6 + $0xf54] ss:$40 sps:$4 sm:$0xff]  }
  0xa6   :  { %4080 = vmatpush1.bf16.msra.mxu0 %v6918_v28  ;;  %4163 = vmatprep.subr.bf16.mxu1 %v6929_v31  ;;  %v7006_v28 = vld [vmem:[#allocation6 + $0x508] ss:$40 sps:$4 sm:$0xff]   ;;  %v8129_v31 = vcombine.high %v8121_v23, %v8121_v23 }
  0xa7   :  { %4081 = vmatprep.subr.bf16.mxu0 %v6926_v30  ;;  %v7014_v30 = vld [vmem:[#allocation6 + $0x55c] ss:$40 sps:$4 sm:$0xff]  }
  0xa9   :  { %4164 = vmatpush1.bf16.msra.mxu1 %v6927_v33  ;;  %v7012_v33 = vld [vmem:[#allocation6 + $0x558] ss:$40 sps:$4 sm:$0xff]  }
  0xaa   :  { %4082 = vmatpush1.bf16.msra.mxu0 %v6924_v32  ;;  %4165 = vmatprep.subr.bf16.mxu1 %v6935_v35  ;;  %v7009_v32 = vld [vmem:[#allocation6 + $0xf50] ss:$40 sps:$4 sm:$0xff]   ;;  %v7020_v35 = vld [vmem:[#allocation6 + $0x5ac] ss:$40 sps:$4 sm:$0xff]  }
  0xab   :  { %4083 = vmatprep.subr.bf16.mxu0 %v6932_v34  ;;  %v7017_v34 = vld [vmem:[#allocation6 + $0xfa4] ss:$40 sps:$4 sm:$0xff]  }
  0xad   :  { %4166 = vmatpush1.bf16.msra.mxu1 %v6933_v37  ;;  %v7018_v37 = vld [vmem:[#allocation6 + $0x5a8] ss:$40 sps:$4 sm:$0xff]  }
  0xae   :  { %4084 = vmatpush1.bf16.msra.mxu0 %v6930_v36  ;;  %4167 = vmatprep.subr.bf16.mxu1 %v6941_v39  ;;  %v7015_v36 = vld [vmem:[#allocation6 + $0xfa0] ss:$40 sps:$4 sm:$0xff]   ;;  %v7026_v39 = vld [vmem:[#allocation6 + $0x5fc] ss:$40 sps:$4 sm:$0xff]  }
  0xaf   :  { %4085 = vmatprep.subr.bf16.mxu0 %v6938_v38  ;;  %v7023_v38 = vld [vmem:[#allocation6 + $0xff4] ss:$40 sps:$4 sm:$0xff]  }
  0xb1   :  { %4168 = vmatpush1.bf16.msra.mxu1 %v6939_v41  ;;  %v7024_v41 = vld [vmem:[#allocation6 + $0x5f8] ss:$40 sps:$4 sm:$0xff]  }
  0xb2   :  { %4086 = vmatpush1.bf16.msra.mxu0 %v6936_v40  ;;  %4169 = vmatprep.subr.bf16.mxu1 %v6947_v44  ;;  %v7021_v40 = vld [vmem:[#allocation6 + $0xff0] ss:$40 sps:$4 sm:$0xff]   ;;  %v7032_v44 = vld [vmem:[#allocation6 + $0x64c] ss:$40 sps:$4 sm:$0xff]  }
  0xb3   :  { %4087 = vmatprep.subr.bf16.mxu0 %v6944_v42  ;;  %v7029_v42 = vld [vmem:[#allocation6 + $0x1044] ss:$40 sps:$4 sm:$0xff]  }
  0xb5   :  { %4170 = vmatpush1.bf16.msra.mxu1 %v6945_v46  ;;  %v7030_v46 = vld [vmem:[#allocation6 + $0x648] ss:$40 sps:$4 sm:$0xff]  }
  0xb6   :  { %4088 = vmatpush1.bf16.msra.mxu0 %v6942_v45  ;;  %4171 = vmatprep.subr.bf16.mxu1 %v6953_v48  ;;  %v7027_v45 = vld [vmem:[#allocation6 + $0x1040] ss:$40 sps:$4 sm:$0xff]   ;;  %v7038_v48 = vld [vmem:[#allocation6 + $0x69c] ss:$40 sps:$4 sm:$0xff]  }
  0xb7   :  { %4089 = vmatprep.subr.bf16.mxu0 %v6950_v47  ;;  %v7035_v47 = vld [vmem:[#allocation6 + $0x1094] ss:$40 sps:$4 sm:$0xff]  }
  0xb9   :  { %4172 = vmatpush1.bf16.msra.mxu1 %v6951_v50  ;;  %v7036_v50 = vld [vmem:[#allocation6 + $0x698] ss:$40 sps:$4 sm:$0xff]  }
  0xba   :  { %4090 = vmatpush1.bf16.msra.mxu0 %v6948_v49  ;;  %4173 = vmatprep.subr.bf16.mxu1 %v6959_v52  ;;  %v7033_v49 = vld [vmem:[#allocation6 + $0x1090] ss:$40 sps:$4 sm:$0xff]   ;;  %v7044_v52 = vld [vmem:[#allocation6 + $0x6ec] ss:$40 sps:$4 sm:$0xff]  }
  0xbb   :  { %4091 = vmatprep.subr.bf16.mxu0 %v6956_v51  ;;  %v7041_v51 = vld [vmem:[#allocation6 + $0x10e4] ss:$40 sps:$4 sm:$0xff]  }
  0xbd   :  { %4174 = vmatpush1.bf16.msra.mxu1 %v6957_v54  ;;  %v7042_v54 = vld [vmem:[#allocation6 + $0x6e8] ss:$40 sps:$4 sm:$0xff]  }
  0xbe   :  { %4092 = vmatpush1.bf16.msra.mxu0 %v6954_v53  ;;  %4175 = vmatprep.subr.bf16.mxu1 %v6965_v56  ;;  %v7039_v53 = vld [vmem:[#allocation6 + $0x10e0] ss:$40 sps:$4 sm:$0xff]   ;;  %v7050_v56 = vld [vmem:[#allocation6 + $0x73c] ss:$40 sps:$4 sm:$0xff]  }
  0xbf   :  { %4093 = vmatprep.subr.bf16.mxu0 %v6962_v55  ;;  %v7047_v55 = vld [vmem:[#allocation6 + $0x1134] ss:$40 sps:$4 sm:$0xff]  }
  0xc1   :  { %4176 = vmatpush1.bf16.msra.mxu1 %v6963_v58  ;;  %v7048_v58 = vld [vmem:[#allocation6 + $0x738] ss:$40 sps:$4 sm:$0xff]  }
  0xc2   :  { %4094 = vmatpush1.bf16.msra.mxu0 %v6960_v57  ;;  %4177 = vmatprep.subr.bf16.mxu1 %v6971_v60  ;;  %v7045_v57 = vld [vmem:[#allocation6 + $0x1130] ss:$40 sps:$4 sm:$0xff]   ;;  %v7056_v60 = vld [vmem:[#allocation6 + $0x78c] ss:$40 sps:$4 sm:$0xff]  }
  0xc3   :  { %4095 = vmatprep.subr.bf16.mxu0 %v6968_v59  ;;  %v7053_v59 = vld [vmem:[#allocation6 + $0x1184] ss:$40 sps:$4 sm:$0xff]  }
  0xc5   :  { %4178 = vmatpush1.bf16.msra.mxu1 %v6969_v0  ;;  %v7054_v0 = vld [vmem:[#allocation6 + $0x788] ss:$40 sps:$4 sm:$0xff]  }
  0xc6   :  { %4096 = vmatpush1.bf16.msra.mxu0 %v6966_v61  ;;  %4179 = vmatprep.subr.bf16.mxu1 %v6977_v2  ;;  %v7051_v61 = vld [vmem:[#allocation6 + $0x1180] ss:$40 sps:$4 sm:$0xff]   ;;  %v7062_v2 = vld [vmem:[#allocation6 + $0x7dc] ss:$40 sps:$4 sm:$0xff]  }
  0xc7   :  { %4097 = vmatprep.subr.bf16.mxu0 %v6974_v1  ;;  %v7059_v1 = vld [vmem:[#allocation6 + $0x11d4] ss:$40 sps:$4 sm:$0xff]  }
  0xc9   :  { %4180 = vmatpush1.bf16.msra.mxu1 %v6975_v5  ;;  %v7060_v5 = vld [vmem:[#allocation6 + $0x7d8] ss:$40 sps:$4 sm:$0xff]  }
  0xca   :  { %4098 = vmatpush1.bf16.msra.mxu0 %v6972_v4  ;;  %4181 = vmatprep.subr.bf16.mxu1 %v6983_v7  ;;  %v7057_v4 = vld [vmem:[#allocation6 + $0x11d0] ss:$40 sps:$4 sm:$0xff]   ;;  %v7068_v7 = vld [vmem:[#allocation6 + $0x82c] ss:$40 sps:$4 sm:$0xff]  }
  0xcb   :  { %4099 = vmatprep.subr.bf16.mxu0 %v6980_v6  ;;  %v7065_v6 = vld [vmem:[#allocation6 + $0x1224] ss:$40 sps:$4 sm:$0xff]  }
  0xcd   :  { %4182 = vmatpush1.bf16.msra.mxu1 %v6981_v9  ;;  %v7066_v9 = vld [vmem:[#allocation6 + $0x828] ss:$40 sps:$4 sm:$0xff]  }
  0xce   :  { %4100 = vmatpush1.bf16.msra.mxu0 %v6978_v8  ;;  %4183 = vmatprep.subr.bf16.mxu1 %v6989_v11  ;;  %v7063_v8 = vld [vmem:[#allocation6 + $0x1220] ss:$40 sps:$4 sm:$0xff]   ;;  %v7074_v11 = vld [vmem:[#allocation6 + $0x87c] ss:$40 sps:$4 sm:$0xff]  }
  0xcf   :  { %4101 = vmatprep.subr.bf16.mxu0 %v6986_v10  ;;  %v7071_v10 = vld [vmem:[#allocation6 + $0x1274] ss:$40 sps:$4 sm:$0xff]  }
  0xd1   :  { %4184 = vmatpush1.bf16.msra.mxu1 %v6987_v14  ;;  %v7072_v14 = vld [vmem:[#allocation6 + $0x878] ss:$40 sps:$4 sm:$0xff]  }
  0xd2   :  { %4102 = vmatpush1.bf16.msra.mxu0 %v6984_v12  ;;  %4185 = vmatprep.subr.bf16.mxu1 %v6995_v16  ;;  %v7069_v12 = vld [vmem:[#allocation6 + $0x1270] ss:$40 sps:$4 sm:$0xff]   ;;  %v7080_v16 = vld [vmem:[#allocation6 + $0x8cc] ss:$40 sps:$4 sm:$0xff]  }
  0xd3   :  { %4103 = vmatprep.subr.bf16.mxu0 %v6992_v15  ;;  %v7077_v15 = vld [vmem:[#allocation6 + $0x12c4] ss:$40 sps:$4 sm:$0xff]  }
  0xd5   :  { %4186 = vmatpush1.bf16.msra.mxu1 %v6993_v18  ;;  %v7078_v18 = vld [vmem:[#allocation6 + $0x8c8] ss:$40 sps:$4 sm:$0xff]  }
  0xd6   :  { %4104 = vmatpush1.bf16.msra.mxu0 %v6990_v17  ;;  %4187 = vmatprep.subr.bf16.mxu1 %v7001_v21  ;;  %v7075_v17 = vld [vmem:[#allocation6 + $0x12c0] ss:$40 sps:$4 sm:$0xff]   ;;  %v7086_v21 = vld [vmem:[#allocation6 + $0x91c] ss:$40 sps:$4 sm:$0xff]  }
  0xd7   :  { %4105 = vmatprep.subr.bf16.mxu0 %v6998_v20  ;;  %v7083_v20 = vld [vmem:[#allocation6 + $0x1314] ss:$40 sps:$4 sm:$0xff]  }
  0xd9   :  { %4188 = vmatpush1.bf16.msra.mxu1 %v6999_v24  ;;  %v7084_v24 = vld [vmem:[#allocation6 + $0x918] ss:$40 sps:$4 sm:$0xff]  }
  0xda   :  { %4106 = vmatpush1.bf16.msra.mxu0 %v6996_v22  ;;  %4198 = vmatprep.subr.bf16.mxu1 %v7008_v26  ;;  %v7081_v22 = vld [vmem:[#allocation6 + $0x1310] ss:$40 sps:$4 sm:$0xff]   ;;  %v7092_v26 = vld [vmem:[#allocation6 + $0x96c] ss:$40 sps:$4 sm:$0xff]  }
  0xdb   :  { %4116 = vmatprep.subr.bf16.mxu0 %v7005_v25  ;;  %v7089_v25 = vld [vmem:[#allocation6 + $0x1364] ss:$40 sps:$4 sm:$0xff]  }
  0xdc   :  { %4190 = vmatmul.mubr.bf16.vlgmr.msra.gmra.mrb[4].mxu1 %v8114_v13 }
  0xdd   :  { %4108 = vmatmul.mubr.bf16.vlgmr.msra.gmra.mrb[0].mxu0 %v8105_v63  ;;  %4199 = vmatpush1.bf16.msra.mxu1 %v7006_v28  ;;  %v7090_v28 = vld [vmem:[#allocation6 + $0x968] ss:$40 sps:$4 sm:$0xff]  }
  0xde   :  { %4117 = vmatpush1.bf16.msra.mxu0 %v7003_v27  ;;  %4200 = vmatprep.subr.bf16.mxu1 %v7014_v30  ;;  %v7087_v27 = vld [vmem:[#allocation6 + $0x1360] ss:$40 sps:$4 sm:$0xff]   ;;  %v7098_v30 = vld [vmem:[#allocation6 + $0x9bc] ss:$40 sps:$4 sm:$0xff]  }
  0xdf   :  { %4118 = vmatprep.subr.bf16.mxu0 %v7011_v29  ;;  %4148 = vmatprep.mubr.bf16.mxu0 %v8129_v31  ;;  %v7095_v29 = vld [vmem:[#allocation6 + $0x13b4] ss:$40 sps:$4 sm:$0xff]  }
  0xe0   :  { %4230 = vmatprep.mubr.bf16.mxu1 %v8109_v3 }
  0xe1   :  { %4201 = vmatpush1.bf16.msra.mxu1 %v7012_v33  ;;  %v7096_v33 = vld [vmem:[#allocation6 + $0x9b8] ss:$40 sps:$4 sm:$0xff]  }
  0xe2   :  { %4119 = vmatpush1.bf16.msra.mxu0 %v7009_v32  ;;  %4202 = vmatprep.subr.bf16.mxu1 %v7020_v35  ;;  %v7093_v32 = vld [vmem:[#allocation6 + $0x13b0] ss:$40 sps:$4 sm:$0xff]   ;;  %v7104_v35 = vld [vmem:[#allocation6 + $0x14] ss:$40 sps:$4 sm:$0xff]  }
  0xe3   :  { %4120 = vmatprep.subr.bf16.mxu0 %v7017_v34  ;;  %v7101_v34 = vld [vmem:[#allocation6 + $0xa0c] ss:$40 sps:$4 sm:$0xff]  }
  0xe5   :  { %4203 = vmatpush1.bf16.msra.mxu1 %v7018_v37  ;;  %v7099_v37 = vld [vmem:[#allocation6 + $0xa08] ss:$40 sps:$4 sm:$0xff]  }
  0xe6   :  { %4121 = vmatpush1.bf16.msra.mxu0 %v7015_v36  ;;  %4204 = vmatprep.subr.bf16.mxu1 %v7026_v39  ;;  %v8137_v36 = vcombine.high %v8105_v63, %v8105_v63  ;;  %v7107_v39 = vld [vmem:[#allocation6 + $0xa5c] ss:$40 sps:$4 sm:$0xff]  }
  0xe7   :  { %4122 = vmatprep.subr.bf16.mxu0 %v7023_v38  ;;  %v7102_v38 = vld [vmem:[#allocation6 + $0x10] ss:$40 sps:$4 sm:$0xff]  }
  0xe9   :  { %4205 = vmatpush1.bf16.msra.mxu1 %v7024_v41  ;;  %v7105_v41 = vld [vmem:[#allocation6 + $0xa58] ss:$40 sps:$4 sm:$0xff]  }
  0xea   :  { %4123 = vmatpush1.bf16.msra.mxu0 %v7021_v40  ;;  %4206 = vmatprep.subr.bf16.mxu1 %v7032_v44  ;;  %v7110_v40 = vld [vmem:[#allocation6 + $0x64] ss:$40 sps:$4 sm:$0xff]  }
  0xeb   :  { %4124 = vmatprep.subr.bf16.mxu0 %v7029_v42  ;;  %v7108_v42 = vld [vmem:[#allocation6 + $0x60] ss:$40 sps:$4 sm:$0xff]   ;;  %v7113_v44 = vld [vmem:[#allocation6 + $0xaac] ss:$40 sps:$4 sm:$0xff]  }
  0xed   :  { %4207 = vmatpush1.bf16.msra.mxu1 %v7030_v46  ;;  %v7111_v46 = vld [vmem:[#allocation6 + $0xaa8] ss:$40 sps:$4 sm:$0xff]  }
  0xee   :  { %4125 = vmatpush1.bf16.msra.mxu0 %v7027_v45  ;;  %4208 = vmatprep.subr.bf16.mxu1 %v7038_v48  ;;  %v7116_v45 = vld [vmem:[#allocation6 + $0xb4] ss:$40 sps:$4 sm:$0xff]  }
  0xef   :  { %4126 = vmatprep.subr.bf16.mxu0 %v7035_v47  ;;  %v7114_v47 = vld [vmem:[#allocation6 + $0xb0] ss:$40 sps:$4 sm:$0xff]   ;;  %v7119_v48 = vld [vmem:[#allocation6 + $0xafc] ss:$40 sps:$4 sm:$0xff]  }
  0xf1   :  { %4209 = vmatpush1.bf16.msra.mxu1 %v7036_v50  ;;  %v7117_v50 = vld [vmem:[#allocation6 + $0xaf8] ss:$40 sps:$4 sm:$0xff]  }
  0xf2   :  { %4127 = vmatpush1.bf16.msra.mxu0 %v7033_v49  ;;  %4210 = vmatprep.subr.bf16.mxu1 %v7044_v52  ;;  %v7122_v49 = vld [vmem:[#allocation6 + $0x104] ss:$40 sps:$4 sm:$0xff]  }
  0xf3   :  { %4128 = vmatprep.subr.bf16.mxu0 %v7041_v51  ;;  %v7120_v51 = vld [vmem:[#allocation6 + $0x100] ss:$40 sps:$4 sm:$0xff]   ;;  %v7125_v52 = vld [vmem:[#allocation6 + $0xb4c] ss:$40 sps:$4 sm:$0xff]  }
  0xf5   :  { %4211 = vmatpush1.bf16.msra.mxu1 %v7042_v54  ;;  %v7123_v54 = vld [vmem:[#allocation6 + $0xb48] ss:$40 sps:$4 sm:$0xff]  }
  0xf6   :  { %4129 = vmatpush1.bf16.msra.mxu0 %v7039_v53  ;;  %4212 = vmatprep.subr.bf16.mxu1 %v7050_v56  ;;  %v7128_v53 = vld [vmem:[#allocation6 + $0x154] ss:$40 sps:$4 sm:$0xff]  }
  0xf7   :  { %4130 = vmatprep.subr.bf16.mxu0 %v7047_v55  ;;  %v7126_v55 = vld [vmem:[#allocation6 + $0x150] ss:$40 sps:$4 sm:$0xff]   ;;  %v7131_v56 = vld [vmem:[#allocation6 + $0xb9c] ss:$40 sps:$4 sm:$0xff]  }
  0xf9   :  { %4213 = vmatpush1.bf16.msra.mxu1 %v7048_v58  ;;  %v7129_v58 = vld [vmem:[#allocation6 + $0xb98] ss:$40 sps:$4 sm:$0xff]  }
  0xfa   :  { %4131 = vmatpush1.bf16.msra.mxu0 %v7045_v57  ;;  %4214 = vmatprep.subr.bf16.mxu1 %v7056_v60  ;;  %v7134_v57 = vld [vmem:[#allocation6 + $0x1a4] ss:$40 sps:$4 sm:$0xff]  }
  0xfb   :  { %4132 = vmatprep.subr.bf16.mxu0 %v7053_v59  ;;  %v7132_v59 = vld [vmem:[#allocation6 + $0x1a0] ss:$40 sps:$4 sm:$0xff]   ;;  %v7137_v60 = vld [vmem:[#allocation6 + $0xbec] ss:$40 sps:$4 sm:$0xff]  }
  0xfd   :  { %4215 = vmatpush1.bf16.msra.mxu1 %v7054_v0  ;;  %v7135_v0 = vld [vmem:[#allocation6 + $0xbe8] ss:$40 sps:$4 sm:$0xff]  }
  0xfe   :  { %4133 = vmatpush1.bf16.msra.mxu0 %v7051_v61  ;;  %4216 = vmatprep.subr.bf16.mxu1 %v7062_v2  ;;  %v7140_v61 = vld [vmem:[#allocation6 + $0x1f4] ss:$40 sps:$4 sm:$0xff]  }
  0xff   :  { %4134 = vmatprep.subr.bf16.mxu0 %v7059_v1  ;;  %v7138_v1 = vld [vmem:[#allocation6 + $0x1f0] ss:$40 sps:$4 sm:$0xff]   ;;  %v7143_v2 = vld [vmem:[#allocation6 + $0xc3c] ss:$40 sps:$4 sm:$0xff]  }
 0x101   :  { %4217 = vmatpush1.bf16.msra.mxu1 %v7060_v5  ;;  %v7141_v5 = vld [vmem:[#allocation6 + $0xc38] ss:$40 sps:$4 sm:$0xff]  }
 0x102   :  { %4135 = vmatpush1.bf16.msra.mxu0 %v7057_v4  ;;  %4218 = vmatprep.subr.bf16.mxu1 %v7068_v7  ;;  %v7146_v4 = vld [vmem:[#allocation6 + $0x244] ss:$40 sps:$4 sm:$0xff]  }
 0x103   :  { %4136 = vmatprep.subr.bf16.mxu0 %v7065_v6  ;;  %v7144_v6 = vld [vmem:[#allocation6 + $0x240] ss:$40 sps:$4 sm:$0xff]   ;;  %v7149_v7 = vld [vmem:[#allocation6 + $0xc8c] ss:$40 sps:$4 sm:$0xff]  }
 0x105   :  { %4219 = vmatpush1.bf16.msra.mxu1 %v7066_v9  ;;  %v7147_v9 = vld [vmem:[#allocation6 + $0xc88] ss:$40 sps:$4 sm:$0xff]  }
 0x106   :  { %4137 = vmatpush1.bf16.msra.mxu0 %v7063_v8  ;;  %4220 = vmatprep.subr.bf16.mxu1 %v7074_v11  ;;  %v7152_v8 = vld [vmem:[#allocation6 + $0x294] ss:$40 sps:$4 sm:$0xff]  }
 0x107   :  { %4138 = vmatprep.subr.bf16.mxu0 %v7071_v10  ;;  %v7150_v10 = vld [vmem:[#allocation6 + $0x290] ss:$40 sps:$4 sm:$0xff]   ;;  %v7155_v11 = vld [vmem:[#allocation6 + $0xcdc] ss:$40 sps:$4 sm:$0xff]  }
 0x109   :  { %4221 = vmatpush1.bf16.msra.mxu1 %v7072_v14  ;;  %v7153_v14 = vld [vmem:[#allocation6 + $0xcd8] ss:$40 sps:$4 sm:$0xff]  }
 0x10a   :  { %4139 = vmatpush1.bf16.msra.mxu0 %v7069_v12  ;;  %4222 = vmatprep.subr.bf16.mxu1 %v7080_v16  ;;  %v7158_v12 = vld [vmem:[#allocation6 + $0x2e4] ss:$40 sps:$4 sm:$0xff]  }
 0x10b   :  { %4140 = vmatprep.subr.bf16.mxu0 %v7077_v15  ;;  %v7156_v15 = vld [vmem:[#allocation6 + $0x2e0] ss:$40 sps:$4 sm:$0xff]   ;;  %v7161_v16 = vld [vmem:[#allocation6 + $0xd2c] ss:$40 sps:$4 sm:$0xff]  }
 0x10d   :  { %4223 = vmatpush1.bf16.msra.mxu1 %v7078_v18  ;;  %v7159_v18 = vld [vmem:[#allocation6 + $0xd28] ss:$40 sps:$4 sm:$0xff]  }
 0x10e   :  { %4141 = vmatpush1.bf16.msra.mxu0 %v7075_v17  ;;  %4224 = vmatprep.subr.bf16.mxu1 %v7086_v21  ;;  %v7164_v17 = vld [vmem:[#allocation6 + $0x334] ss:$40 sps:$4 sm:$0xff]  }
 0x10f   :  { %4142 = vmatprep.subr.bf16.mxu0 %v7083_v20  ;;  %v7162_v20 = vld [vmem:[#allocation6 + $0x330] ss:$40 sps:$4 sm:$0xff]   ;;  %v7167_v21 = vld [vmem:[#allocation6 + $0xd7c] ss:$40 sps:$4 sm:$0xff]  }
 0x111   :  { %4225 = vmatpush1.bf16.msra.mxu1 %v7084_v24  ;;  %v7165_v24 = vld [vmem:[#allocation6 + $0xd78] ss:$40 sps:$4 sm:$0xff]  }
 0x112   :  { %4143 = vmatpush1.bf16.msra.mxu0 %v7081_v22  ;;  %4226 = vmatprep.subr.bf16.mxu1 %v7092_v26  ;;  %v7170_v22 = vld [vmem:[#allocation6 + $0x384] ss:$40 sps:$4 sm:$0xff]  }
 0x113   :  { %4144 = vmatprep.subr.bf16.mxu0 %v7089_v25  ;;  %v7168_v25 = vld [vmem:[#allocation6 + $0x380] ss:$40 sps:$4 sm:$0xff]   ;;  %v7173_v26 = vld [vmem:[#allocation6 + $0xdcc] ss:$40 sps:$4 sm:$0xff]  }
 0x115   :  { %4227 = vmatpush1.bf16.msra.mxu1 %v7090_v28  ;;  %v7171_v28 = vld [vmem:[#allocation6 + $0xdc8] ss:$40 sps:$4 sm:$0xff]  }
 0x116   :  { %4145 = vmatpush1.bf16.msra.mxu0 %v7087_v27  ;;  %4228 = vmatprep.subr.bf16.mxu1 %v7098_v30  ;;  %v7176_v27 = vld [vmem:[#allocation6 + $0x3d4] ss:$40 sps:$4 sm:$0xff]  }
 0x117   :  { %4146 = vmatprep.subr.bf16.mxu0 %v7095_v29  ;;  %v7174_v29 = vld [vmem:[#allocation6 + $0x3d0] ss:$40 sps:$4 sm:$0xff]   ;;  %v7179_v30 = vld [vmem:[#allocation6 + $0xe1c] ss:$40 sps:$4 sm:$0xff]  }
 0x119   :  { %4229 = vmatpush1.bf16.msra.mxu1 %v7096_v33  ;;  %v7177_v33 = vld [vmem:[#allocation6 + $0xe18] ss:$40 sps:$4 sm:$0xff]  }
 0x11a   :  { %4147 = vmatpush1.bf16.msra.mxu0 %v7093_v32  ;;  %4239 = vmatprep.subr.bf16.mxu1 %v7101_v34  ;;  %v7182_v32 = vld [vmem:[#allocation6 + $0x424] ss:$40 sps:$4 sm:$0xff]   ;;  %v7180_v34 = vld [vmem:[#allocation6 + $0x420] ss:$40 sps:$4 sm:$0xff]  }
 0x11b   :  { %4321 = vmatprep.subr.bf16.mxu0 %v7104_v35  ;;  %v7185_v35 = vld [vmem:[#allocation6 + $0xe6c] ss:$40 sps:$4 sm:$0xff]  }
 0x11c   :  { %4231 = vmatmul.mubr.bf16.vlgmr.msra.gmra.mrb[4].mxu1 %v8118_v19 }
 0x11d   :  { %4149 = vmatmul.mubr.bf16.vlgmr.msra.gmra.mrb[0].mxu0 %v8137_v36  ;;  %4240 = vmatpush1.bf16.msra.mxu1 %v7099_v37  ;;  %v7188_v37 = vld [vmem:[#allocation6 + $0x474] ss:$40 sps:$4 sm:$0xff]  }
 0x11e   :  { %4322 = vmatpush1.bf16.msra.mxu0 %v7102_v38  ;;  %4241 = vmatprep.subr.bf16.mxu1 %v7107_v39  ;;  %v7183_v38 = vld [vmem:[#allocation6 + $0xe68] ss:$40 sps:$4 sm:$0xff]  }
 0x11f   :  { %4323 = vmatprep.subr.bf16.mxu0 %v7110_v40  ;;  %4271 = vmatprep.mubr.bf16.mxu1 %v8121_v23  ;;  %v7186_v39 = vld [vmem:[#allocation6 + $0x470] ss:$40 sps:$4 sm:$0xff]   ;;  %v7191_v40 = vld [vmem:[#allocation6 + $0xebc] ss:$40 sps:$4 sm:$0xff]  }
 0x120   :  { %4353 = vmatprep.mubr.bf16.mxu0 %v8102_v62 }
 0x121   :  { %4242 = vmatpush1.bf16.msra.mxu1 %v7105_v41  ;;  %v7194_v41 = vld [vmem:[#allocation6 + $0x4c4] ss:$40 sps:$4 sm:$0xff]  }
 0x122   :  { %4324 = vmatpush1.bf16.msra.mxu0 %v7108_v42  ;;  %4243 = vmatprep.subr.bf16.mxu1 %v7113_v44  ;;  %v7189_v42 = vld [vmem:[#allocation6 + $0xeb8] ss:$40 sps:$4 sm:$0xff]  }
 0x123   :  { %4325 = vmatprep.subr.bf16.mxu0 %v7116_v45  ;;  %v7192_v44 = vld [vmem:[#allocation6 + $0x4c0] ss:$40 sps:$4 sm:$0xff]   ;;  %v7197_v45 = vld [vmem:[#allocation6 + $0xf0c] ss:$40 sps:$4 sm:$0xff]  }
 0x125   :  { %4244 = vmatpush1.bf16.msra.mxu1 %v7111_v46  ;;  %v7200_v46 = vld [vmem:[#allocation6 + $0x514] ss:$40 sps:$4 sm:$0xff]  }
 0x126   :  { %4326 = vmatpush1.bf16.msra.mxu0 %v7114_v47  ;;  %4245 = vmatprep.subr.bf16.mxu1 %v7119_v48  ;;  %v7195_v47 = vld [vmem:[#allocation6 + $0xf08] ss:$40 sps:$4 sm:$0xff]  }
 0x127   :  { %4327 = vmatprep.subr.bf16.mxu0 %v7122_v49  ;;  %v7198_v48 = vld [vmem:[#allocation6 + $0x510] ss:$40 sps:$4 sm:$0xff]   ;;  %v7203_v49 = vld [vmem:[#allocation6 + $0xf5c] ss:$40 sps:$4 sm:$0xff]  }
 0x129   :  { %4246 = vmatpush1.bf16.msra.mxu1 %v7117_v50  ;;  %v7206_v50 = vld [vmem:[#allocation6 + $0x564] ss:$40 sps:$4 sm:$0xff]  }
 0x12a   :  { %4328 = vmatpush1.bf16.msra.mxu0 %v7120_v51  ;;  %4247 = vmatprep.subr.bf16.mxu1 %v7125_v52  ;;  %v7201_v51 = vld [vmem:[#allocation6 + $0xf58] ss:$40 sps:$4 sm:$0xff]  }
 0x12b   :  { %4329 = vmatprep.subr.bf16.mxu0 %v7128_v53  ;;  %v7204_v52 = vld [vmem:[#allocation6 + $0x560] ss:$40 sps:$4 sm:$0xff]   ;;  %v7209_v53 = vld [vmem:[#allocation6 + $0xfac] ss:$40 sps:$4 sm:$0xff]  }
 0x12d   :  { %4248 = vmatpush1.bf16.msra.mxu1 %v7123_v54  ;;  %v7212_v54 = vld [vmem:[#allocation6 + $0x5b4] ss:$40 sps:$4 sm:$0xff]  }
 0x12e   :  { %4330 = vmatpush1.bf16.msra.mxu0 %v7126_v55  ;;  %4249 = vmatprep.subr.bf16.mxu1 %v7131_v56  ;;  %v7207_v55 = vld [vmem:[#allocation6 + $0xfa8] ss:$40 sps:$4 sm:$0xff]  }
 0x12f   :  { %4331 = vmatprep.subr.bf16.mxu0 %v7134_v57  ;;  %v7210_v56 = vld [vmem:[#allocation6 + $0x5b0] ss:$40 sps:$4 sm:$0xff]   ;;  %v7215_v57 = vld [vmem:[#allocation6 + $0xffc] ss:$40 sps:$4 sm:$0xff]  }
 0x131   :  { %4250 = vmatpush1.bf16.msra.mxu1 %v7129_v58  ;;  %v7218_v58 = vld [vmem:[#allocation6 + $0x604] ss:$40 sps:$4 sm:$0xff]  }
 0x132   :  { %4332 = vmatpush1.bf16.msra.mxu0 %v7132_v59  ;;  %4251 = vmatprep.subr.bf16.mxu1 %v7137_v60  ;;  %v7213_v59 = vld [vmem:[#allocation6 + $0xff8] ss:$40 sps:$4 sm:$0xff]  }
 0x133   :  { %4333 = vmatprep.subr.bf16.mxu0 %v7140_v61  ;;  %v7216_v60 = vld [vmem:[#allocation6 + $0x600] ss:$40 sps:$4 sm:$0xff]   ;;  %v7221_v61 = vld [vmem:[#allocation6 + $0x104c] ss:$40 sps:$4 sm:$0xff]  }
 0x135   :  { %4252 = vmatpush1.bf16.msra.mxu1 %v7135_v0  ;;  %v7224_v0 = vld [vmem:[#allocation6 + $0x654] ss:$40 sps:$4 sm:$0xff]  }
 0x136   :  { %4334 = vmatpush1.bf16.msra.mxu0 %v7138_v1  ;;  %4253 = vmatprep.subr.bf16.mxu1 %v7143_v2  ;;  %v7219_v1 = vld [vmem:[#allocation6 + $0x1048] ss:$40 sps:$4 sm:$0xff]  }
 0x137   :  { %4335 = vmatprep.subr.bf16.mxu0 %v7146_v4  ;;  %v7222_v2 = vld [vmem:[#allocation6 + $0x650] ss:$40 sps:$4 sm:$0xff]   ;;  %v7227_v4 = vld [vmem:[#allocation6 + $0x109c] ss:$40 sps:$4 sm:$0xff]  }
 0x139   :  { %4254 = vmatpush1.bf16.msra.mxu1 %v7141_v5  ;;  %v7230_v5 = vld [vmem:[#allocation6 + $0x6a4] ss:$40 sps:$4 sm:$0xff]  }
 0x13a   :  { %4336 = vmatpush1.bf16.msra.mxu0 %v7144_v6  ;;  %4255 = vmatprep.subr.bf16.mxu1 %v7149_v7  ;;  %v7225_v6 = vld [vmem:[#allocation6 + $0x1098] ss:$40 sps:$4 sm:$0xff]  }
 0x13b   :  { %4337 = vmatprep.subr.bf16.mxu0 %v7152_v8  ;;  %v7228_v7 = vld [vmem:[#allocation6 + $0x6a0] ss:$40 sps:$4 sm:$0xff]   ;;  %v7233_v8 = vld [vmem:[#allocation6 + $0x10ec] ss:$40 sps:$4 sm:$0xff]  }
 0x13d   :  { %4256 = vmatpush1.bf16.msra.mxu1 %v7147_v9  ;;  %v7236_v9 = vld [vmem:[#allocation6 + $0x6f4] ss:$40 sps:$4 sm:$0xff]  }
 0x13e   :  { %4338 = vmatpush1.bf16.msra.mxu0 %v7150_v10  ;;  %4257 = vmatprep.subr.bf16.mxu1 %v7155_v11  ;;  %v7231_v10 = vld [vmem:[#allocation6 + $0x10e8] ss:$40 sps:$4 sm:$0xff]  }
 0x13f   :  { %4339 = vmatprep.subr.bf16.mxu0 %v7158_v12  ;;  %v7234_v11 = vld [vmem:[#allocation6 + $0x6f0] ss:$40 sps:$4 sm:$0xff]  }
 0x141   :  { %4258 = vmatpush1.bf16.msra.mxu1 %v7153_v14 }
 0x142   :  { %4340 = vmatpush1.bf16.msra.mxu0 %v7156_v15  ;;  %4259 = vmatprep.subr.bf16.mxu1 %v7161_v16  ;;  %v7239_v16 = vld [vmem:[#allocation6 + $0x113c] ss:$40 sps:$4 sm:$0xff]  }
 0x143   :  { %4341 = vmatprep.subr.bf16.mxu0 %v7164_v17  ;;  %v7242_v17 = vld [vmem:[#allocation6 + $0x744] ss:$40 sps:$4 sm:$0xff]  }
 0x145   :  { %4260 = vmatpush1.bf16.msra.mxu1 %v7159_v18 }
 0x146   :  { %4342 = vmatpush1.bf16.msra.mxu0 %v7162_v20  ;;  %4261 = vmatprep.subr.bf16.mxu1 %v7167_v21  ;;  %v7237_v20 = vld [vmem:[#allocation6 + $0x1138] ss:$40 sps:$4 sm:$0xff]  }
 0x147   :  { %4343 = vmatprep.subr.bf16.mxu0 %v7170_v22  ;;  %v7240_v21 = vld [vmem:[#allocation6 + $0x740] ss:$40 sps:$4 sm:$0xff]   ;;  %v7245_v22 = vld [vmem:[#allocation6 + $0x118c] ss:$40 sps:$4 sm:$0xff]  }
 0x149   :  { %4262 = vmatpush1.bf16.msra.mxu1 %v7165_v24  ;;  %v7248_v24 = vld [vmem:[#allocation6 + $0x794] ss:$40 sps:$4 sm:$0xff]  }
 0x14a   :  { %4344 = vmatpush1.bf16.msra.mxu0 %v7168_v25  ;;  %4263 = vmatprep.subr.bf16.mxu1 %v7173_v26  ;;  %v7243_v25 = vld [vmem:[#allocation6 + $0x1188] ss:$40 sps:$4 sm:$0xff]  }
 0x14b   :  { %4345 = vmatprep.subr.bf16.mxu0 %v7176_v27  ;;  %v7246_v26 = vld [vmem:[#allocation6 + $0x790] ss:$40 sps:$4 sm:$0xff]   ;;  %v7251_v27 = vld [vmem:[#allocation6 + $0x11dc] ss:$40 sps:$4 sm:$0xff]  }
 0x14d   :  { %4264 = vmatpush1.bf16.msra.mxu1 %v7171_v28  ;;  %v7254_v28 = vld [vmem:[#allocation6 + $0x7e4] ss:$40 sps:$4 sm:$0xff]  }
 0x14e   :  { %4346 = vmatpush1.bf16.msra.mxu0 %v7174_v29  ;;  %4265 = vmatprep.subr.bf16.mxu1 %v7179_v30  ;;  %v7249_v29 = vld [vmem:[#allocation6 + $0x11d8] ss:$40 sps:$4 sm:$0xff]  }
 0x14f   :  { %4347 = vmatprep.subr.bf16.mxu0 %v7182_v32  ;;  %v7252_v30 = vld [vmem:[#allocation6 + $0x7e0] ss:$40 sps:$4 sm:$0xff]   ;;  %v7257_v32 = vld [vmem:[#allocation6 + $0x122c] ss:$40 sps:$4 sm:$0xff]  }
 0x151   :  { %4266 = vmatpush1.bf16.msra.mxu1 %v7177_v33  ;;  %v7260_v33 = vld [vmem:[#allocation6 + $0x834] ss:$40 sps:$4 sm:$0xff]  }
 0x152   :  { %4348 = vmatpush1.bf16.msra.mxu0 %v7180_v34  ;;  %4267 = vmatprep.subr.bf16.mxu1 %v7185_v35  ;;  %v7255_v34 = vld [vmem:[#allocation6 + $0x1228] ss:$40 sps:$4 sm:$0xff]  }
 0x153   :  { %4349 = vmatprep.subr.bf16.mxu0 %v7188_v37  ;;  %v7258_v35 = vld [vmem:[#allocation6 + $0x830] ss:$40 sps:$4 sm:$0xff]   ;;  %v7263_v37 = vld [vmem:[#allocation6 + $0x127c] ss:$40 sps:$4 sm:$0xff]  }
 0x155   :  { %4268 = vmatpush1.bf16.msra.mxu1 %v7183_v38  ;;  %v7266_v38 = vld [vmem:[#allocation6 + $0x884] ss:$40 sps:$4 sm:$0xff]  }
 0x156   :  { %4350 = vmatpush1.bf16.msra.mxu0 %v7186_v39  ;;  %4269 = vmatprep.subr.bf16.mxu1 %v7191_v40  ;;  %v7261_v39 = vld [vmem:[#allocation6 + $0x1278] ss:$40 sps:$4 sm:$0xff]  }
 0x157   :  { %4351 = vmatprep.subr.bf16.mxu0 %v7194_v41  ;;  %v7264_v40 = vld [vmem:[#allocation6 + $0x880] ss:$40 sps:$4 sm:$0xff]   ;;  %v7269_v41 = vld [vmem:[#allocation6 + $0x12cc] ss:$40 sps:$4 sm:$0xff]  }
 0x159   :  { %4270 = vmatpush1.bf16.msra.mxu1 %v7189_v42  ;;  %v7272_v42 = vld [vmem:[#allocation6 + $0x8d4] ss:$40 sps:$4 sm:$0xff]  }
 0x15a   :  { %4352 = vmatpush1.bf16.msra.mxu0 %v7192_v44  ;;  %4280 = vmatprep.subr.bf16.mxu1 %v7197_v45  ;;  %v7267_v44 = vld [vmem:[#allocation6 + $0x12c8] ss:$40 sps:$4 sm:$0xff]  }
 0x15b   :  { %4362 = vmatprep.subr.bf16.mxu0 %v7200_v46  ;;  %v7270_v45 = vld [vmem:[#allocation6 + $0x8d0] ss:$40 sps:$4 sm:$0xff]   ;;  %v7275_v46 = vld [vmem:[#allocation6 + $0x131c] ss:$40 sps:$4 sm:$0xff]  }
 0x15c   :  { %4272 = vmatmul.mubr.bf16.vlgmr.msra.gmra.mrb[4].mxu1 %v8105_v63 }
 0x15d   :  { %4354 = vmatmul.mubr.bf16.vlgmr.msra.gmra.mrb[4].mxu0 %v8114_v13  ;;  %4281 = vmatpush1.bf16.msra.mxu1 %v7195_v47  ;;  %v7278_v47 = vld [vmem:[#allocation6 + $0x924] ss:$40 sps:$4 sm:$0xff]  }
 0x15e   :  { %4363 = vmatpush1.bf16.msra.mxu0 %v7198_v48  ;;  %4282 = vmatprep.subr.bf16.mxu1 %v7203_v49  ;;  %v7273_v48 = vld [vmem:[#allocation6 + $0x1318] ss:$40 sps:$4 sm:$0xff]  }
 0x15f   :  { %4364 = vmatprep.subr.bf16.mxu0 %v7206_v50  ;;  %4312 = vmatprep.mubr.bf16.mxu1 %v8129_v31  ;;  %v7276_v49 = vld [vmem:[#allocation6 + $0x920] ss:$40 sps:$4 sm:$0xff]   ;;  %v7281_v50 = vld [vmem:[#allocation6 + $0x136c] ss:$40 sps:$4 sm:$0xff]  }
 0x160   :  { %4394 = vmatprep.mubr.bf16.mxu0 %v8109_v3 }
 0x161   :  { %4283 = vmatpush1.bf16.msra.mxu1 %v7201_v51  ;;  %v7284_v51 = vld [vmem:[#allocation6 + $0x974] ss:$40 sps:$4 sm:$0xff]  }
 0x162   :  { %4365 = vmatpush1.bf16.msra.mxu0 %v7204_v52  ;;  %4284 = vmatprep.subr.bf16.mxu1 %v7209_v53  ;;  %v7279_v52 = vld [vmem:[#allocation6 + $0x1368] ss:$40 sps:$4 sm:$0xff]  }
 0x163   :  { %4366 = vmatprep.subr.bf16.mxu0 %v7212_v54  ;;  %v7282_v53 = vld [vmem:[#allocation6 + $0x970] ss:$40 sps:$4 sm:$0xff]   ;;  %v7287_v54 = vld [vmem:[#allocation6 + $0x13bc] ss:$40 sps:$4 sm:$0xff]  }
 0x165   :  { %4285 = vmatpush1.bf16.msra.mxu1 %v7207_v55  ;;  %v7290_v55 = vld [vmem:[#allocation6 + $0x9c4] ss:$40 sps:$4 sm:$0xff]  }
 0x166   :  { %4367 = vmatpush1.bf16.msra.mxu0 %v7210_v56  ;;  %4286 = vmatprep.subr.bf16.mxu1 %v7215_v57  ;;  %v7285_v56 = vld [vmem:[#allocation6 + $0x13b8] ss:$40 sps:$4 sm:$0xff]  }
 0x167   :  { %4368 = vmatprep.subr.bf16.mxu0 %v7218_v58  ;;  %v7288_v57 = vld [vmem:[#allocation6 + $0x9c0] ss:$40 sps:$4 sm:$0xff]   ;;  %v7293_v58 = vld [vmem:[#allocation6 + $0xa14] ss:$40 sps:$4 sm:$0xff]  }
 0x169   :  { %4287 = vmatpush1.bf16.msra.mxu1 %v7213_v59  ;;  %v7296_v59 = vld [vmem:[#allocation6 + $0x1c] ss:$40 sps:$4 sm:$0xff]  }
 0x16a   :  { %4369 = vmatpush1.bf16.msra.mxu0 %v7216_v60  ;;  %4288 = vmatprep.subr.bf16.mxu1 %v7221_v61  ;;  %v7291_v60 = vld [vmem:[#allocation6 + $0xa10] ss:$40 sps:$4 sm:$0xff]  }
 0x16b   :  { %4370 = vmatprep.subr.bf16.mxu0 %v7224_v0  ;;  %v7294_v61 = vld [vmem:[#allocation6 + $0x18] ss:$40 sps:$4 sm:$0xff]   ;;  %v7299_v0 = vld [vmem:[#allocation6 + $0xa64] ss:$40 sps:$4 sm:$0xff]  }
 0x16d   :  { %4289 = vmatpush1.bf16.msra.mxu1 %v7219_v1  ;;  %v7302_v1 = vld [vmem:[#allocation6 + $0x6c] ss:$40 sps:$4 sm:$0xff]  }
 0x16e   :  { %4371 = vmatpush1.bf16.msra.mxu0 %v7222_v2  ;;  %4290 = vmatprep.subr.bf16.mxu1 %v7227_v4  ;;  %v7297_v2 = vld [vmem:[#allocation6 + $0xa60] ss:$40 sps:$4 sm:$0xff]  }
 0x16f   :  { %4372 = vmatprep.subr.bf16.mxu0 %v7230_v5  ;;  %v8147_v12 = vpop.f32.mrb[0].mxu1  ;;  %v7300_v4 = vld [vmem:[#allocation6 + $0x68] ss:$40 sps:$4 sm:$0xff]   ;;  %v7305_v5 = vld [vmem:[#allocation6 + $0xab4] ss:$40 sps:$4 sm:$0xff]  }
 0x170   :  { %v8149_v14 = vpop.f32.mrb[1].mxu1 }
 0x171   :  { %4291 = vmatpush1.bf16.msra.mxu1 %v7225_v6  ;;  %v4031_v15 = vpop.f32.mrb[2].mxu1  ;;  %v7308_v6 = vld [vmem:[#allocation6 + $0xbc] ss:$40 sps:$4 sm:$0xff]  }
 0x172   :  { %4373 = vmatpush1.bf16.msra.mxu0 %v7228_v7  ;;  %4292 = vmatprep.subr.bf16.mxu1 %v7233_v8  ;;  %v4032_v18 = vpop.f32.mrb[3].mxu1  ;;  %v7303_v7 = vld [vmem:[#allocation6 + $0xab0] ss:$40 sps:$4 sm:$0xff]  }
 0x173   :  { %4374 = vmatprep.subr.bf16.mxu0 %v7236_v9  ;;  %v7306_v8 = vld [vmem:[#allocation6 + $0xb8] ss:$40 sps:$4 sm:$0xff]   ;;  %v7311_v9 = vld [vmem:[#allocation6 + $0xb04] ss:$40 sps:$4 sm:$0xff]   ;;  %v7312_v15 = vld [vmem:[#allocation6 + $0x108] ss:$40 sps:$4 sm:$0xff]  }
 0x174   :  { %v7315_v18 = vld [vmem:[#allocation6 + $0xb50] ss:$40 sps:$4 sm:$0xff]  }
 0x175   :  { %4293 = vmatpush1.bf16.msra.mxu1 %v7231_v10  ;;  %v7314_v10 = vld [vmem:[#allocation6 + $0x10c] ss:$40 sps:$4 sm:$0xff]  }
 0x176   :  { %4375 = vmatpush1.bf16.msra.mxu0 %v7234_v11  ;;  %4294 = vmatprep.subr.bf16.mxu1 %v7239_v16  ;;  %v7309_v11 = vld [vmem:[#allocation6 + $0xb00] ss:$40 sps:$4 sm:$0xff]   ;;  %v7317_v16 = vld [vmem:[#allocation6 + $0xb54] ss:$40 sps:$4 sm:$0xff]  }
 0x177   :  { %4376 = vmatprep.subr.bf16.mxu0 %v7242_v17  ;;  %v7320_v17 = vld [vmem:[#allocation6 + $0x15c] ss:$40 sps:$4 sm:$0xff]  }
 0x179   :  { %4295 = vmatpush1.bf16.msra.mxu1 %v7237_v20  ;;  %v7318_v20 = vld [vmem:[#allocation6 + $0x158] ss:$40 sps:$4 sm:$0xff]  }
 0x17a   :  { %4377 = vmatpush1.bf16.msra.mxu0 %v7240_v21  ;;  %4296 = vmatprep.subr.bf16.mxu1 %v7245_v22  ;;  %v7323_v21 = vld [vmem:[#allocation6 + $0xba4] ss:$40 sps:$4 sm:$0xff]  }
 0x17b   :  { %4378 = vmatprep.subr.bf16.mxu0 %v7248_v24  ;;  %v7326_v22 = vld [vmem:[#allocation6 + $0x1ac] ss:$40 sps:$4 sm:$0xff]   ;;  %v7321_v24 = vld [vmem:[#allocation6 + $0xba0] ss:$40 sps:$4 sm:$0xff]  }
 0x17d   :  { %4297 = vmatpush1.bf16.msra.mxu1 %v7243_v25  ;;  %v7324_v25 = vld [vmem:[#allocation6 + $0x1a8] ss:$40 sps:$4 sm:$0xff]  }
 0x17e   :  { %4379 = vmatpush1.bf16.msra.mxu0 %v7246_v26  ;;  %4298 = vmatprep.subr.bf16.mxu1 %v7251_v27  ;;  %v7329_v26 = vld [vmem:[#allocation6 + $0xbf4] ss:$40 sps:$4 sm:$0xff]  }
 0x17f   :  { %4380 = vmatprep.subr.bf16.mxu0 %v7254_v28  ;;  %v7332_v27 = vld [vmem:[#allocation6 + $0x1fc] ss:$40 sps:$4 sm:$0xff]   ;;  %v7327_v28 = vld [vmem:[#allocation6 + $0xbf0] ss:$40 sps:$4 sm:$0xff]  }
 0x181   :  { %4299 = vmatpush1.bf16.msra.mxu1 %v7249_v29  ;;  %v7330_v29 = vld [vmem:[#allocation6 + $0x1f8] ss:$40 sps:$4 sm:$0xff]  }
 0x182   :  { %4381 = vmatpush1.bf16.msra.mxu0 %v7252_v30  ;;  %4300 = vmatprep.subr.bf16.mxu1 %v7257_v32  ;;  %v7335_v30 = vld [vmem:[#allocation6 + $0xc44] ss:$40 sps:$4 sm:$0xff]  }
 0x183   :  { %4382 = vmatprep.subr.bf16.mxu0 %v7260_v33  ;;  %v7338_v32 = vld [vmem:[#allocation6 + $0x24c] ss:$40 sps:$4 sm:$0xff]   ;;  %v7333_v33 = vld [vmem:[#allocation6 + $0xc40] ss:$40 sps:$4 sm:$0xff]  }
 0x185   :  { %4301 = vmatpush1.bf16.msra.mxu1 %v7255_v34  ;;  %v7336_v34 = vld [vmem:[#allocation6 + $0x248] ss:$40 sps:$4 sm:$0xff]  }
 0x186   :  { %4383 = vmatpush1.bf16.msra.mxu0 %v7258_v35  ;;  %4302 = vmatprep.subr.bf16.mxu1 %v7263_v37  ;;  %v7341_v35 = vld [vmem:[#allocation6 + $0xc94] ss:$40 sps:$4 sm:$0xff]  }
 0x187   :  { %4384 = vmatprep.subr.bf16.mxu0 %v7266_v38  ;;  %v7344_v37 = vld [vmem:[#allocation6 + $0x29c] ss:$40 sps:$4 sm:$0xff]   ;;  %v7339_v38 = vld [vmem:[#allocation6 + $0xc90] ss:$40 sps:$4 sm:$0xff]  }
 0x189   :  { %4303 = vmatpush1.bf16.msra.mxu1 %v7261_v39  ;;  %v7342_v39 = vld [vmem:[#allocation6 + $0x298] ss:$40 sps:$4 sm:$0xff]  }
 0x18a   :  { %4385 = vmatpush1.bf16.msra.mxu0 %v7264_v40  ;;  %4304 = vmatprep.subr.bf16.mxu1 %v7269_v41  ;;  %v7347_v40 = vld [vmem:[#allocation6 + $0xce4] ss:$40 sps:$4 sm:$0xff]  }
 0x18b   :  { %4386 = vmatprep.subr.bf16.mxu0 %v7272_v42  ;;  %v7350_v41 = vld [vmem:[#allocation6 + $0x2ec] ss:$40 sps:$4 sm:$0xff]   ;;  %v7345_v42 = vld [vmem:[#allocation6 + $0xce0] ss:$40 sps:$4 sm:$0xff]  }
 0x18d   :  { %4305 = vmatpush1.bf16.msra.mxu1 %v7267_v44  ;;  %v7348_v44 = vld [vmem:[#allocation6 + $0x2e8] ss:$40 sps:$4 sm:$0xff]  }
 0x18e   :  { %4387 = vmatpush1.bf16.msra.mxu0 %v7270_v45  ;;  %4306 = vmatprep.subr.bf16.mxu1 %v7275_v46  ;;  %v7353_v45 = vld [vmem:[#allocation6 + $0xd34] ss:$40 sps:$4 sm:$0xff]  }
 0x18f   :  { %4388 = vmatprep.subr.bf16.mxu0 %v7278_v47  ;;  %v7356_v46 = vld [vmem:[#allocation6 + $0x33c] ss:$40 sps:$4 sm:$0xff]   ;;  %v7351_v47 = vld [vmem:[#allocation6 + $0xd30] ss:$40 sps:$4 sm:$0xff]  }
 0x191   :  { %4307 = vmatpush1.bf16.msra.mxu1 %v7273_v48  ;;  %v7354_v48 = vld [vmem:[#allocation6 + $0x338] ss:$40 sps:$4 sm:$0xff]  }
 0x192   :  { %4389 = vmatpush1.bf16.msra.mxu0 %v7276_v49  ;;  %4308 = vmatprep.subr.bf16.mxu1 %v7281_v50  ;;  %v7359_v49 = vld [vmem:[#allocation6 + $0xd84] ss:$40 sps:$4 sm:$0xff]  }
 0x193   :  { %4390 = vmatprep.subr.bf16.mxu0 %v7284_v51  ;;  %v7362_v50 = vld [vmem:[#allocation6 + $0x38c] ss:$40 sps:$4 sm:$0xff]   ;;  %v7357_v51 = vld [vmem:[#allocation6 + $0xd80] ss:$40 sps:$4 sm:$0xff]  }
 0x195   :  { %4309 = vmatpush1.bf16.msra.mxu1 %v7279_v52  ;;  %v7360_v52 = vld [vmem:[#allocation6 + $0x388] ss:$40 sps:$4 sm:$0xff]  }
 0x196   :  { %4391 = vmatpush1.bf16.msra.mxu0 %v7282_v53  ;;  %4310 = vmatprep.subr.bf16.mxu1 %v7287_v54  ;;  %v7365_v53 = vld [vmem:[#allocation6 + $0xdd4] ss:$40 sps:$4 sm:$0xff]  }
 0x197   :  { %4392 = vmatprep.subr.bf16.mxu0 %v7290_v55  ;;  %v7368_v54 = vld [vmem:[#allocation6 + $0x3dc] ss:$40 sps:$4 sm:$0xff]   ;;  %v7363_v55 = vld [vmem:[#allocation6 + $0xdd0] ss:$40 sps:$4 sm:$0xff]  }
 0x199   :  { %4311 = vmatpush1.bf16.msra.mxu1 %v7285_v56  ;;  %v7366_v56 = vld [vmem:[#allocation6 + $0x3d8] ss:$40 sps:$4 sm:$0xff]  }
 0x19a   :  { %4393 = vmatpush1.bf16.msra.mxu0 %v7288_v57  ;;  %4485 = vmatprep.subr.bf16.mxu1 %v7296_v59  ;;  %v7371_v57 = vld [vmem:[#allocation6 + $0xe24] ss:$40 sps:$4 sm:$0xff]   ;;  %v7369_v59 = vld [vmem:[#allocation6 + $0xe20] ss:$40 sps:$4 sm:$0xff]  }
 0x19b   :  { %4403 = vmatprep.subr.bf16.mxu0 %v7293_v58  ;;  %v7374_v58 = vld [vmem:[#allocation6 + $0x42c] ss:$40 sps:$4 sm:$0xff]  }
 0x19c   :  { %4313 = vmatmul.mubr.bf16.vlgmr.msra.gmra.mrb[4].mxu1 %v8137_v36 }
 0x19d   :  { %4395 = vmatmul.mubr.bf16.vlgmr.msra.gmra.mrb[4].mxu0 %v8118_v19  ;;  %4486 = vmatpush1.bf16.msra.mxu1 %v7294_v61  ;;  %v7377_v61 = vld [vmem:[#allocation6 + $0xe74] ss:$40 sps:$4 sm:$0xff]  }
 0x19e   :  { %4404 = vmatpush1.bf16.msra.mxu0 %v7291_v60  ;;  %4487 = vmatprep.subr.bf16.mxu1 %v7302_v1  ;;  %v7372_v60 = vld [vmem:[#allocation6 + $0x428] ss:$40 sps:$4 sm:$0xff]  }
 0x19f   :  { %4405 = vmatprep.subr.bf16.mxu0 %v7299_v0  ;;  %4435 = vmatprep.mubr.bf16.mxu0 %v8121_v23  ;;  %v7380_v0 = vld [vmem:[#allocation6 + $0x47c] ss:$40 sps:$4 sm:$0xff]   ;;  %v7375_v1 = vld [vmem:[#allocation6 + $0xe70] ss:$40 sps:$4 sm:$0xff]  }
 0x1a0   :  { %4517 = vmatprep.mubr.bf16.mxu1 %v8102_v62 }
 0x1a1   :  { %4488 = vmatpush1.bf16.msra.mxu1 %v7300_v4  ;;  %v7383_v4 = vld [vmem:[#allocation6 + $0xec4] ss:$40 sps:$4 sm:$0xff]  }
 0x1a2   :  { %4406 = vmatpush1.bf16.msra.mxu0 %v7297_v2  ;;  %4489 = vmatprep.subr.bf16.mxu1 %v7308_v6  ;;  %v7378_v2 = vld [vmem:[#allocation6 + $0x478] ss:$40 sps:$4 sm:$0xff]  }
 0x1a3   :  { %4407 = vmatprep.subr.bf16.mxu0 %v7305_v5  ;;  %v7386_v5 = vld [vmem:[#allocation6 + $0x4cc] ss:$40 sps:$4 sm:$0xff]   ;;  %v7381_v6 = vld [vmem:[#allocation6 + $0xec0] ss:$40 sps:$4 sm:$0xff]  }
 0x1a5   :  { %4490 = vmatpush1.bf16.msra.mxu1 %v7306_v8  ;;  %v7389_v8 = vld [vmem:[#allocation6 + $0xf14] ss:$40 sps:$4 sm:$0xff]  }
 0x1a6   :  { %4408 = vmatpush1.bf16.msra.mxu0 %v7303_v7  ;;  %4491 = vmatprep.subr.bf16.mxu1 %v7314_v10  ;;  %v7384_v7 = vld [vmem:[#allocation6 + $0x4c8] ss:$40 sps:$4 sm:$0xff]  }
 0x1a7   :  { %4409 = vmatprep.subr.bf16.mxu0 %v7311_v9  ;;  %v7392_v9 = vld [vmem:[#allocation6 + $0x51c] ss:$40 sps:$4 sm:$0xff]   ;;  %v7387_v10 = vld [vmem:[#allocation6 + $0xf10] ss:$40 sps:$4 sm:$0xff]  }
 0x1a9   :  { %4492 = vmatpush1.bf16.msra.mxu1 %v7312_v15  ;;  %v7395_v15 = vld [vmem:[#allocation6 + $0xf64] ss:$40 sps:$4 sm:$0xff]  }
 0x1aa   :  { %4410 = vmatpush1.bf16.msra.mxu0 %v7309_v11  ;;  %4493 = vmatprep.subr.bf16.mxu1 %v7320_v17  ;;  %v7390_v11 = vld [vmem:[#allocation6 + $0x518] ss:$40 sps:$4 sm:$0xff]  }
 0x1ab   :  { %4411 = vmatprep.subr.bf16.mxu0 %v7317_v16  ;;  %v7398_v16 = vld [vmem:[#allocation6 + $0x56c] ss:$40 sps:$4 sm:$0xff]   ;;  %v7393_v17 = vld [vmem:[#allocation6 + $0xf60] ss:$40 sps:$4 sm:$0xff]  }
 0x1ad   :  { %4494 = vmatpush1.bf16.msra.mxu1 %v7318_v20  ;;  %v7401_v20 = vld [vmem:[#allocation6 + $0xfb4] ss:$40 sps:$4 sm:$0xff]  }
 0x1ae   :  { %4412 = vmatpush1.bf16.msra.mxu0 %v7315_v18  ;;  %4495 = vmatprep.subr.bf16.mxu1 %v7326_v22  ;;  %v7396_v18 = vld [vmem:[#allocation6 + $0x568] ss:$40 sps:$4 sm:$0xff]  }
 0x1af   :  { %4413 = vmatprep.subr.bf16.mxu0 %v7323_v21  ;;  %v7404_v21 = vld [vmem:[#allocation6 + $0x5bc] ss:$40 sps:$4 sm:$0xff]   ;;  %v7399_v22 = vld [vmem:[#allocation6 + $0xfb0] ss:$40 sps:$4 sm:$0xff]  }
 0x1b1   :  { %4496 = vmatpush1.bf16.msra.mxu1 %v7324_v25  ;;  %v7407_v25 = vld [vmem:[#allocation6 + $0x1004] ss:$40 sps:$4 sm:$0xff]  }
 0x1b2   :  { %4414 = vmatpush1.bf16.msra.mxu0 %v7321_v24  ;;  %4497 = vmatprep.subr.bf16.mxu1 %v7332_v27  ;;  %v7402_v24 = vld [vmem:[#allocation6 + $0x5b8] ss:$40 sps:$4 sm:$0xff]  }
 0x1b3   :  { %4415 = vmatprep.subr.bf16.mxu0 %v7329_v26  ;;  %v7410_v26 = vld [vmem:[#allocation6 + $0x60c] ss:$40 sps:$4 sm:$0xff]   ;;  %v7405_v27 = vld [vmem:[#allocation6 + $0x1000] ss:$40 sps:$4 sm:$0xff]  }
 0x1b5   :  { %4498 = vmatpush1.bf16.msra.mxu1 %v7330_v29  ;;  %v7413_v29 = vld [vmem:[#allocation6 + $0x1054] ss:$40 sps:$4 sm:$0xff]  }
 0x1b6   :  { %4416 = vmatpush1.bf16.msra.mxu0 %v7327_v28  ;;  %4499 = vmatprep.subr.bf16.mxu1 %v7338_v32  ;;  %v7408_v28 = vld [vmem:[#allocation6 + $0x608] ss:$40 sps:$4 sm:$0xff]  }
 0x1b7   :  { %4417 = vmatprep.subr.bf16.mxu0 %v7335_v30  ;;  %v7416_v30 = vld [vmem:[#allocation6 + $0x65c] ss:$40 sps:$4 sm:$0xff]   ;;  %v7411_v32 = vld [vmem:[#allocation6 + $0x1050] ss:$40 sps:$4 sm:$0xff]  }
 0x1b9   :  { %4500 = vmatpush1.bf16.msra.mxu1 %v7336_v34  ;;  %v7419_v34 = vld [vmem:[#allocation6 + $0x10a4] ss:$40 sps:$4 sm:$0xff]  }
 0x1ba   :  { %4418 = vmatpush1.bf16.msra.mxu0 %v7333_v33  ;;  %4501 = vmatprep.subr.bf16.mxu1 %v7344_v37  ;;  %v7414_v33 = vld [vmem:[#allocation6 + $0x658] ss:$40 sps:$4 sm:$0xff]  }
 0x1bb   :  { %4419 = vmatprep.subr.bf16.mxu0 %v7341_v35  ;;  %v7422_v35 = vld [vmem:[#allocation6 + $0x6ac] ss:$40 sps:$4 sm:$0xff]   ;;  %v7417_v37 = vld [vmem:[#allocation6 + $0x10a0] ss:$40 sps:$4 sm:$0xff]  }
 0x1bd   :  { %4502 = vmatpush1.bf16.msra.mxu1 %v7342_v39  ;;  %v7425_v39 = vld [vmem:[#allocation6 + $0x10f4] ss:$40 sps:$4 sm:$0xff]  }
 0x1be   :  { %4420 = vmatpush1.bf16.msra.mxu0 %v7339_v38  ;;  %4503 = vmatprep.subr.bf16.mxu1 %v7350_v41  ;;  %v7420_v38 = vld [vmem:[#allocation6 + $0x6a8] ss:$40 sps:$4 sm:$0xff]  }
 0x1bf   :  { %4421 = vmatprep.subr.bf16.mxu0 %v7347_v40  ;;  %v7428_v40 = vld [vmem:[#allocation6 + $0x6fc] ss:$40 sps:$4 sm:$0xff]  }
 0x1c1   :  { %4504 = vmatpush1.bf16.msra.mxu1 %v7348_v44 }
 0x1c2   :  { %4422 = vmatpush1.bf16.msra.mxu0 %v7345_v42  ;;  %4505 = vmatprep.subr.bf16.mxu1 %v7356_v46  ;;  %v7426_v46 = vld [vmem:[#allocation6 + $0x6f8] ss:$40 sps:$4 sm:$0xff]  }
 0x1c3   :  { %4423 = vmatprep.subr.bf16.mxu0 %v7353_v45  ;;  %v7423_v45 = vld [vmem:[#allocation6 + $0x10f0] ss:$40 sps:$4 sm:$0xff]  }
 0x1c5   :  { %4506 = vmatpush1.bf16.msra.mxu1 %v7354_v48 }
 0x1c6   :  { %4424 = vmatpush1.bf16.msra.mxu0 %v7351_v47  ;;  %4507 = vmatprep.subr.bf16.mxu1 %v7362_v50  ;;  %v8001_v47 = vmov 0.0  }
 0x1c7   :  { %4425 = vmatprep.subr.bf16.mxu0 %v7359_v49  ;;  %90 = vst [vmem:[#allocation2 + $0x10] sm:$0xf] %v8001_v47  ;;  %v7506_v47 = vld [vmem:[#allocation6 + $0x114] ss:$40 sps:$4 sm:$0xff]  }
 0x1c9   :  { %4508 = vmatpush1.bf16.msra.mxu1 %v7360_v52  ;;  %v7434_v52 = vld [vmem:[#allocation6 + $0x74c] ss:$40 sps:$4 sm:$0xff]  }
 0x1ca   :  { %4426 = vmatpush1.bf16.msra.mxu0 %v7357_v51  ;;  %4509 = vmatprep.subr.bf16.mxu1 %v7368_v54  ;;  %v7431_v51 = vld [vmem:[#allocation6 + $0x1144] ss:$40 sps:$4 sm:$0xff]   ;;  %v7432_v54 = vld [vmem:[#allocation6 + $0x748] ss:$40 sps:$4 sm:$0xff]  }
 0x1cb   :  { %4427 = vmatprep.subr.bf16.mxu0 %v7365_v53  ;;  %v7429_v53 = vld [vmem:[#allocation6 + $0x1140] ss:$40 sps:$4 sm:$0xff]  }
 0x1cd   :  { %4510 = vmatpush1.bf16.msra.mxu1 %v7366_v56  ;;  %v7435_v56 = vld [vmem:[#allocation6 + $0x1190] ss:$40 sps:$4 sm:$0xff]  }
 0x1ce   :  { %4428 = vmatpush1.bf16.msra.mxu0 %v7363_v55  ;;  %4511 = vmatprep.subr.bf16.mxu1 %v7374_v58  ;;  %v7437_v55 = vld [vmem:[#allocation6 + $0x1194] ss:$40 sps:$4 sm:$0xff]   ;;  %v7443_v58 = vld [vmem:[#allocation6 + $0x11e4] ss:$40 sps:$4 sm:$0xff]  }
 0x1cf   :  { %4429 = vmatprep.subr.bf16.mxu0 %v7371_v57  ;;  %v7438_v57 = vld [vmem:[#allocation6 + $0x798] ss:$40 sps:$4 sm:$0xff]  }
 0x1d1   :  { %4512 = vmatpush1.bf16.msra.mxu1 %v7372_v60  ;;  %v7441_v60 = vld [vmem:[#allocation6 + $0x11e0] ss:$40 sps:$4 sm:$0xff]  }
 0x1d2   :  { %4430 = vmatpush1.bf16.msra.mxu0 %v7369_v59  ;;  %4513 = vmatprep.subr.bf16.mxu1 %v7380_v0  ;;  %v7446_v59 = vld [vmem:[#allocation6 + $0x7ec] ss:$40 sps:$4 sm:$0xff]  }
 0x1d3   :  { %4431 = vmatprep.subr.bf16.mxu0 %v7377_v61  ;;  %v7444_v61 = vld [vmem:[#allocation6 + $0x7e8] ss:$40 sps:$4 sm:$0xff]   ;;  %v7449_v0 = vld [vmem:[#allocation6 + $0x1234] ss:$40 sps:$4 sm:$0xff]  }
 0x1d5   :  { %4514 = vmatpush1.bf16.msra.mxu1 %v7378_v2  ;;  %v7447_v2 = vld [vmem:[#allocation6 + $0x1230] ss:$40 sps:$4 sm:$0xff]  }
 0x1d6   :  { %4432 = vmatpush1.bf16.msra.mxu0 %v7375_v1  ;;  %4515 = vmatprep.subr.bf16.mxu1 %v7386_v5  ;;  %v7452_v1 = vld [vmem:[#allocation6 + $0x83c] ss:$40 sps:$4 sm:$0xff]  }
 0x1d7   :  { %4433 = vmatprep.subr.bf16.mxu0 %v7383_v4  ;;  %v7450_v4 = vld [vmem:[#allocation6 + $0x838] ss:$40 sps:$4 sm:$0xff]   ;;  %v7455_v5 = vld [vmem:[#allocation6 + $0x1284] ss:$40 sps:$4 sm:$0xff]  }
 0x1d9   :  { %4516 = vmatpush1.bf16.msra.mxu1 %v7384_v7  ;;  %v7453_v7 = vld [vmem:[#allocation6 + $0x1280] ss:$40 sps:$4 sm:$0xff]  }
 0x1da   :  { %4434 = vmatpush1.bf16.msra.mxu0 %v7381_v6  ;;  %4526 = vmatprep.subr.bf16.mxu1 %v7392_v9  ;;  %v7458_v6 = vld [vmem:[#allocation6 + $0x88c] ss:$40 sps:$4 sm:$0xff]  }
 0x1db   :  { %4444 = vmatprep.subr.bf16.mxu0 %v7389_v8  ;;  %v7456_v8 = vld [vmem:[#allocation6 + $0x888] ss:$40 sps:$4 sm:$0xff]   ;;  %v7461_v9 = vld [vmem:[#allocation6 + $0x12d4] ss:$40 sps:$4 sm:$0xff]  }
 0x1dc   :  { %4518 = vmatmul.mubr.bf16.vlgmr.msra.gmra.mrb[8].mxu1 %v8114_v13 }
 0x1dd   :  { %4436 = vmatmul.mubr.bf16.vlgmr.msra.gmra.mrb[4].mxu0 %v8105_v63  ;;  %4527 = vmatpush1.bf16.msra.mxu1 %v7390_v11  ;;  %v7459_v11 = vld [vmem:[#allocation6 + $0x12d0] ss:$40 sps:$4 sm:$0xff]  }
 0x1de   :  { %4445 = vmatpush1.bf16.msra.mxu0 %v7387_v10  ;;  %4528 = vmatprep.subr.bf16.mxu1 %v7398_v16  ;;  %v7464_v10 = vld [vmem:[#allocation6 + $0x8dc] ss:$40 sps:$4 sm:$0xff]  }
 0x1df   :  { %4446 = vmatprep.subr.bf16.mxu0 %v7395_v15  ;;  %4476 = vmatprep.mubr.bf16.mxu0 %v8129_v31  ;;  %v7462_v15 = vld [vmem:[#allocation6 + $0x8d8] ss:$40 sps:$4 sm:$0xff]   ;;  %v7467_v16 = vld [vmem:[#allocation6 + $0x1324] ss:$40 sps:$4 sm:$0xff]  }
 0x1e0   :  { %4558 = vmatprep.mubr.bf16.mxu1 %v8109_v3 }
 0x1e1   :  { %4529 = vmatpush1.bf16.msra.mxu1 %v7396_v18  ;;  %v7465_v18 = vld [vmem:[#allocation6 + $0x1320] ss:$40 sps:$4 sm:$0xff]  }
 0x1e2   :  { %4447 = vmatpush1.bf16.msra.mxu0 %v7393_v17  ;;  %4530 = vmatprep.subr.bf16.mxu1 %v7404_v21  ;;  %v7470_v17 = vld [vmem:[#allocation6 + $0x92c] ss:$40 sps:$4 sm:$0xff]  }
 0x1e3   :  { %4448 = vmatprep.subr.bf16.mxu0 %v7401_v20  ;;  %v7468_v20 = vld [vmem:[#allocation6 + $0x928] ss:$40 sps:$4 sm:$0xff]   ;;  %v7473_v21 = vld [vmem:[#allocation6 + $0x1374] ss:$40 sps:$4 sm:$0xff]  }
 0x1e5   :  { %4531 = vmatpush1.bf16.msra.mxu1 %v7402_v24  ;;  %v7471_v24 = vld [vmem:[#allocation6 + $0x1370] ss:$40 sps:$4 sm:$0xff]  }
 0x1e6   :  { %4449 = vmatpush1.bf16.msra.mxu0 %v7399_v22  ;;  %4532 = vmatprep.subr.bf16.mxu1 %v7410_v26  ;;  %v7476_v22 = vld [vmem:[#allocation6 + $0x97c] ss:$40 sps:$4 sm:$0xff]  }
 0x1e7   :  { %4450 = vmatprep.subr.bf16.mxu0 %v7407_v25  ;;  %v7474_v25 = vld [vmem:[#allocation6 + $0x978] ss:$40 sps:$4 sm:$0xff]   ;;  %v7479_v26 = vld [vmem:[#allocation6 + $0x13c4] ss:$40 sps:$4 sm:$0xff]  }
 0x1e9   :  { %4533 = vmatpush1.bf16.msra.mxu1 %v7408_v28  ;;  %v7477_v28 = vld [vmem:[#allocation6 + $0x13c0] ss:$40 sps:$4 sm:$0xff]  }
 0x1ea   :  { %4451 = vmatpush1.bf16.msra.mxu0 %v7405_v27  ;;  %4534 = vmatprep.subr.bf16.mxu1 %v7416_v30  ;;  %v7482_v27 = vld [vmem:[#allocation6 + $0x9cc] ss:$40 sps:$4 sm:$0xff]   ;;  %v7485_v30 = vld [vmem:[#allocation6 + $0xa1c] ss:$40 sps:$4 sm:$0xff]  }
 0x1eb   :  { %4452 = vmatprep.subr.bf16.mxu0 %v7413_v29  ;;  %v7480_v29 = vld [vmem:[#allocation6 + $0x9c8] ss:$40 sps:$4 sm:$0xff]  }
 0x1ed   :  { %4535 = vmatpush1.bf16.msra.mxu1 %v7414_v33  ;;  %v7483_v33 = vld [vmem:[#allocation6 + $0xa18] ss:$40 sps:$4 sm:$0xff]  }
 0x1ee   :  { %4453 = vmatpush1.bf16.msra.mxu0 %v7411_v32  ;;  %4536 = vmatprep.subr.bf16.mxu1 %v7422_v35  ;;  %v7488_v32 = vld [vmem:[#allocation6 + $0x24] ss:$40 sps:$4 sm:$0xff]  }
 0x1ef   :  { %4454 = vmatprep.subr.bf16.mxu0 %v7419_v34  ;;  %v7486_v34 = vld [vmem:[#allocation6 + $0x20] ss:$40 sps:$4 sm:$0xff]   ;;  %v7491_v35 = vld [vmem:[#allocation6 + $0xa6c] ss:$40 sps:$4 sm:$0xff]  }
 0x1f0   :  { %v4150_v41 = vpop.f32.mrb[0].mxu0 }
 0x1f1   :  { %v8160_v42 = vadd.f32 %v4150_v41, %v8147_v12  ;;  %v4152_v44 = vpop.f32.mrb[1].mxu0  ;;  %4537 = vmatpush1.bf16.msra.mxu1 %v7420_v38  ;;  %v7489_v38 = vld [vmem:[#allocation6 + $0xa68] ss:$40 sps:$4 sm:$0xff]   ;;  %v7500_v41 = vld [vmem:[#allocation6 + $0xc4] ss:$40 sps:$4 sm:$0xff]  }
 0x1f2   :  { %v8163_v48 = vadd.f32 %v4152_v44, %v8149_v14  ;;  %v4154_v49 = vpop.f32.mrb[2].mxu0  ;;  %4455 = vmatpush1.bf16.msra.mxu0 %v7417_v37  ;;  %4538 = vmatprep.subr.bf16.mxu1 %v7428_v40  ;;  %v7440_v14 = vld [vmem:[#allocation6 + $0x79c] ss:$40 sps:$4 sm:$0xff]   ;;  %v7495_v44 = vld [vmem:[#allocation6 + $0xab8] ss:$40 sps:$4 sm:$0xff]  }
 0x1f3   :  { %v4155_v50 = vpop.f32.mrb[3].mxu0  ;;  %4456 = vmatprep.subr.bf16.mxu0 %v7425_v39  ;;  %v7494_v37 = vld [vmem:[#allocation6 + $0x74] ss:$40 sps:$4 sm:$0xff]   ;;  %v7492_v39 = vld [vmem:[#allocation6 + $0x70] ss:$40 sps:$4 sm:$0xff]  }
 0x1f4   :  { %v4823_v12 = vcombine.low %v8160_v42, %v8163_v48  ;;  %v7497_v40 = vld [vmem:[#allocation6 + $0xabc] ss:$40 sps:$4 sm:$0xff]   ;;  %v7501_v49 = vld [vmem:[#allocation6 + $0xb08] ss:$40 sps:$4 sm:$0xff]  }
 0x1f5   :  { %4539 = vmatpush1.bf16.msra.mxu1 %v7426_v46  ;;  %v7503_v46 = vld [vmem:[#allocation6 + $0xb0c] ss:$40 sps:$4 sm:$0xff]   ;;  %v7504_v50 = vld [vmem:[#allocation6 + $0x110] ss:$40 sps:$4 sm:$0xff]   ;;  %v7629_v42 = vld [vmem:[#allocation6 + $0x119c] ss:$40 sps:$4 sm:$0xff]  }
 0x1f6   :  { %4457 = vmatpush1.bf16.msra.mxu0 %v7423_v45  ;;  %4540 = vmatprep.subr.bf16.mxu1 %v7434_v52  ;;  %v7498_v45 = vld [vmem:[#allocation6 + $0xc0] ss:$40 sps:$4 sm:$0xff]   ;;  %v7512_v52 = vld [vmem:[#allocation6 + $0x164] ss:$40 sps:$4 sm:$0xff]  }
 0x1f7   :  { %4458 = vmatprep.subr.bf16.mxu0 %v7431_v51  ;;  %v7509_v51 = vld [vmem:[#allocation6 + $0xb5c] ss:$40 sps:$4 sm:$0xff]  }
 0x1f8   :  { %v7632_v48 = vld [vmem:[#allocation6 + $0x7a4] ss:$40 sps:$4 sm:$0xff]  }
 0x1f9   :  { %4541 = vmatpush1.bf16.msra.mxu1 %v7432_v54  ;;  %v7515_v54 = vld [vmem:[#allocation6 + $0xbac] ss:$40 sps:$4 sm:$0xff]  }
 0x1fa   :  { %4459 = vmatpush1.bf16.msra.mxu0 %v7429_v53  ;;  %4542 = vmatprep.subr.bf16.mxu1 %v7440_v14  ;;  %v7507_v53 = vld [vmem:[#allocation6 + $0xb58] ss:$40 sps:$4 sm:$0xff]   ;;  %v7513_v14 = vld [vmem:[#allocation6 + $0xba8] ss:$40 sps:$4 sm:$0xff]  }
 0x1fb   :  { %4460 = vmatprep.subr.bf16.mxu0 %v7437_v55  ;;  %v7518_v55 = vld [vmem:[#allocation6 + $0x1b4] ss:$40 sps:$4 sm:$0xff]  }
 0x1fd   :  { %4543 = vmatpush1.bf16.msra.mxu1 %v7438_v57  ;;  %v7521_v57 = vld [vmem:[#allocation6 + $0xbfc] ss:$40 sps:$4 sm:$0xff]  }
 0x1fe   :  { %4461 = vmatpush1.bf16.msra.mxu0 %v7435_v56  ;;  %4544 = vmatprep.subr.bf16.mxu1 %v7446_v59  ;;  %v7516_v56 = vld [vmem:[#allocation6 + $0x1b0] ss:$40 sps:$4 sm:$0xff]  }
 0x1ff   :  { %4462 = vmatprep.subr.bf16.mxu0 %v7443_v58  ;;  %v7524_v58 = vld [vmem:[#allocation6 + $0x204] ss:$40 sps:$4 sm:$0xff]   ;;  %v7519_v59 = vld [vmem:[#allocation6 + $0xbf8] ss:$40 sps:$4 sm:$0xff]  }
 0x201   :  { %4545 = vmatpush1.bf16.msra.mxu1 %v7444_v61  ;;  %v7527_v61 = vld [vmem:[#allocation6 + $0xc4c] ss:$40 sps:$4 sm:$0xff]  }
 0x202   :  { %4463 = vmatpush1.bf16.msra.mxu0 %v7441_v60  ;;  %4546 = vmatprep.subr.bf16.mxu1 %v7452_v1  ;;  %v7522_v60 = vld [vmem:[#allocation6 + $0x200] ss:$40 sps:$4 sm:$0xff]  }
 0x203   :  { %4464 = vmatprep.subr.bf16.mxu0 %v7449_v0  ;;  %v7530_v0 = vld [vmem:[#allocation6 + $0x254] ss:$40 sps:$4 sm:$0xff]   ;;  %v7525_v1 = vld [vmem:[#allocation6 + $0xc48] ss:$40 sps:$4 sm:$0xff]  }
 0x205   :  { %4547 = vmatpush1.bf16.msra.mxu1 %v7450_v4  ;;  %v7533_v4 = vld [vmem:[#allocation6 + $0xc9c] ss:$40 sps:$4 sm:$0xff]  }
 0x206   :  { %4465 = vmatpush1.bf16.msra.mxu0 %v7447_v2  ;;  %4548 = vmatprep.subr.bf16.mxu1 %v7458_v6  ;;  %v7528_v2 = vld [vmem:[#allocation6 + $0x250] ss:$40 sps:$4 sm:$0xff]  }
 0x207   :  { %4466 = vmatprep.subr.bf16.mxu0 %v7455_v5  ;;  %v7536_v5 = vld [vmem:[#allocation6 + $0x2a4] ss:$40 sps:$4 sm:$0xff]   ;;  %v7531_v6 = vld [vmem:[#allocation6 + $0xc98] ss:$40 sps:$4 sm:$0xff]  }
 0x209   :  { %4549 = vmatpush1.bf16.msra.mxu1 %v7456_v8  ;;  %v7539_v8 = vld [vmem:[#allocation6 + $0xcec] ss:$40 sps:$4 sm:$0xff]  }
 0x20a   :  { %4467 = vmatpush1.bf16.msra.mxu0 %v7453_v7  ;;  %4550 = vmatprep.subr.bf16.mxu1 %v7464_v10  ;;  %v7534_v7 = vld [vmem:[#allocation6 + $0x2a0] ss:$40 sps:$4 sm:$0xff]  }
 0x20b   :  { %4468 = vmatprep.subr.bf16.mxu0 %v7461_v9  ;;  %v7542_v9 = vld [vmem:[#allocation6 + $0x2f4] ss:$40 sps:$4 sm:$0xff]   ;;  %v7537_v10 = vld [vmem:[#allocation6 + $0xce8] ss:$40 sps:$4 sm:$0xff]  }
 0x20d   :  { %4551 = vmatpush1.bf16.msra.mxu1 %v7462_v15  ;;  %v7545_v15 = vld [vmem:[#allocation6 + $0xd3c] ss:$40 sps:$4 sm:$0xff]  }
 0x20e   :  { %4469 = vmatpush1.bf16.msra.mxu0 %v7459_v11  ;;  %4552 = vmatprep.subr.bf16.mxu1 %v7470_v17  ;;  %v7540_v11 = vld [vmem:[#allocation6 + $0x2f0] ss:$40 sps:$4 sm:$0xff]  }
 0x20f   :  { %4470 = vmatprep.subr.bf16.mxu0 %v7467_v16  ;;  %v7548_v16 = vld [vmem:[#allocation6 + $0x344] ss:$40 sps:$4 sm:$0xff]   ;;  %v7543_v17 = vld [vmem:[#allocation6 + $0xd38] ss:$40 sps:$4 sm:$0xff]  }
 0x211   :  { %4553 = vmatpush1.bf16.msra.mxu1 %v7468_v20  ;;  %v7551_v20 = vld [vmem:[#allocation6 + $0xd8c] ss:$40 sps:$4 sm:$0xff]  }
 0x212   :  { %4471 = vmatpush1.bf16.msra.mxu0 %v7465_v18  ;;  %4554 = vmatprep.subr.bf16.mxu1 %v7476_v22  ;;  %v7546_v18 = vld [vmem:[#allocation6 + $0x340] ss:$40 sps:$4 sm:$0xff]  }
 0x213   :  { %4472 = vmatprep.subr.bf16.mxu0 %v7473_v21  ;;  %v7554_v21 = vld [vmem:[#allocation6 + $0x394] ss:$40 sps:$4 sm:$0xff]   ;;  %v7549_v22 = vld [vmem:[#allocation6 + $0xd88] ss:$40 sps:$4 sm:$0xff]  }
 0x215   :  { %4555 = vmatpush1.bf16.msra.mxu1 %v7474_v25  ;;  %v7557_v25 = vld [vmem:[#allocation6 + $0xddc] ss:$40 sps:$4 sm:$0xff]  }
 0x216   :  { %4473 = vmatpush1.bf16.msra.mxu0 %v7471_v24  ;;  %4556 = vmatprep.subr.bf16.mxu1 %v7482_v27  ;;  %v7552_v24 = vld [vmem:[#allocation6 + $0x390] ss:$40 sps:$4 sm:$0xff]  }
 0x217   :  { %4474 = vmatprep.subr.bf16.mxu0 %v7479_v26  ;;  %v7560_v26 = vld [vmem:[#allocation6 + $0x3e4] ss:$40 sps:$4 sm:$0xff]   ;;  %v7555_v27 = vld [vmem:[#allocation6 + $0xdd8] ss:$40 sps:$4 sm:$0xff]  }
 0x219   :  { %4557 = vmatpush1.bf16.msra.mxu1 %v7480_v29  ;;  %v7563_v29 = vld [vmem:[#allocation6 + $0xe2c] ss:$40 sps:$4 sm:$0xff]  }
 0x21a   :  { %4475 = vmatpush1.bf16.msra.mxu0 %v7477_v28  ;;  %4567 = vmatprep.subr.bf16.mxu1 %v7485_v30  ;;  %v7558_v28 = vld [vmem:[#allocation6 + $0x3e0] ss:$40 sps:$4 sm:$0xff]   ;;  %v7566_v30 = vld [vmem:[#allocation6 + $0x434] ss:$40 sps:$4 sm:$0xff]  }
 0x21b   :  { %4649 = vmatprep.subr.bf16.mxu0 %v7488_v32  ;;  %v7561_v32 = vld [vmem:[#allocation6 + $0xe28] ss:$40 sps:$4 sm:$0xff]  }
 0x21c   :  { %4559 = vmatmul.mubr.bf16.vlgmr.msra.gmra.mrb[8].mxu1 %v8118_v19 }
 0x21d   :  { %4477 = vmatmul.mubr.bf16.vlgmr.msra.gmra.mrb[4].mxu0 %v8137_v36  ;;  %4568 = vmatpush1.bf16.msra.mxu1 %v7483_v33  ;;  %v7564_v33 = vld [vmem:[#allocation6 + $0x430] ss:$40 sps:$4 sm:$0xff]  }
 0x21e   :  { %4650 = vmatpush1.bf16.msra.mxu0 %v7486_v34  ;;  %4569 = vmatprep.subr.bf16.mxu1 %v7491_v35  ;;  %v7569_v34 = vld [vmem:[#allocation6 + $0xe7c] ss:$40 sps:$4 sm:$0xff]  }
 0x21f   :  { %4651 = vmatprep.subr.bf16.mxu0 %v7494_v37  ;;  %4599 = vmatprep.mubr.bf16.mxu1 %v8121_v23  ;;  %v7572_v35 = vld [vmem:[#allocation6 + $0x484] ss:$40 sps:$4 sm:$0xff]   ;;  %v7567_v37 = vld [vmem:[#allocation6 + $0xe78] ss:$40 sps:$4 sm:$0xff]  }
 0x220   :  { %4681 = vmatprep.mubr.bf16.mxu0 %v8102_v62  ;;  %v7510_v62 = vld [vmem:[#allocation6 + $0x160] ss:$40 sps:$4 sm:$0xff]  }
 0x221   :  { %4570 = vmatpush1.bf16.msra.mxu1 %v7489_v38  ;;  %v7570_v38 = vld [vmem:[#allocation6 + $0x480] ss:$40 sps:$4 sm:$0xff]  }
 0x222   :  { %4652 = vmatpush1.bf16.msra.mxu0 %v7492_v39  ;;  %4571 = vmatprep.subr.bf16.mxu1 %v7497_v40  ;;  %v7575_v39 = vld [vmem:[#allocation6 + $0xecc] ss:$40 sps:$4 sm:$0xff]  }
 0x223   :  { %4653 = vmatprep.subr.bf16.mxu0 %v7500_v41  ;;  %v7578_v40 = vld [vmem:[#allocation6 + $0x4d4] ss:$40 sps:$4 sm:$0xff]   ;;  %v7573_v41 = vld [vmem:[#allocation6 + $0xec8] ss:$40 sps:$4 sm:$0xff]  }
 0x225   :  { %4572 = vmatpush1.bf16.msra.mxu1 %v7495_v44  ;;  %v7576_v44 = vld [vmem:[#allocation6 + $0x4d0] ss:$40 sps:$4 sm:$0xff]  }
 0x226   :  { %4654 = vmatpush1.bf16.msra.mxu0 %v7498_v45  ;;  %4573 = vmatprep.subr.bf16.mxu1 %v7503_v46  ;;  %v7581_v45 = vld [vmem:[#allocation6 + $0xf1c] ss:$40 sps:$4 sm:$0xff]  }
 0x227   :  { %4655 = vmatprep.subr.bf16.mxu0 %v7506_v47  ;;  %v7584_v46 = vld [vmem:[#allocation6 + $0x524] ss:$40 sps:$4 sm:$0xff]   ;;  %v7579_v47 = vld [vmem:[#allocation6 + $0xf18] ss:$40 sps:$4 sm:$0xff]  }
 0x229   :  { %4574 = vmatpush1.bf16.msra.mxu1 %v7501_v49  ;;  %v7582_v49 = vld [vmem:[#allocation6 + $0x520] ss:$40 sps:$4 sm:$0xff]  }
 0x22a   :  { %4656 = vmatpush1.bf16.msra.mxu0 %v7504_v50  ;;  %4575 = vmatprep.subr.bf16.mxu1 %v7509_v51  ;;  %v7587_v50 = vld [vmem:[#allocation6 + $0xf6c] ss:$40 sps:$4 sm:$0xff]  }
 0x22b   :  { %4657 = vmatprep.subr.bf16.mxu0 %v7512_v52  ;;  %v7590_v51 = vld [vmem:[#allocation6 + $0x574] ss:$40 sps:$4 sm:$0xff]   ;;  %v7585_v52 = vld [vmem:[#allocation6 + $0xf68] ss:$40 sps:$4 sm:$0xff]  }
 0x22d   :  { %4576 = vmatpush1.bf16.msra.mxu1 %v7507_v53  ;;  %v7588_v53 = vld [vmem:[#allocation6 + $0x570] ss:$40 sps:$4 sm:$0xff]  }
 0x22e   :  { %4658 = vmatpush1.bf16.msra.mxu0 %v7510_v62  ;;  %4577 = vmatprep.subr.bf16.mxu1 %v7515_v54  ;;  %v7593_v62 = vld [vmem:[#allocation6 + $0xfbc] ss:$40 sps:$4 sm:$0xff]  }
 0x22f   :  { %4659 = vmatprep.subr.bf16.mxu0 %v7518_v55  ;;  %v7596_v54 = vld [vmem:[#allocation6 + $0x5c4] ss:$40 sps:$4 sm:$0xff]   ;;  %v7591_v55 = vld [vmem:[#allocation6 + $0xfb8] ss:$40 sps:$4 sm:$0xff]  }
 0x231   :  { %4578 = vmatpush1.bf16.msra.mxu1 %v7513_v14  ;;  %v7594_v14 = vld [vmem:[#allocation6 + $0x5c0] ss:$40 sps:$4 sm:$0xff]  }
 0x232   :  { %4660 = vmatpush1.bf16.msra.mxu0 %v7516_v56  ;;  %4579 = vmatprep.subr.bf16.mxu1 %v7521_v57  ;;  %v7599_v56 = vld [vmem:[#allocation6 + $0x100c] ss:$40 sps:$4 sm:$0xff]   ;;  %v7597_v57 = vld [vmem:[#allocation6 + $0x1008] ss:$40 sps:$4 sm:$0xff]  }
 0x233   :  { %4661 = vmatprep.subr.bf16.mxu0 %v7524_v58  ;;  %v7600_v58 = vld [vmem:[#allocation6 + $0x610] ss:$40 sps:$4 sm:$0xff]  }
 0x235   :  { %4580 = vmatpush1.bf16.msra.mxu1 %v7519_v59  ;;  %v7605_v59 = vld [vmem:[#allocation6 + $0x105c] ss:$40 sps:$4 sm:$0xff]  }
 0x236   :  { %4662 = vmatpush1.bf16.msra.mxu0 %v7522_v60  ;;  %4581 = vmatprep.subr.bf16.mxu1 %v7527_v61  ;;  %v7608_v60 = vld [vmem:[#allocation6 + $0x664] ss:$40 sps:$4 sm:$0xff]   ;;  %v8002_v61 = vmov 1983009808  }
 0x237   :  { %4663 = vmatprep.subr.bf16.mxu0 %v7530_v0  ;;  %v4826_v0 = vunpack.c.l.s4 %v8002_v61 }
 0x239   :  { %4582 = vmatpush1.bf16.msra.mxu1 %v7525_v1  ;;  %v7606_v1 = vld [vmem:[#allocation6 + $0x660] ss:$40 sps:$4 sm:$0xff]  }
 0x23a   :  { %4664 = vmatpush1.bf16.msra.mxu0 %v7528_v2  ;;  %4583 = vmatprep.subr.bf16.mxu1 %v7533_v4  ;;  %v7611_v2 = vld [vmem:[#allocation6 + $0x10ac] ss:$40 sps:$4 sm:$0xff]  }
 0x23b   :  { %4665 = vmatprep.subr.bf16.mxu0 %v7536_v5  ;;  %v7614_v4 = vld [vmem:[#allocation6 + $0x6b4] ss:$40 sps:$4 sm:$0xff]   ;;  %v4827_v5 = vunpack.c.0.s8 %v4826_v0  ;;  %v7651_v0 = vld [vmem:[#allocation6 + $0x12d8] ss:$40 sps:$4 sm:$0xff]  }
 0x23d   :  { %4584 = vmatpush1.bf16.msra.mxu1 %v7531_v6  ;;  %v7609_v6 = vld [vmem:[#allocation6 + $0x10a8] ss:$40 sps:$4 sm:$0xff]  }
 0x23e   :  { %4666 = vmatpush1.bf16.msra.mxu0 %v7534_v7  ;;  %4585 = vmatprep.subr.bf16.mxu1 %v7539_v8  ;;  %v7612_v7 = vld [vmem:[#allocation6 + $0x6b0] ss:$40 sps:$4 sm:$0xff]   ;;  %v7617_v8 = vld [vmem:[#allocation6 + $0x10fc] ss:$40 sps:$4 sm:$0xff]  }
 0x23f   :  { %4667 = vmatprep.subr.bf16.mxu0 %v7542_v9  ;;  %v7620_v9 = vld [vmem:[#allocation6 + $0x704] ss:$40 sps:$4 sm:$0xff]  }
 0x241   :  { %4586 = vmatpush1.bf16.msra.mxu1 %v7537_v10  ;;  %v8176_v10 = vsub.s32 %v4827_v5, %v8094_v43  ;;  %v7657_v5 = vld [vmem:[#allocation6 + $0x1328] ss:$40 sps:$4 sm:$0xff]  }
 0x242   :  { %4668 = vmatpush1.bf16.msra.mxu0 %v7540_v11  ;;  %4587 = vmatprep.subr.bf16.mxu1 %v7545_v15 }
 0x243   :  { %4669 = vmatprep.subr.bf16.mxu0 %v7548_v16 }
 0x245   :  { %4588 = vmatpush1.bf16.msra.mxu1 %v7543_v17 }
 0x246   :  { %4670 = vmatpush1.bf16.msra.mxu0 %v7546_v18  ;;  %4589 = vmatprep.subr.bf16.mxu1 %v7551_v20  ;;  %v7615_v18 = vld [vmem:[#allocation6 + $0x10f8] ss:$40 sps:$4 sm:$0xff]  }
 0x247   :  { %4671 = vmatprep.subr.bf16.mxu0 %v7554_v21  ;;  %v7618_v20 = vld [vmem:[#allocation6 + $0x700] ss:$40 sps:$4 sm:$0xff]  }
 0x249   :  { %4590 = vmatpush1.bf16.msra.mxu1 %v7549_v22  ;;  %v7623_v22 = vld [vmem:[#allocation6 + $0x114c] ss:$40 sps:$4 sm:$0xff]  }
 0x24a   :  { %4672 = vmatpush1.bf16.msra.mxu0 %v7552_v24  ;;  %4591 = vmatprep.subr.bf16.mxu1 %v7557_v25  ;;  %v7626_v24 = vld [vmem:[#allocation6 + $0x754] ss:$40 sps:$4 sm:$0xff]   ;;  %v4831_v25 = vrot.slane %v4823_v12, %v8176_v10 }
 0x24b   :  { %4673 = vmatprep.subr.bf16.mxu0 %v7560_v26 }
 0x24d   :  { %4592 = vmatpush1.bf16.msra.mxu1 %v7555_v27  ;;  %v4886_v27 = vsub.s32 0, %v8094_v43 }
 0x24e   :  { %4674 = vmatpush1.bf16.msra.mxu0 %v7558_v28  ;;  %4593 = vmatprep.subr.bf16.mxu1 %v7563_v29  ;;  %v4890_v28 = vsub.s32 1, %v8094_v43  ;;  %v4894_v29 = vsub.s32 2, %v8094_v43 }
 0x24f   :  { %4675 = vmatprep.subr.bf16.mxu0 %v7566_v30  ;;  %v4898_v30 = vsub.s32 3, %v8094_v43 }
 0x251   :  { %4594 = vmatpush1.bf16.msra.mxu1 %v7561_v32 }
 0x252   :  { %4676 = vmatpush1.bf16.msra.mxu0 %v7564_v33  ;;  %4595 = vmatprep.subr.bf16.mxu1 %v7569_v34  ;;  %v7621_v33 = vld [vmem:[#allocation6 + $0x1148] ss:$40 sps:$4 sm:$0xff]  }
 0x253   :  { %4677 = vmatprep.subr.bf16.mxu0 %v7572_v35  ;;  %v7624_v34 = vld [vmem:[#allocation6 + $0x750] ss:$40 sps:$4 sm:$0xff]   ;;  %v8187_v35 = vld [vmem:[#allocation8] sm:$0xff] }
 0x254   :  { %v4887_v12 = vrot.slane %v8187_v35, %v4886_v27 }
 0x255   :  { %4596 = vmatpush1.bf16.msra.mxu1 %v7567_v37  ;;  %v4891_v37 = vrot.slane %v8187_v35, %v4890_v28 }
 0x256   :  { %4678 = vmatpush1.bf16.msra.mxu0 %v7570_v38  ;;  %4597 = vmatprep.subr.bf16.mxu1 %v7575_v39  ;;  %v4895_v38 = vrot.slane %v8187_v35, %v4894_v29  ;;  %v4899_v39 = vrot.slane %v8187_v35, %v4898_v30  ;;  %v7679_v29 = vld [vmem:[#allocation9] sm:$0xff]   ;;  %v7682_v30 = vld [vmem:[#allocation6 + $0xa74] ss:$40 sps:$4 sm:$0xff]  }
 0x257   :  { %4679 = vmatprep.subr.bf16.mxu0 %v7578_v40  ;;  %v7627_v40 = vld [vmem:[#allocation6 + $0x1198] ss:$40 sps:$4 sm:$0xff]  }
 0x259   :  { %4598 = vmatpush1.bf16.msra.mxu1 %v7573_v41  ;;  %v7630_v41 = vld [vmem:[#allocation6 + $0x7a0] ss:$40 sps:$4 sm:$0xff]  }
 0x25a   :  { %4680 = vmatpush1.bf16.msra.mxu0 %v7576_v44  ;;  %4608 = vmatprep.subr.bf16.mxu1 %v7581_v45  ;;  %v7635_v44 = vld [vmem:[#allocation6 + $0x11ec] ss:$40 sps:$4 sm:$0xff]  }
 0x25b   :  { %4690 = vmatprep.subr.bf16.mxu0 %v7584_v46  ;;  %v7638_v45 = vld [vmem:[#allocation6 + $0x7f4] ss:$40 sps:$4 sm:$0xff]   ;;  %v4924_v46 = vcombine.low %v4887_v12, %v4891_v37  ;;  %v7685_v37 = vld [vmem:[#allocation6 + $0xac0] ss:$40 sps:$4 sm:$0xff]  }
 0x25c   :  { %4600 = vmatmul.mubr.bf16.vlgmr.msra.gmra.mrb[8].mxu1 %v8105_v63  ;;  %v7688_v12 = vld [vmem:[#allocation9 + $0x50] sm:$0xff]  }
 0x25d   :  { %4682 = vmatmul.mubr.bf16.vlgmr.msra.gmra.mrb[8].mxu0 %v8114_v13  ;;  %4609 = vmatpush1.bf16.msra.mxu1 %v7579_v47  ;;  %v7602_v13 = vld [vmem:[#allocation6 + $0x614] ss:$40 sps:$4 sm:$0xff]   ;;  %v4925_v47 = vcombine.low %v4895_v38, %v4899_v39 }
 0x25e   :  { %4691 = vmatpush1.bf16.msra.mxu0 %v7582_v49  ;;  %4610 = vmatprep.subr.bf16.mxu1 %v7587_v50  ;;  %v7633_v49 = vld [vmem:[#allocation6 + $0x11e8] ss:$40 sps:$4 sm:$0xff]   ;;  %v7689_v38 = vld [vmem:[#allocation9 + $0x10] sm:$0xff]  }
 0x25f   :  { %4692 = vmatprep.subr.bf16.mxu0 %v7590_v51  ;;  %4640 = vmatprep.mubr.bf16.mxu1 %v8129_v31  ;;  %v7636_v50 = vld [vmem:[#allocation6 + $0x7f0] ss:$40 sps:$4 sm:$0xff]   ;;  %v7641_v51 = vld [vmem:[#allocation6 + $0x123c] ss:$40 sps:$4 sm:$0xff]  }
 0x260   :  { %4722 = vmatprep.mubr.bf16.mxu0 %v8109_v3  ;;  %v7603_v3 = vld [vmem:[#allocation6 + $0x1058] ss:$40 sps:$4 sm:$0xff]   ;;  %v7692_v39 = vld [vmem:[#allocation6 + $0xb14] ss:$40 sps:$4 sm:$0xff]  }
 0x261   :  { %4611 = vmatpush1.bf16.msra.mxu1 %v7585_v52  ;;  %v7644_v52 = vld [vmem:[#allocation6 + $0x844] ss:$40 sps:$4 sm:$0xff]  }
 0x262   :  { %4693 = vmatpush1.bf16.msra.mxu0 %v7588_v53  ;;  %4612 = vmatprep.subr.bf16.mxu1 %v7593_v62  ;;  %v4932_v53 = vrot.slane %v4924_v46, %v8176_v10  ;;  %v4939_v62 = vrot.slane %v4925_v47, %v8176_v10  ;;  %v7695_v46 = vld [vmem:[#allocation6 + $0xb60] ss:$40 sps:$4 sm:$0xff]   ;;  %v7702_v47 = vld [vmem:[#allocation6 + $0xbb4] ss:$40 sps:$4 sm:$0xff]  }
 0x263   :  { %4694 = vmatprep.subr.bf16.mxu0 %v7596_v54  ;;  %v7639_v54 = vld [vmem:[#allocation6 + $0x1238] ss:$40 sps:$4 sm:$0xff]  }
 0x265   :  { %4613 = vmatpush1.bf16.msra.mxu1 %v7591_v55  ;;  %v7642_v55 = vld [vmem:[#allocation6 + $0x840] ss:$40 sps:$4 sm:$0xff]  }
 0x266   :  { %4695 = vmatpush1.bf16.msra.mxu0 %v7594_v14  ;;  %4614 = vmatprep.subr.bf16.mxu1 %v7599_v56  ;;  %v7647_v14 = vld [vmem:[#allocation6 + $0x128c] ss:$40 sps:$4 sm:$0xff]  }
 0x267   :  { %4696 = vmatprep.subr.bf16.mxu0 %v7602_v13  ;;  %v7650_v56 = vld [vmem:[#allocation6 + $0x894] ss:$40 sps:$4 sm:$0xff]   ;;  %v4940_v13 = vcombine.low %v4932_v53, %v4939_v62 }
 0x268   :  { %v7708_v53 = vld [vmem:[#allocation9 + $0x70] sm:$0xff]  }
 0x269   :  { %4615 = vmatpush1.bf16.msra.mxu1 %v7597_v57  ;;  %v7645_v57 = vld [vmem:[#allocation6 + $0x1288] ss:$40 sps:$4 sm:$0xff]  }
 0x26a   :  { %4697 = vmatpush1.bf16.msra.mxu0 %v7600_v58  ;;  %4616 = vmatprep.subr.bf16.mxu1 %v7605_v59  ;;  %v7648_v58 = vld [vmem:[#allocation6 + $0x890] ss:$40 sps:$4 sm:$0xff]   ;;  %v7653_v59 = vld [vmem:[#allocation6 + $0x12dc] ss:$40 sps:$4 sm:$0xff]  }
 0x26b   :  { %4698 = vmatprep.subr.bf16.mxu0 %v7608_v60  ;;  %v7656_v60 = vld [vmem:[#allocation6 + $0x8e4] ss:$40 sps:$4 sm:$0xff]  }
 0x26d   :  { %4617 = vmatpush1.bf16.msra.mxu1 %v7603_v3  ;;  %v7654_v3 = vld [vmem:[#allocation6 + $0x8e0] ss:$40 sps:$4 sm:$0xff]  }
 0x26e   :  { %4699 = vmatpush1.bf16.msra.mxu0 %v7606_v1  ;;  %4618 = vmatprep.subr.bf16.mxu1 %v7611_v2  ;;  %v7659_v1 = vld [vmem:[#allocation6 + $0x132c] ss:$40 sps:$4 sm:$0xff]  }
 0x26f   :  { %4700 = vmatprep.subr.bf16.mxu0 %v7614_v4  ;;  %v4314_v11 = vpop.f32.mrb[4].mxu1  ;;  %v7662_v2 = vld [vmem:[#allocation6 + $0x934] ss:$40 sps:$4 sm:$0xff]  }
 0x270   :  { %v4316_v15 = vpop.f32.mrb[5].mxu1 }
 0x271   :  { %v4824_v16 = vcombine.low %v4314_v11, %v4316_v15  ;;  %v4318_v17 = vpop.f32.mrb[6].mxu1  ;;  %4619 = vmatpush1.bf16.msra.mxu1 %v7609_v6  ;;  %v7660_v6 = vld [vmem:[#allocation6 + $0x930] ss:$40 sps:$4 sm:$0xff]   ;;  %v7666_v15 = vld [vmem:[#allocation6 + $0x980] ss:$40 sps:$4 sm:$0xff]  }
 0x272   :  { %4701 = vmatpush1.bf16.msra.mxu0 %v7612_v7  ;;  %v4319_v21 = vpop.f32.mrb[7].mxu1  ;;  %4620 = vmatprep.subr.bf16.mxu1 %v7617_v8  ;;  %v7665_v7 = vld [vmem:[#allocation6 + $0x137c] ss:$40 sps:$4 sm:$0xff]   ;;  %v7663_v11 = vld [vmem:[#allocation6 + $0x1378] ss:$40 sps:$4 sm:$0xff]  }
 0x273   :  { %4702 = vmatprep.subr.bf16.mxu0 %v7620_v9  ;;  %v4838_v26 = vrot.slane %v4824_v16, %v8176_v10  ;;  %v7668_v8 = vld [vmem:[#allocation6 + $0x984] ss:$40 sps:$4 sm:$0xff]   ;;  %v7674_v17 = vld [vmem:[#allocation6 + $0x9d4] ss:$40 sps:$4 sm:$0xff]   ;;  %v7672_v21 = vld [vmem:[#allocation6 + $0x9d0] ss:$40 sps:$4 sm:$0xff]  }
 0x274   :  { %v7671_v16 = vld [vmem:[#allocation6 + $0x13cc] ss:$40 sps:$4 sm:$0xff]  }
 0x275   :  { %v4839_v32 = vcombine.low %v4831_v25, %v4838_v26  ;;  %4621 = vmatpush1.bf16.msra.mxu1 %v7615_v18  ;;  %v7675_v26 = vld [vmem:[#allocation6 + $0xa20] ss:$40 sps:$4 sm:$0xff]  }
 0x276   :  { %4703 = vmatpush1.bf16.msra.mxu0 %v7618_v20  ;;  %4622 = vmatprep.subr.bf16.mxu1 %v7623_v22  ;;  %v7669_v20 = vld [vmem:[#allocation6 + $0x13c8] ss:$40 sps:$4 sm:$0xff]   ;;  %v7677_v22 = vld [vmem:[#allocation6 + $0xa24] ss:$40 sps:$4 sm:$0xff]  }
 0x277   :  { %4704 = vmatprep.subr.bf16.mxu0 %v7626_v24  ;;  %v4969_v61 = vadd.f32 %v4940_v13, %v4839_v32  ;;  %v7678_v24 = vld [vmem:[#allocation9 + $0x40] sm:$0xff]   ;;  %v7683_v32 = vld [vmem:[#allocation9 + $0x48] sm:$0xff]  }
 0x279   :  { %4623 = vmatpush1.bf16.msra.mxu1 %v7621_v33  ;;  %v4972_v4 = vmax.f32 %v4969_v61, 0.0 }
 0x27a   :  { %4705 = vmatpush1.bf16.msra.mxu0 %v7624_v34  ;;  %4624 = vmatprep.subr.bf16.mxu1 %v7629_v42  ;;  %v7680_v34 = vld [vmem:[#allocation6 + $0xa70] ss:$40 sps:$4 sm:$0xff]  }
 0x27b   :  { %4706 = vmatprep.subr.bf16.mxu0 %v7632_v48  ;;  %v8199_v9 = vmin.f32 %v4972_v4, 6.0  ;;  %v7684_v42 = vld [vmem:[#allocation9 + $0x8] sm:$0xff]   ;;  %v7687_v48 = vld [vmem:[#allocation6 + $0xac4] ss:$40 sps:$4 sm:$0xff]  }
 0x27c   :  { %v7723_v4 = vld [vmem:[#allocation9 + $0xc8] sm:$0xff]  }
 0x27d   :  { %4625 = vmatpush1.bf16.msra.mxu1 %v7627_v40  ;;  %v8203_v18 = vrot.slane %v8199_v9, %v8176_v10  ;;  %v7690_v40 = vld [vmem:[#allocation6 + $0xb10] ss:$40 sps:$4 sm:$0xff]   ;;  %v4981_v62 = vcombine.high %v8199_v9, %v8199_v9 }
 0x27e   :  { %4707 = vmatpush1.bf16.msra.mxu0 %v7630_v41  ;;  %4626 = vmatprep.subr.bf16.mxu1 %v7635_v44  ;;  %v7694_v41 = vld [vmem:[#allocation9 + $0x18] sm:$0xff]   ;;  %v7728_v9 = vld [vmem:[#allocation9 + $0xd0] sm:$0xff]  }
 0x27f   :  { %4708 = vmatprep.subr.bf16.mxu0 %v7638_v45  ;;  %v4996_v25 = vcombine.high %v8203_v18, %v8203_v18  ;;  %v7697_v44 = vld [vmem:[#allocation6 + $0xb64] ss:$40 sps:$4 sm:$0xff]   ;;  %v8213_v13 = vrot.slane %v4981_v62, %v8176_v10  ;;  %v7767_v62 = vld [vmem:[#allocation6 + $0x1060] ss:$40 sps:$4 sm:$0xff]  }
 0x280   :  { %v7698_v45 = vld [vmem:[#allocation9 + $0x60] sm:$0xff]  }
 0x281   :  { %4627 = vmatpush1.bf16.msra.mxu1 %v7633_v49  ;;  %v5034_v33 = vpack.c.bf16 %v4996_v25, %v4996_v25  ;;  %v7703_v49 = vld [vmem:[#allocation9 + $0x68] sm:$0xff]   ;;  %v4997_v61 = vcombine.high %v8213_v13, %v8213_v13  ;;  %v7739_v25 = vld [vmem:[#allocation9 + $0xa0] sm:$0xff]  }
 0x282   :  { %4709 = vmatpush1.bf16.msra.mxu0 %v7636_v50  ;;  %4628 = vmatprep.subr.bf16.mxu1 %v7641_v51  ;;  %v7700_v50 = vld [vmem:[#allocation6 + $0xbb0] ss:$40 sps:$4 sm:$0xff]  }
 0x283   :  { %4710 = vmatprep.subr.bf16.mxu0 %v7644_v52  ;;  %v7704_v51 = vld [vmem:[#allocation9 + $0x28] sm:$0xff]   ;;  %v7707_v52 = vld [vmem:[#allocation6 + $0xc04] ss:$40 sps:$4 sm:$0xff]  }
 0x285   :  { %4629 = vmatpush1.bf16.msra.mxu1 %v7639_v54  ;;  %v7705_v54 = vld [vmem:[#allocation6 + $0xc00] ss:$40 sps:$4 sm:$0xff]  }
 0x286   :  { %4711 = vmatpush1.bf16.msra.mxu0 %v7642_v55  ;;  %4630 = vmatprep.subr.bf16.mxu1 %v7647_v14  ;;  %v7709_v55 = vld [vmem:[#allocation9 + $0x30] sm:$0xff]  }
 0x287   :  { %4712 = vmatprep.subr.bf16.mxu0 %v7650_v56  ;;  %v7712_v14 = vld [vmem:[#allocation6 + $0xc54] ss:$40 sps:$4 sm:$0xff]   ;;  %v7713_v56 = vld [vmem:[#allocation9 + $0x78] sm:$0xff]  }
 0x289   :  { %4631 = vmatpush1.bf16.msra.mxu1 %v7645_v57  ;;  %v7710_v57 = vld [vmem:[#allocation6 + $0xc50] ss:$40 sps:$4 sm:$0xff]  }
 0x28a   :  { %4713 = vmatpush1.bf16.msra.mxu0 %v7648_v58  ;;  %4632 = vmatprep.subr.bf16.mxu1 %v7653_v59  ;;  %v7714_v58 = vld [vmem:[#allocation9 + $0x38] sm:$0xff]  }
 0x28b   :  { %4714 = vmatprep.subr.bf16.mxu0 %v7656_v60  ;;  %v7717_v59 = vld [vmem:[#allocation6 + $0xca4] ss:$40 sps:$4 sm:$0xff]  }
 0x28c   :  { %v7718_v60 = vld [vmem:[#allocation9 + $0xc0] sm:$0xff]  }
 0x28d   :  { %4633 = vmatpush1.bf16.msra.mxu1 %v7651_v0  ;;  %v7715_v0 = vld [vmem:[#allocation6 + $0xca0] ss:$40 sps:$4 sm:$0xff]  }
 0x28e   :  { %4715 = vmatpush1.bf16.msra.mxu0 %v7654_v3  ;;  %4634 = vmatprep.subr.bf16.mxu1 %v7659_v1  ;;  %v7719_v3 = vld [vmem:[#allocation9 + $0x80] sm:$0xff]   ;;  %v5033_v1 = vpack.c.bf16 %v8203_v18, %v8203_v18 }
 0x28f   :  { %4716 = vmatprep.subr.bf16.mxu0 %v7662_v2  ;;  %v7722_v2 = vld [vmem:[#allocation6 + $0xcf4] ss:$40 sps:$4 sm:$0xff]   ;;  %v7730_v18 = vld [vmem:[#allocation6 + $0xd90] ss:$40 sps:$4 sm:$0xff]  }
 0x291   :  { %4635 = vmatpush1.bf16.msra.mxu1 %v7657_v5  ;;  %v5036_v5 = vpack.c.bf16 %v4997_v61, %v4997_v61  ;;  %v7773_v61 = vld [vmem:[#allocation6 + $0x1100] ss:$40 sps:$4 sm:$0xff]  }
 0x292   :  { %4717 = vmatpush1.bf16.msra.mxu0 %v7660_v6  ;;  %4636 = vmatprep.subr.bf16.mxu1 %v7665_v7  ;;  %v7720_v6 = vld [vmem:[#allocation6 + $0xcf0] ss:$40 sps:$4 sm:$0xff]  }
 0x293   :  { %4718 = vmatprep.subr.bf16.mxu0 %v7668_v8  ;;  %v7724_v7 = vld [vmem:[#allocation9 + $0x88] sm:$0xff]   ;;  %v7727_v8 = vld [vmem:[#allocation6 + $0xd44] ss:$40 sps:$4 sm:$0xff]  }
 0x295   :  { %4637 = vmatpush1.bf16.msra.mxu1 %v7663_v11  ;;  %v7725_v11 = vld [vmem:[#allocation6 + $0xd40] ss:$40 sps:$4 sm:$0xff]  }
 0x296   :  { %4719 = vmatpush1.bf16.msra.mxu0 %v7666_v15  ;;  %4638 = vmatprep.subr.bf16.mxu1 %v7671_v16  ;;  %v7729_v15 = vld [vmem:[#allocation9 + $0x90] sm:$0xff]  }
 0x297   :  { %4720 = vmatprep.subr.bf16.mxu0 %v7674_v17  ;;  %v7732_v16 = vld [vmem:[#allocation6 + $0xd94] ss:$40 sps:$4 sm:$0xff]   ;;  %v7733_v17 = vld [vmem:[#allocation9 + $0xd8] sm:$0xff]  }
 0x299   :  { %4639 = vmatpush1.bf16.msra.mxu1 %v7669_v20  ;;  %v7734_v20 = vld [vmem:[#allocation9 + $0x98] sm:$0xff]  }
 0x29a   :  { %4721 = vmatpush1.bf16.msra.mxu0 %v7672_v21  ;;  %6629 = vmatprep.subr.bf16.mxu1 %v7678_v24  ;;  %v7737_v21 = vld [vmem:[#allocation6 + $0xde4] ss:$40 sps:$4 sm:$0xff]   ;;  %v7735_v24 = vld [vmem:[#allocation6 + $0xde0] ss:$40 sps:$4 sm:$0xff]  }
 0x29b   :  { %4731 = vmatprep.subr.bf16.mxu0 %v7677_v22  ;;  %v7738_v22 = vld [vmem:[#allocation9 + $0xe0] sm:$0xff]  }
 0x29c   :  { %4641 = vmatmul.mubr.bf16.vlgmr.msra.gmra.mrb[8].mxu1 %v8137_v36 }
 0x29d   :  { %4723 = vmatmul.mubr.bf16.vlgmr.msra.gmra.mrb[8].mxu0 %v8118_v19  ;;  %6630 = vmatpush3.bf16.msra.mxu1 %v7679_v29  ;;  %v7693_v19 = vld [vmem:[#allocation9 + $0x58] sm:$0xff]   ;;  %v7743_v29 = vld [vmem:[#allocation9 + $0xe8] sm:$0xff]  }
 0x29e   :  { %4732 = vmatpush1.bf16.msra.mxu0 %v7675_v26  ;;  %5722 = vmatprep.mubr.bf16.mxu1 %v5034_v33  ;;  %v7742_v26 = vld [vmem:[#allocation6 + $0xe34] ss:$40 sps:$4 sm:$0xff]   ;;  %v7747_v33 = vld [vmem:[#allocation6 + $0xe84] ss:$40 sps:$4 sm:$0xff]  }
 0x29f   :  { %4733 = vmatprep.subr.bf16.mxu0 %v7682_v30  ;;  %6631 = vmatprep.subr.bf16.mxu1 %v7683_v32  ;;  %v7740_v30 = vld [vmem:[#allocation6 + $0xe30] ss:$40 sps:$4 sm:$0xff]  }
 0x2a0   :  { %4763 = vmatprep.mubr.bf16.mxu0 %v8121_v23  ;;  %v7699_v23 = vld [vmem:[#allocation9 + $0x20] sm:$0xff]   ;;  %v7744_v32 = vld [vmem:[#allocation9 + $0xa8] sm:$0xff]  }
 0x2a1   :  { %6632 = vmatpush3.bf16.msra.mxu1 %v7684_v42  ;;  %v7745_v42 = vld [vmem:[#allocation6 + $0xe80] ss:$40 sps:$4 sm:$0xff]  }
 0x2a2   :  { %4734 = vmatpush1.bf16.msra.mxu0 %v7680_v34  ;;  %6633 = vmatprep.subr.bf16.mxu1 %v7688_v12  ;;  %v7748_v34 = vld [vmem:[#allocation9 + $0xf0] sm:$0xff]  }
 0x2a3   :  { %4735 = vmatprep.subr.bf16.mxu0 %v7687_v48  ;;  %v7749_v48 = vld [vmem:[#allocation9 + $0xb0] sm:$0xff]  }
 0x2a4   :  { %v7752_v12 = vld [vmem:[#allocation6 + $0xed4] ss:$40 sps:$4 sm:$0xff]  }
 0x2a5   :  { %6634 = vmatpush3.bf16.msra.mxu1 %v7689_v38  ;;  %v7750_v38 = vld [vmem:[#allocation6 + $0xed0] ss:$40 sps:$4 sm:$0xff]  }
 0x2a6   :  { %4736 = vmatpush1.bf16.msra.mxu0 %v7685_v37  ;;  %6635 = vmatprep.subr.bf16.mxu1 %v7693_v19  ;;  %v7753_v37 = vld [vmem:[#allocation9 + $0xf8] sm:$0xff]  }
 0x2a7   :  { %4737 = vmatprep.subr.bf16.mxu0 %v7692_v39  ;;  %v7754_v39 = vld [vmem:[#allocation9 + $0xb8] sm:$0xff]  }
 0x2a8   :  { %v7757_v19 = vld [vmem:[#allocation6 + $0xf24] ss:$40 sps:$4 sm:$0xff]  }
 0x2a9   :  { %6636 = vmatpush3.bf16.msra.mxu1 %v7694_v41  ;;  %v7755_v41 = vld [vmem:[#allocation6 + $0xf20] ss:$40 sps:$4 sm:$0xff]  }
 0x2aa   :  { %4738 = vmatpush1.bf16.msra.mxu0 %v7690_v40  ;;  %6637 = vmatprep.subr.bf16.mxu1 %v7698_v45  ;;  %v7803_v40 = vld [vmem:[#allocation9 + $0x140] sm:$0xff]   ;;  %v7760_v45 = vld [vmem:[#allocation6 + $0xf74] ss:$40 sps:$4 sm:$0xff]  }
 0x2ab   :  { %4739 = vmatprep.subr.bf16.mxu0 %v7697_v44  ;;  %v5035_v44 = vpack.c.bf16 %v8213_v13, %v8213_v13 }
 0x2ad   :  { %6638 = vmatpush3.bf16.msra.mxu1 %v7699_v23  ;;  %v7758_v23 = vld [vmem:[#allocation6 + $0xf70] ss:$40 sps:$4 sm:$0xff]  }
 0x2ae   :  { %4740 = vmatpush1.bf16.msra.mxu0 %v7695_v46  ;;  %6639 = vmatprep.subr.bf16.mxu1 %v7703_v49  ;;  %v7804_v46 = vld [vmem:[#allocation9 + $0x100] sm:$0xff]  }
 0x2af   :  { %4741 = vmatprep.subr.bf16.mxu0 %v7702_v47  ;;  %v7763_v47 = vld [vmem:[#allocation6 + $0xfc4] ss:$40 sps:$4 sm:$0xff]   ;;  %v7761_v49 = vld [vmem:[#allocation6 + $0xfc0] ss:$40 sps:$4 sm:$0xff]  }
 0x2b1   :  { %6640 = vmatpush3.bf16.msra.mxu1 %v7704_v51  ;;  %v7764_v51 = vld [vmem:[#allocation6 + $0x1010] ss:$40 sps:$4 sm:$0xff]  }
 0x2b2   :  { %4742 = vmatpush1.bf16.msra.mxu0 %v7700_v50  ;;  %6641 = vmatprep.subr.bf16.mxu1 %v7708_v53  ;;  %v7766_v50 = vld [vmem:[#allocation6 + $0x1014] ss:$40 sps:$4 sm:$0xff]  }
 0x2b3   :  { %4743 = vmatprep.subr.bf16.mxu0 %v7707_v52  ;;  %v7769_v52 = vld [vmem:[#allocation6 + $0x1064] ss:$40 sps:$4 sm:$0xff]   ;;  %v7805_v53 = vld [vmem:[#allocation9 + $0x148] sm:$0xff]  }
 0x2b5   :  { %6642 = vmatpush3.bf16.msra.mxu1 %v7709_v55  ;;  %v7770_v55 = vld [vmem:[#allocation6 + $0x10b0] ss:$40 sps:$4 sm:$0xff]  }
 0x2b6   :  { %4744 = vmatpush1.bf16.msra.mxu0 %v7705_v54  ;;  %6643 = vmatprep.subr.bf16.mxu1 %v7713_v56  ;;  %v7806_v54 = vld [vmem:[#allocation9 + $0x108] sm:$0xff]   ;;  %v7775_v56 = vld [vmem:[#allocation6 + $0x1104] ss:$40 sps:$4 sm:$0xff]  }
 0x2b7   :  { %4745 = vmatprep.subr.bf16.mxu0 %v7712_v14  ;;  %v7808_v14 = vld [vmem:[#allocation9 + $0x110] sm:$0xff]  }
 0x2b9   :  { %6644 = vmatpush3.bf16.msra.mxu1 %v7714_v58  ;;  %v7809_v58 = vld [vmem:[#allocation9 + $0x158] sm:$0xff]  }
 0x2ba   :  { %4746 = vmatpush1.bf16.msra.mxu0 %v7710_v57  ;;  %6651 = vmatprep.subr.bf16.mxu1 %v7718_v60 }
 0x2bb   :  { %4747 = vmatprep.subr.bf16.mxu0 %v7717_v59 }
 0x2bc   :  { %5723 = vmatmul.mubr.bf16.vlgmr.msra.gmra.mrb[12].mxu1 %v5033_v1  ;;  %v7778_v1 = vld [vmem:[#allocation6 + $0x1154] ss:$40 sps:$4 sm:$0xff]  }
 0x2bd   :  { %6652 = vmatpush3.bf16.msra.mxu1 %v7719_v3  ;;  %5762 = vmatprep.mubr.bf16.mxu1 %v5036_v5  ;;  %v7812_v5 = vld [vmem:[#allocation9 + $0x120] sm:$0xff]  }
 0x2be   :  { %4748 = vmatpush1.bf16.msra.mxu0 %v7715_v0  ;;  %6653 = vmatprep.subr.bf16.mxu1 %v7723_v4  ;;  %v7810_v0 = vld [vmem:[#allocation9 + $0x118] sm:$0xff]   ;;  %v7776_v4 = vld [vmem:[#allocation6 + $0x1150] ss:$40 sps:$4 sm:$0xff]  }
 0x2bf   :  { %4749 = vmatprep.subr.bf16.mxu0 %v7722_v2  ;;  %v7811_v2 = vld [vmem:[#allocation9 + $0x160] sm:$0xff]  }
 0x2c1   :  { %6654 = vmatpush3.bf16.msra.mxu1 %v7724_v7  ;;  %v7813_v7 = vld [vmem:[#allocation9 + $0x168] sm:$0xff]  }
 0x2c2   :  { %4750 = vmatpush1.bf16.msra.mxu0 %v7720_v6  ;;  %6655 = vmatprep.subr.bf16.mxu1 %v7728_v9  ;;  %v7781_v6 = vld [vmem:[#allocation6 + $0x11a4] ss:$40 sps:$4 sm:$0xff]   ;;  %v7814_v9 = vld [vmem:[#allocation9 + $0x128] sm:$0xff]  }
 0x2c3   :  { %4751 = vmatprep.subr.bf16.mxu0 %v7727_v8  ;;  %v7779_v8 = vld [vmem:[#allocation6 + $0x11a0] ss:$40 sps:$4 sm:$0xff]  }
 0x2c5   :  { %6656 = vmatpush3.bf16.msra.mxu1 %v7729_v15  ;;  %v7784_v15 = vld [vmem:[#allocation6 + $0x11f4] ss:$40 sps:$4 sm:$0xff]  }
 0x2c6   :  { %4752 = vmatpush1.bf16.msra.mxu0 %v7725_v11  ;;  %6657 = vmatprep.subr.bf16.mxu1 %v7733_v17  ;;  %v7815_v11 = vld [vmem:[#allocation9 + $0x170] sm:$0xff]   ;;  %v7817_v17 = vld [vmem:[#allocation9 + $0x178] sm:$0xff]  }
 0x2c7   :  { %4753 = vmatprep.subr.bf16.mxu0 %v7732_v16  ;;  %v7816_v16 = vld [vmem:[#allocation9 + $0x130] sm:$0xff]  }
 0x2c9   :  { %6658 = vmatpush3.bf16.msra.mxu1 %v7734_v20  ;;  %v7787_v20 = vld [vmem:[#allocation6 + $0x1244] ss:$40 sps:$4 sm:$0xff]  }
 0x2ca   :  { %4754 = vmatpush1.bf16.msra.mxu0 %v7730_v18  ;;  %6659 = vmatprep.subr.bf16.mxu1 %v7738_v22  ;;  %v7782_v18 = vld [vmem:[#allocation6 + $0x11f0] ss:$40 sps:$4 sm:$0xff]   ;;  %v7785_v22 = vld [vmem:[#allocation6 + $0x1240] ss:$40 sps:$4 sm:$0xff]  }
 0x2cb   :  { %4755 = vmatprep.subr.bf16.mxu0 %v7737_v21  ;;  %v7818_v21 = vld [vmem:[#allocation9 + $0x138] sm:$0xff]  }
 0x2cd   :  { %6660 = vmatpush3.bf16.msra.mxu1 %v7739_v25  ;;  %v7819_v25 = vld [vmem:[#allocation9 + $0x1c0] sm:$0xff]  }
 0x2ce   :  { %4756 = vmatpush1.bf16.msra.mxu0 %v7735_v24  ;;  %6661 = vmatprep.subr.bf16.mxu1 %v7743_v29  ;;  %v7790_v24 = vld [vmem:[#allocation6 + $0x1294] ss:$40 sps:$4 sm:$0xff]   ;;  %v7793_v29 = vld [vmem:[#allocation6 + $0x12e4] ss:$40 sps:$4 sm:$0xff]  }
 0x2cf   :  { %4757 = vmatprep.subr.bf16.mxu0 %v7742_v26  ;;  %v7788_v26 = vld [vmem:[#allocation6 + $0x1290] ss:$40 sps:$4 sm:$0xff]  }
 0x2d1   :  { %6662 = vmatpush3.bf16.msra.mxu1 %v7744_v32  ;;  %v7796_v32 = vld [vmem:[#allocation6 + $0x1334] ss:$40 sps:$4 sm:$0xff]  }
 0x2d2   :  { %4758 = vmatpush1.bf16.msra.mxu0 %v7740_v30  ;;  %6663 = vmatprep.subr.bf16.mxu1 %v7748_v34  ;;  %v7791_v30 = vld [vmem:[#allocation6 + $0x12e0] ss:$40 sps:$4 sm:$0xff]   ;;  %v7799_v34 = vld [vmem:[#allocation6 + $0x1384] ss:$40 sps:$4 sm:$0xff]  }
 0x2d3   :  { %4759 = vmatprep.subr.bf16.mxu0 %v7747_v33  ;;  %v7794_v33 = vld [vmem:[#allocation6 + $0x1330] ss:$40 sps:$4 sm:$0xff]  }
 0x2d5   :  { %6664 = vmatpush3.bf16.msra.mxu1 %v7749_v48  ;;  %v7802_v48 = vld [vmem:[#allocation6 + $0x13d4] ss:$40 sps:$4 sm:$0xff]  }
 0x2d6   :  { %4760 = vmatpush1.bf16.msra.mxu0 %v7745_v42  ;;  %6665 = vmatprep.subr.bf16.mxu1 %v7753_v37  ;;  %v7797_v42 = vld [vmem:[#allocation6 + $0x1380] ss:$40 sps:$4 sm:$0xff]   ;;  %v4902_v37 = vsub.s32 4, %v8094_v43 }
 0x2d7   :  { %4761 = vmatprep.subr.bf16.mxu0 %v7752_v12  ;;  %v7800_v12 = vld [vmem:[#allocation6 + $0x13d0] ss:$40 sps:$4 sm:$0xff]  }
 0x2d9   :  { %6666 = vmatpush3.bf16.msra.mxu1 %v7754_v39  ;;  %v4910_v39 = vsub.s32 6, %v8094_v43 }
 0x2da   :  { %4762 = vmatpush1.bf16.msra.mxu0 %v7750_v38  ;;  %6673 = vmatprep.subr.bf16.mxu1 %v7803_v40  ;;  %v4906_v38 = vsub.s32 5, %v8094_v43  ;;  %v4903_v40 = vrot.slane %v8187_v35, %v4902_v37  ;;  %v6548_v37 = vld [vmem:[#allocation11] ss:$0 sm:$0xff] }
 0x2db   :  { %4772 = vmatprep.subr.bf16.mxu0 %v7757_v19  ;;  %v4914_v19 = vsub.s32 7, %v8094_v43 }
 0x2dc   :  { %5763 = vmatmul.mubr.bf16.vlgmr.msra.gmra.mrb[16].mxu1 %v5035_v44  ;;  %v4911_v44 = vrot.slane %v8187_v35, %v4910_v39  ;;  %v7842_v39 = vld [vmem:[#allocation9 + $0x218] sm:$0xff]  }
 0x2dd   :  { %4764 = vmatmul.mubr.bf16.vlgmr.msra.gmra.mrb[8].mxu0 %v8105_v63  ;;  %6674 = vmatpush3.bf16.msra.mxu1 %v7804_v46  ;;  %v7772_v63 = vld [vmem:[#allocation6 + $0x10b4] ss:$40 sps:$4 sm:$0xff]  }
 0x2de   :  { %4773 = vmatpush1.bf16.msra.mxu0 %v7755_v41  ;;  %4804 = vmatprep.mubr.bf16.mxu0 %v8129_v31  ;;  %v7807_v31 = vld [vmem:[#allocation9 + $0x150] sm:$0xff]   ;;  %v4907_v41 = vrot.slane %v8187_v35, %v4906_v38 }
 0x2df   :  { %4774 = vmatprep.subr.bf16.mxu0 %v7760_v45  ;;  %6675 = vmatprep.subr.bf16.mxu1 %v7805_v53  ;;  %v4915_v45 = vrot.slane %v8187_v35, %v4914_v19 }
 0x2e0   :  { %v4941_v46 = vcombine.low %v4903_v40, %v4907_v41  ;;  %v7843_v40 = vld [vmem:[#allocation9 + $0x260] sm:$0xff]  }
 0x2e1   :  { %6676 = vmatpush3.bf16.msra.mxu1 %v7806_v54 }
 0x2e2   :  { %4775 = vmatpush1.bf16.msra.mxu0 %v7758_v23  ;;  %6677 = vmatprep.subr.bf16.mxu1 %v7807_v31  ;;  %v4942_v23 = vcombine.low %v4911_v44, %v4915_v45 }
 0x2e3   :  { %4776 = vmatprep.subr.bf16.mxu0 %v7763_v47 }
 0x2e5   :  { %6678 = vmatpush3.bf16.msra.mxu1 %v7808_v14 }
 0x2e6   :  { %4777 = vmatpush1.bf16.msra.mxu0 %v7761_v49  ;;  %6679 = vmatprep.subr.bf16.mxu1 %v7809_v58 }
 0x2e7   :  { %4778 = vmatprep.subr.bf16.mxu0 %v7766_v50 }
 0x2e9   :  { %6680 = vmatpush3.bf16.msra.mxu1 %v7810_v0 }
 0x2ea   :  { %4779 = vmatpush1.bf16.msra.mxu0 %v7764_v51  ;;  %6681 = vmatprep.subr.bf16.mxu1 %v7811_v2  ;;  %v4949_v51 = vrot.slane %v4941_v46, %v8176_v10 }
 0x2eb   :  { %4780 = vmatprep.subr.bf16.mxu0 %v7769_v52  ;;  %v4956_v52 = vrot.slane %v4942_v23, %v8176_v10 }
 0x2ed   :  { %6682 = vmatpush3.bf16.msra.mxu1 %v7812_v5  ;;  %v4957_v35 = vcombine.low %v4949_v51, %v4956_v52  ;;  %v7824_v5 = vld [vmem:[#allocation9 + $0x190] sm:$0xff]   ;;  %v7849_v52 = vld [vmem:[#allocation9 + $0x278] sm:$0xff]  }
 0x2ee   :  { %4781 = vmatpush1.bf16.msra.mxu0 %v7767_v62  ;;  %6683 = vmatprep.subr.bf16.mxu1 %v7813_v7  ;;  %v7848_v51 = vld [vmem:[#allocation9 + $0x230] sm:$0xff]  }
 0x2ef   :  { %4782 = vmatprep.subr.bf16.mxu0 %v7772_v63 }
 0x2f0   :  { %v8223_v13 = vpop.f32.mrb[4].mxu0 }
 0x2f1   :  { %v8225_v57 = vpop.f32.mrb[5].mxu0  ;;  %6684 = vmatpush3.bf16.msra.mxu1 %v7814_v9 }
 0x2f2   :  { %v4840_v59 = vcombine.low %v8223_v13, %v8225_v57  ;;  %v4482_v60 = vpop.f32.mrb[6].mxu0  ;;  %4783 = vmatpush1.bf16.msra.mxu0 %v7770_v55  ;;  %6685 = vmatprep.subr.bf16.mxu1 %v7815_v11  ;;  %v7822_v57 = vld [vmem:[#allocation9 + $0x188] sm:$0xff]   ;;  %v7827_v11 = vld [vmem:[#allocation9 + $0x1e0] sm:$0xff]  }
 0x2f3   :  { %v4483_v3 = vpop.f32.mrb[7].mxu0  ;;  %4784 = vmatprep.subr.bf16.mxu0 %v7775_v56 }
 0x2f4   :  { %v4848_v62 = vrot.slane %v4840_v59, %v8176_v10  ;;  %v7820_v3 = vld [vmem:[#allocation9 + $0x180] sm:$0xff]   ;;  %v7823_v59 = vld [vmem:[#allocation9 + $0x1d0] sm:$0xff]  }
 0x2f5   :  { %6686 = vmatpush3.bf16.msra.mxu1 %v7816_v16 }
 0x2f6   :  { %4785 = vmatpush1.bf16.msra.mxu0 %v7773_v61  ;;  %6687 = vmatprep.subr.bf16.mxu1 %v7817_v17 }
 0x2f7   :  { %4786 = vmatprep.subr.bf16.mxu0 %v7778_v1 }
 0x2f9   :  { %6688 = vmatpush3.bf16.msra.mxu1 %v7818_v21  ;;  %v7830_v21 = vld [vmem:[#allocation9 + $0x1a8] sm:$0xff]  }
 0x2fa   :  { %4787 = vmatpush1.bf16.msra.mxu0 %v7776_v4  ;;  %6695 = vmatprep.subr.bf16.mxu1 %v7819_v25  ;;  %v7821_v4 = vld [vmem:[#allocation9 + $0x1c8] sm:$0xff]   ;;  %v7833_v25 = vld [vmem:[#allocation9 + $0x1f8] sm:$0xff]  }
 0x2fb   :  { %4788 = vmatprep.subr.bf16.mxu0 %v7781_v6  ;;  %v7825_v6 = vld [vmem:[#allocation9 + $0x1d8] sm:$0xff]  }
 0x2fe   :  { %4789 = vmatpush1.bf16.msra.mxu0 %v7779_v8  ;;  %v7826_v8 = vld [vmem:[#allocation9 + $0x198] sm:$0xff]  }
 0x2ff   :  { %4790 = vmatprep.subr.bf16.mxu0 %v7784_v15 }
 0x302   :  { %4791 = vmatpush1.bf16.msra.mxu0 %v7782_v18  ;;  %v7828_v18 = vld [vmem:[#allocation9 + $0x1a0] sm:$0xff]  }
 0x303   :  { %4792 = vmatprep.subr.bf16.mxu0 %v7787_v20  ;;  %v7829_v20 = vld [vmem:[#allocation9 + $0x1e8] sm:$0xff]  }
 0x306   :  { %4793 = vmatpush1.bf16.msra.mxu0 %v7785_v22  ;;  %v7831_v22 = vld [vmem:[#allocation9 + $0x1f0] sm:$0xff]  }
 0x307   :  { %4794 = vmatprep.subr.bf16.mxu0 %v7790_v24  ;;  %v7832_v24 = vld [vmem:[#allocation9 + $0x1b0] sm:$0xff]  }
 0x30a   :  { %4795 = vmatpush1.bf16.msra.mxu0 %v7788_v26  ;;  %v7834_v26 = vld [vmem:[#allocation9 + $0x1b8] sm:$0xff]  }
 0x30b   :  { %4796 = vmatprep.subr.bf16.mxu0 %v7793_v29  ;;  %v7835_v29 = vld [vmem:[#allocation9 + $0x240] sm:$0xff]  }
 0x30e   :  { %4797 = vmatpush1.bf16.msra.mxu0 %v7791_v30  ;;  %v7836_v30 = vld [vmem:[#allocation9 + $0x200] sm:$0xff]  }
 0x30f   :  { %4798 = vmatprep.subr.bf16.mxu0 %v7796_v32 }
 0x312   :  { %4799 = vmatpush1.bf16.msra.mxu0 %v7794_v33  ;;  %v7837_v33 = vld [vmem:[#allocation9 + $0x248] sm:$0xff]  }
 0x313   :  { %4800 = vmatprep.subr.bf16.mxu0 %v7799_v34  ;;  %v7838_v34 = vld [vmem:[#allocation9 + $0x208] sm:$0xff]  }
 0x316   :  { %4801 = vmatpush1.bf16.msra.mxu0 %v7797_v42  ;;  %v7839_v42 = vld [vmem:[#allocation9 + $0x250] sm:$0xff]  }
 0x317   :  { %4802 = vmatprep.subr.bf16.mxu0 %v7802_v48  ;;  %v7840_v48 = vld [vmem:[#allocation9 + $0x210] sm:$0xff]  }
 0x31a   :  { %4803 = vmatpush1.bf16.msra.mxu0 %v7800_v12  ;;  %v7841_v12 = vld [vmem:[#allocation9 + $0x258] sm:$0xff]  }
 0x31d   :  { %4805 = vmatmul.mubr.bf16.vlgmr.msra.gmra.mrb[8].mxu0 %v8137_v36 }
 0x36f   :  { %v4642_v47 = vpop.f32.mrb[8].mxu1 }
 0x370   :  { %v4644_v36 = vpop.f32.mrb[9].mxu1 }
 0x371   :  { %v4841_v49 = vcombine.low %v4642_v47, %v4644_v36  ;;  %v4646_v50 = vpop.f32.mrb[10].mxu1  ;;  %v7844_v47 = vld [vmem:[#allocation9 + $0x220] sm:$0xff]   ;;  %v7845_v36 = vld [vmem:[#allocation9 + $0x268] sm:$0xff]  }
 0x372   :  { %v4647_v53 = vpop.f32.mrb[11].mxu1  ;;  %v7847_v50 = vld [vmem:[#allocation9 + $0x270] sm:$0xff]  }
 0x373   :  { %v4855_v54 = vrot.slane %v4841_v49, %v8176_v10  ;;  %v7846_v49 = vld [vmem:[#allocation9 + $0x228] sm:$0xff]   ;;  %v7850_v53 = vld [vmem:[#allocation9 + $0x238] sm:$0xff]  }
 0x375   :  { %v4856_v63 = vcombine.low %v4848_v62, %v4855_v54 }
 0x377   :  { %v4970_v31 = vadd.f32 %v4957_v35, %v4856_v63  ;;  %v4881_v63 = vld [vmem:[#allocation8 + $0x8] sm:$0x3] }
 0x379   :  { %v4973_v55 = vmax.f32 %v4970_v31, 0.0 }
 0x37b   :  { %v4976_v14 = vmin.f32 %v4973_v55, 6.0  ;;  %v93_v55 = vld [vmem:[#allocation2 + $0x10] sm:$0xf] }
 0x37d   :  { %v5005_v56 = vrot.slane %v4976_v14, %v8176_v10  ;;  %v4998_v58 = vcombine.high %v4976_v14, %v4976_v14 }
 0x37f   :  { %v5013_v60 = vcombine.high %v5005_v56, %v5005_v56  ;;  %v5012_v61 = vrot.slane %v4998_v58, %v8176_v10  ;;  %v5037_v2 = vpack.c.bf16 %v5005_v56, %v5005_v56  ;;  %v4919_v58 = vrot.slane %v4881_v63, %v4886_v27 }
 0x381   :  { %v5038_v0 = vpack.c.bf16 %v5013_v60, %v5013_v60  ;;  %v5014_v1 = vcombine.high %v5012_v61, %v5012_v61  ;;  %v5039_v32 = vpack.c.bf16 %v5012_v61, %v5012_v61  ;;  %v4923_v60 = vrot.slane %v4881_v63, %v4890_v28 }
 0x383   :  { %5802 = vmatprep.mubr.bf16.mxu1 %v5038_v0  ;;  %v5040_v13 = vpack.c.bf16 %v5014_v1, %v5014_v1  ;;  %v4958_v0 = vcombine.low %v4919_v58, %v4923_v60 }
 0x384   :  { %5803 = vmatmul.mubr.bf16.vlgmr.msra.gmra.mrb[20].mxu1 %v5037_v2 }
 0x385   :  { %6696 = vmatpush3.bf16.msra.mxu1 %v7820_v3  ;;  %5842 = vmatprep.mubr.bf16.mxu1 %v5040_v13  ;;  %v4965_v3 = vrot.slane %v4958_v0, %v8176_v10 }
 0x386   :  { %6697 = vmatprep.subr.bf16.mxu1 %v7821_v4 }
 0x389   :  { %6698 = vmatpush3.bf16.msra.mxu1 %v7822_v57 }
 0x38a   :  { %6699 = vmatprep.subr.bf16.mxu1 %v7823_v59 }
 0x38d   :  { %6700 = vmatpush3.bf16.msra.mxu1 %v7824_v5 }
 0x38e   :  { %6701 = vmatprep.subr.bf16.mxu1 %v7825_v6 }
 0x38f   :  { %v6645_v7 = vpop.f32.mrb[12].mxu1 }
 0x390   :  { %v6646_v9 = vpop.f32.mrb[13].mxu1 }
 0x391   :  { %v6647_v15 = vadd.f32 %v6646_v9, %v6645_v7  ;;  %v6648_v16 = vpop.f32.mrb[14].mxu1  ;;  %6702 = vmatpush3.bf16.msra.mxu1 %v7826_v8 }
 0x392   :  { %v6649_v17 = vpop.f32.mrb[15].mxu1  ;;  %6703 = vmatprep.subr.bf16.mxu1 %v7827_v11 }
 0x393   :  { %v5725_v41 = vadd.f32 %v6647_v15, %v6548_v37 }
 0x395   :  { %6704 = vmatpush3.bf16.msra.mxu1 %v7828_v18 }
 0x396   :  { %6705 = vmatprep.subr.bf16.mxu1 %v7829_v20 }
 0x399   :  { %6706 = vmatpush3.bf16.msra.mxu1 %v7830_v21 }
 0x39a   :  { %6707 = vmatprep.subr.bf16.mxu1 %v7831_v22 }
 0x39d   :  { %6708 = vmatpush3.bf16.msra.mxu1 %v7832_v24 }
 0x39e   :  { %6709 = vmatprep.subr.bf16.mxu1 %v7833_v25 }
 0x3a1   :  { %6710 = vmatpush3.bf16.msra.mxu1 %v7834_v26 }
 0x3a2   :  { %6717 = vmatprep.subr.bf16.mxu1 %v7835_v29 }
 0x3a4   :  { %5843 = vmatmul.mubr.bf16.vlgmr.msra.gmra.mrb[24].mxu1 %v5039_v32 }
 0x3a5   :  { %6718 = vmatpush3.bf16.msra.mxu1 %v7836_v30 }
 0x3a6   :  { %6719 = vmatprep.subr.bf16.mxu1 %v7837_v33 }
 0x3a9   :  { %6720 = vmatpush3.bf16.msra.mxu1 %v7838_v34 }
 0x3aa   :  { %6721 = vmatprep.subr.bf16.mxu1 %v7839_v42 }
 0x3ad   :  { %6722 = vmatpush3.bf16.msra.mxu1 %v7840_v48 }
 0x3ae   :  { %6723 = vmatprep.subr.bf16.mxu1 %v7841_v12 }
 0x3af   :  { %v6667_v38 = vpop.f32.mrb[16].mxu1 }
 0x3b0   :  { %v6668_v19 = vpop.f32.mrb[17].mxu1 }
 0x3b1   :  { %v6669_v44 = vadd.f32 %v6668_v19, %v6667_v38  ;;  %v6670_v45 = vpop.f32.mrb[18].mxu1  ;;  %6724 = vmatpush3.bf16.msra.mxu1 %v7842_v39 }
 0x3b2   :  { %v6671_v46 = vpop.f32.mrb[19].mxu1  ;;  %6725 = vmatprep.subr.bf16.mxu1 %v7843_v40 }
 0x3b3   :  { %v5765_v23 = vadd.f32 %v6669_v44, %v5725_v41 }
 0x3b5   :  { %6726 = vmatpush3.bf16.msra.mxu1 %v7844_v47 }
 0x3b6   :  { %6727 = vmatprep.subr.bf16.mxu1 %v7845_v36 }
 0x3b9   :  { %6728 = vmatpush3.bf16.msra.mxu1 %v7846_v49 }
 0x3ba   :  { %6729 = vmatprep.subr.bf16.mxu1 %v7847_v50 }
 0x3bd   :  { %6730 = vmatpush3.bf16.msra.mxu1 %v7848_v51 }
 0x3be   :  { %6731 = vmatprep.subr.bf16.mxu1 %v7849_v52 }
 0x3c1   :  { %6732 = vmatpush3.bf16.msra.mxu1 %v7850_v53 }
 0x3f0   :  { %v4806_v62 = vpop.f32.mrb[8].mxu0 }
 0x3f1   :  { %v4808_v54 = vpop.f32.mrb[9].mxu0 }
 0x3f2   :  { %v4857_v35 = vcombine.low %v4806_v62, %v4808_v54  ;;  %v4810_v31 = vpop.f32.mrb[10].mxu0 }
 0x3f3   :  { %v4811_v14 = vpop.f32.mrb[11].mxu0 }
 0x3f4   :  { %v4864_v56 = vrot.slane %v4857_v35, %v8176_v10 }
 0x3f6   :  { %v4870_v61 = vadd.f32 %v4864_v56, %v93_v55 }
 0x3f8   :  { %4873 = vst [vmem:[#allocation2 + $0x10] sm:$0xf] %v4870_v61 }
 0x3ff   :  { %v4879_v1 = vld [vmem:[#allocation2 + $0x10] sm:$0xf] }
 0x400   :  { %v4971_v2 = vadd.f32 %v4965_v3, %v4879_v1 }
 0x402   :  { %v4974_v4 = vmax.f32 %v4971_v2, 0.0 }
 0x404   :  { %v4977_v13 = vmin.f32 %v4974_v4, 6.0 }
 0x406   :  { %v5021_v57 = vrot.slane %v4977_v13, %v8176_v10 }
 0x408   :  { %v5022_v59 = vcombine.high %v5021_v57, %v5021_v57  ;;  %v5041_v6 = vpack.c.bf16 %v5021_v57, %v5021_v57 }
 0x40a   :  { %v5042_v5 = vpack.c.bf16 %v5022_v59, %v5022_v59 }
 0x40c   :  { %5882 = vmatprep.mubr.bf16.mxu1 %v5042_v5 }
 0x40d   :  { %5883 = vmatmul.mubr.bf16.vlgmr.msra.gmra.mrb[28].mxu1 %v5041_v6 }
 0x457   :  { %v6689_v27 = vpop.f32.mrb[20].mxu1 }
 0x458   :  { %v6690_v7 = vpop.f32.mrb[21].mxu1 }
 0x459   :  { %v6691_v43 = vadd.f32 %v6690_v7, %v6689_v27  ;;  %v6692_v28 = vpop.f32.mrb[22].mxu1 }
 0x45a   :  { %v6693_v8 = vpop.f32.mrb[23].mxu1 }
 0x45b   :  { %v5805_v9 = vadd.f32 %v6691_v43, %v5765_v23 }
 0x477   :  { %v6711_v11 = vpop.f32.mrb[24].mxu1 }
 0x478   :  { %v6712_v15 = vpop.f32.mrb[25].mxu1 }
 0x479   :  { %v6713_v16 = vadd.f32 %v6712_v15, %v6711_v11  ;;  %v6714_v17 = vpop.f32.mrb[26].mxu1 }
 0x47a   :  { %v6715_v18 = vpop.f32.mrb[27].mxu1 }
 0x47b   :  { %v5845_v20 = vadd.f32 %v6713_v16, %v5805_v9 }
 0x4e0   :  { %v6733_v21 = vpop.f32.mrb[28].mxu1 }
 0x4e1   :  { %v6734_v22 = vpop.f32.mrb[29].mxu1 }
 0x4e2   :  { %v6735_v10 = vadd.f32 %v6734_v22, %v6733_v21  ;;  %v6736_v24 = vpop.f32.mrb[30].mxu1 }
 0x4e3   :  { %v6737_v25 = vpop.f32.mrb[31].mxu1 }
 0x4e4   :  { %v5885_v26 = vadd.f32 %v6735_v10, %v5845_v20 }
 0x4e6   :  { %5890 = vst [vmem:[#allocation12] sm:$0x3] %v5885_v26 }
 0x4e7   :  { %7972 = shalt.err (!%p7969_p2)
}
 0x4e8   :  { %s7973_s6 = scalar_lea.hbm %s8271_s5, 32 }
 0x4e9   :  { %p7974_p3 = scmp.ne.s32.totalorder %s8271_s5, %s7973_s6  ;;  %p7977_p4 = scmp.lt.u32.totalorder %s7973_s6, %s8271_s5 }
 0x4eb   :  { %p7979_p5 = pnand %p7977_p4, %p7974_p3 }
 0x4ed   :  { %7982 = shalt.err (!%p7979_p5)
}
 0x4ee   :  { %5900 = dma.vmem_to_hbm [thread:$0]  %s5898_s28, 32, %s8271_s5, [#allocation5]  }
 0x4ef   :  { %7989 = dma.done.wait [#allocation5], 32  }
 0x4f0   :  { %7990 = vsyncadd [#allocation5], 4294967264 }
 0x4f1   :  { %5904 = vsyncpa [#allocation4], 1 }
 0x4f2   :  { %5905 = vsyncpa [#allocation7], 1 }
 0x4f3   :  { %5906 = vsyncpa [#allocation10], 1 }
 0x4f4   :  { %5907 = vsyncpa [#allocation5], 1 }

</bundles_post_ra>
